<compile_context>
chip_gen: v6e
topology: v6e:2x2x1
jax: 0.10.0
libtpu: 0.0.40
codegen_flags: <defaults>
</compile_context>

<pallas_src>
import numpy as np

import jax
import jax.numpy as jnp
from jax.experimental import pallas as pl
from jax.experimental.pallas import tpu as pltpu  # noqa: F401  (TPU backend)

EPS = 1e-5
_K1, _S1, _P1 = 7, 2, 1  # layer-1 conv geometry


def _round_up(x, m):
    return (x + m - 1) // m * m


def _conv_out(size, k, s, p):
    return (size + 2 * p - k) // s + 1


# ---------------------------------------------------------------------------
# The single fused Pallas kernel
# ---------------------------------------------------------------------------
def _fused_net_kernel(p1_ref, w1_ref, s1_ref,
                      g2_ref, w2_ref, s2_ref,
                      g3_ref, w3_ref, s3_ref,
                      pm_ref, wl_ref, bl_ref, o_ref):
    # Layer 1: im2col GEMM (BN scale pre-folded into the weights) + shift + ReLU.
    y1 = jnp.maximum(
        jnp.dot(p1_ref[...], w1_ref[...], preferred_element_type=jnp.float32)
        + s1_ref[...], 0.0)                                     # (168, 128)

    # Layers 2 & 3: conv(3x3, stride 2, pad 1) as a sum over the 9 taps of
    #   (gather_matrix[t] @ activation) @ folded_weight[t]
    # -- pure 2-D MXU matmuls on VMEM-resident data.
    def conv_bn_relu(y, g_ref, w_ref, s_ref):
        n_taps, m_rows, _ = g_ref.shape
        cout = w_ref.shape[2]
        acc = jnp.zeros((m_rows, cout), jnp.float32)
        for t in range(n_taps):
            patch_t = jnp.dot(g_ref[t], y, preferred_element_type=jnp.float32)
            acc = acc + jnp.dot(patch_t, w_ref[t],
                                preferred_element_type=jnp.float32)
        return jnp.maximum(acc + s_ref[...], 0.0)

    y2 = conv_bn_relu(y1, g2_ref, w2_ref, s2_ref)               # (56, 128)
    y3 = conv_bn_relu(y2, g3_ref, w3_ref, s3_ref)               # (24, 256)

    # Head: AvgPool2d(2) via a 0.25-weighted pooling matrix, then Linear.
    pooled = jnp.dot(pm_ref[...], y3, preferred_element_type=jnp.float32)
    o_ref[...] = (jnp.dot(pooled, wl_ref[...],
                          preferred_element_type=jnp.float32) + bl_ref[...])


# ---------------------------------------------------------------------------
# Host-side (one-time) parameter preparation
# ---------------------------------------------------------------------------
def _flatten_weight_like_patches(w):
    """(Cout, Cin, K, K) -> (Cin*K*K, Cout), feature ordering guaranteed to
    match lax.conv_general_dilated_patches (same function, same C / filter)."""
    cout, cin, kh, kw = w.shape
    wp = jax.lax.conv_general_dilated_patches(
        w, filter_shape=(kh, kw), window_strides=(1, 1), padding="VALID")
    return wp.reshape(cout, cin * kh * kw).T


def _gather_matrices(n, h_in, w_in, h_out, w_out, k, stride, pad, m_pad, p_pad):
    """0/1 matrices G[t] so that G[t] @ activation_rows gives the im2col rows
    for kernel tap t of a (k,k,stride,pad) conv; zero rows encode padding."""
    g = np.zeros((k * k, m_pad, p_pad), np.float32)
    for ni in range(n):
        for ho in range(h_out):
            for wo in range(w_out):
                m = ni * h_out * w_out + ho * w_out + wo
                for ki in range(k):
                    for kj in range(k):
                        hi = stride * ho + ki - pad
                        wi = stride * wo + kj - pad
                        if 0 <= hi < h_in and 0 <= wi < w_in:
                            p = ni * h_in * w_in + hi * w_in + wi
                            g[ki * k + kj, m, p] = 1.0
    return jnp.asarray(g)


def prepare(params, input_hw, batch):
    """Fold BN, flatten/pad weights, build gather & pooling matrices (runs once,
    outside jit, so the kernel operands are constants w.r.t. the forward)."""
    h0, w0 = input_hw
    n = batch
    assert n <= 8, "pooling matrix sized for batch <= 8"

    def bn_fold(bn):
        gamma, beta, mean, var = bn
        scale = gamma / jnp.sqrt(var + EPS)
        return scale, beta - mean * scale

    # Static spatial plan.
    h1, w1s = _conv_out(h0, _K1, _S1, _P1), _conv_out(w0, _K1, _S1, _P1)
    h2, w2s = _conv_out(h1, 3, 2, 1), _conv_out(w1s, 3, 2, 1)
    h3, w3s = _conv_out(h2, 3, 2, 1), _conv_out(w2s, 3, 2, 1)

    c1, c2, c3 = 64, 128, 256
    m1, m2, m3 = n * h1 * w1s, n * h2 * w2s, n * h3 * w3s
    m1p, m2p, m3p = _round_up(m1, 8), _round_up(m2, 8), _round_up(m3, 8)
    k1f = 3 * _K1 * _K1
    k1fp = _round_up(k1f, 8)
    c1p = _round_up(c1, 128)  # pad layer-1 Cout 64 -> 128 for lane alignment

    # ---- layer 1: im2col GEMM weight (BN scale folded in) ----
    scale1, shift1 = bn_fold(params["bn1"])
    w1m = _flatten_weight_like_patches(params["w1"]) * scale1[None, :]  # (147, 64)
    w1m = jnp.pad(w1m, ((0, k1fp - k1f), (0, c1p - c1)))
    s1 = jnp.pad(shift1, (0, c1p - c1)).reshape(1, c1p)

    # ---- layers 2 & 3: per-tap folded weights + gather matrices ----
    def tap_weights(wconv, scale, cin_pad):
        cout, cin, kk, _ = wconv.shape
        taps = []
        for ki in range(kk):
            for kj in range(kk):
                wt = wconv[:, :, ki, kj].T * scale[None, :]   # (Cin, Cout), BN folded
                taps.append(jnp.pad(wt, ((0, cin_pad - cin), (0, 0))))
        return jnp.stack(taps, axis=0)                        # (K*K, cin_pad, Cout)

    scale2, shift2 = bn_fold(params["bn2"])
    scale3, shift3 = bn_fold(params["bn3"])
    w2t = tap_weights(params["w2"], scale2, c1p)              # (9, 128, 128)
    w3t = tap_weights(params["w3"], scale3, c2)               # (9, 128, 256)
    s2 = shift2.reshape(1, c2)
    s3 = shift3.reshape(1, c3)
    g2 = _gather_matrices(n, h1, w1s, h2, w2s, 3, 2, 1, m2p, m1p)  # (9, 56, 168)
    g3 = _gather_matrices(n, h2, w2s, h3, w3s, 3, 2, 1, m3p, m2p)  # (9, 24, 56)

    # ---- head: AvgPool2d(2) as a pooling matrix + lane-padded Linear ----
    assert h3 // 2 == 1 and w3s // 2 == 1, (
        "flatten size must equal Linear in_features (use 22x22 inputs)")
    pm_rows = 8
    pm = np.zeros((pm_rows, m3p), np.float32)
    for ni in range(n):
        for dh in range(2):
            for dw in range(2):
                pm[ni, ni * h3 * w3s + dh * w3s + dw] = 0.25
    out_pad = 128
    wl = jnp.pad(params["wl"].T.astype(jnp.float32),
                 ((0, 0), (0, out_pad - params["wl"].shape[0])))    # (256, 128)
    bl = jnp.pad(params["bl"].astype(jnp.float32),
                 (0, out_pad - params["bl"].shape[0])).reshape(1, out_pad)

    return {
        "w1": w1m, "s1": s1,
        "g2": g2, "w2": w2t, "s2": s2,
        "g3": g3, "w3": w3t, "s3": s3,
        "pm": jnp.asarray(pm), "wl": wl, "bl": bl,
    }


# ---------------------------------------------------------------------------
# Forward pass: one XLA patch-gather + ONE fused Pallas kernel
# ---------------------------------------------------------------------------
def forward(prep, x_nchw):
    n = x_nchw.shape[0]
    x = x_nchw.astype(jnp.float32)

    # Layer-1 im2col in a single fused XLA op (no Python-loop slice glue).
    patches = jax.lax.conv_general_dilated_patches(
        x, filter_shape=(_K1, _K1), window_strides=(_S1, _S1),
        padding=((_P1, _P1), (_P1, _P1)))                 # (N, 3*K*K, H1, W1)
    _, feat, h1, w1s = patches.shape
    patches = jnp.transpose(patches, (0, 2, 3, 1)).reshape(n * h1 * w1s, feat)
    m1p = prep["g2"].shape[2]
    k1fp = prep["w1"].shape[0]
    patches = jnp.pad(patches, ((0, m1p - patches.shape[0]), (0, k1fp - feat)))

    out_rows = prep["pm"].shape[0]
    out_cols = prep["wl"].shape[1]
    out = pl.pallas_call(
        _fused_net_kernel,
        out_shape=jax.ShapeDtypeStruct((out_rows, out_cols), jnp.float32),
        # No grid / specs: whole-array VMEM blocks, single invocation.
    )(patches, prep["w1"], prep["s1"],
      prep["g2"], prep["w2"], prep["s2"],
      prep["g3"], prep["w3"], prep["s3"],
      prep["pm"], prep["wl"], prep["bl"])
    return out[:n, :2]


# ---------------------------------------------------------------------------
# Parameter init (mirrors the PyTorch module shapes) and pure-JAX reference
# ---------------------------------------------------------------------------
def init_params(key):
    keys = jax.random.split(key, 16)

    def conv_w(k, cout, cin, ks):
        fan_in = cin * ks * ks
        return jax.random.normal(k, (cout, cin, ks, ks), jnp.float32) / jnp.sqrt(
            float(fan_in))

    def bn(kg, kb, km, kv, c):
        gamma = 1.0 + 0.1 * jax.random.normal(kg, (c,), jnp.float32)
        beta = 0.1 * jax.random.normal(kb, (c,), jnp.float32)
        mean = 0.1 * jax.random.normal(km, (c,), jnp.float32)
        var = jnp.abs(jax.random.normal(kv, (c,), jnp.float32)) + 0.5
        return gamma, beta, mean, var

    params = {
        "w1": conv_w(keys[0], 64, 3, 7),     # Conv2d(3, 64, 7, 2, 1, bias=False)
        "w2": conv_w(keys[1], 128, 64, 3),   # Conv2d(64, 128, 3, 2, 1, bias=False)
        "w3": conv_w(keys[2], 256, 128, 3),  # Conv2d(128, 256, 3, 2, 1, bias=False)
        "bn1": bn(keys[3], keys[4], keys[5], keys[6], 64),
        "bn2": bn(keys[7], keys[8], keys[9], keys[10], 128),
        "bn3": bn(keys[11], keys[12], keys[13], keys[14], 256),
    }
    k1, k2 = jax.random.split(keys[15])
    params["wl"] = jax.random.normal(k1, (2, 256), jnp.float32) / jnp.sqrt(256.0)
    params["bl"] = 0.01 * jax.random.normal(k2, (2,), jnp.float32)
    return params


_REF_LAYERS = [("w1", "bn1", 2, 1), ("w2", "bn2", 2, 1), ("w3", "bn3", 2, 1)]


def reference_forward(params, x_nchw):
    """Pure-JAX reference (lax.conv) for a numerical sanity check."""
    x = x_nchw.astype(jnp.float32)
    for wname, bnname, s, p in _REF_LAYERS:
        w = params[wname]
        gamma, beta, mean, var = params[bnname]
        y = jax.lax.conv_general_dilated(
            x, w, (s, s), [(p, p), (p, p)],
            dimension_numbers=("NCHW", "OIHW", "NCHW"))
        scale = gamma / jnp.sqrt(var + EPS)
        shift = beta - mean * scale
        x = jnp.maximum(y * scale[None, :, None, None]
                        + shift[None, :, None, None], 0.0)
    pooled = x[:, :, :2, :2].mean(axis=(2, 3))  # AvgPool2d(2) -> (N, 256)
    return pooled @ params["wl"].T + params["bl"]


if __name__ == "__main__":
    key = jax.random.PRNGKey(0)
    pkey, xkey = jax.random.split(key)
    params = init_params(pkey)

    # 22x22 input -> 9x9 -> 5x5 -> 3x3 -> AvgPool2d(2) -> 1x1, so the flatten
    # yields exactly 256 features for Linear(256, 2), as the PyTorch net requires.
    x = jax.random.normal(xkey, (2, 3, 22, 22), jnp.float32)  # NCHW, like PyTorch

    prep = prepare(params, input_hw=(22, 22), batch=2)
    fwd = jax.jit(forward)
    out = jax.block_until_ready(fwd(prep, x))
    assert out.shape == (2, 2), out.shape

    ref = reference_forward(params, x)
    assert jnp.allclose(out, ref, rtol=2e-2, atol=2e-2), (out, ref)

    print("KERNEL_OK")
</pallas_src>

<mosaic_0001>
module attributes {stable_mosaic.version = 11 : i64} {
  func.func @_fused_net_kernel(%arg0: memref<168x152xf32, #tpu.memory_space<vmem>>, %arg1: memref<152x128xf32, #tpu.memory_space<vmem>>, %arg2: memref<1x128xf32, #tpu.memory_space<vmem>>, %arg3: memref<9x56x168xf32, #tpu.memory_space<vmem>>, %arg4: memref<9x128x128xf32, #tpu.memory_space<vmem>>, %arg5: memref<1x128xf32, #tpu.memory_space<vmem>>, %arg6: memref<9x24x56xf32, #tpu.memory_space<vmem>>, %arg7: memref<9x128x256xf32, #tpu.memory_space<vmem>>, %arg8: memref<1x256xf32, #tpu.memory_space<vmem>>, %arg9: memref<8x24xf32, #tpu.memory_space<vmem>>, %arg10: memref<256x128xf32, #tpu.memory_space<vmem>>, %arg11: memref<1x128xf32, #tpu.memory_space<vmem>>, %arg12: memref<8x128xf32, #tpu.memory_space<vmem>>) attributes {dimension_semantics = [], scalar_prefetch = 0 : i64, scratch_operands = 0 : i64, tpu.core_type = #tpu.core_type<tc>} {
    %c0 = arith.constant 0 : index
    %c0_0 = arith.constant 0 : index
    %0 = vector.load %arg0[%c0, %c0_0] : memref<168x152xf32, #tpu.memory_space<vmem>>, vector<168x152xf32>
    %c0_1 = arith.constant 0 : index
    %c0_2 = arith.constant 0 : index
    %1 = vector.load %arg1[%c0_1, %c0_2] : memref<152x128xf32, #tpu.memory_space<vmem>>, vector<152x128xf32>
    %cst = arith.constant dense<0.000000e+00> : vector<168x128xf32>
    %2 = tpu.matmul %0, %1, %cst {dimension_numbers = #tpu.dot_dimension_numbers<[1], [0], [0], [1], [0, 0, 1, 1], [], []>} : vector<168x152xf32>, vector<152x128xf32>, vector<168x128xf32> -> vector<168x128xf32>
    %c0_3 = arith.constant 0 : index
    %c0_4 = arith.constant 0 : index
    %3 = vector.load %arg2[%c0_3, %c0_4] : memref<1x128xf32, #tpu.memory_space<vmem>>, vector<1x128xf32>
    %4 = vector.broadcast %3 : vector<1x128xf32> to vector<168x128xf32>
    %5 = arith.addf %2, %4 : vector<168x128xf32>
    %cst_5 = arith.constant 0.000000e+00 : f32
    %6 = vector.broadcast %cst_5 : f32 to vector<168x128xf32>
    %7 = arith.maximumf %5, %6 : vector<168x128xf32>
    %cst_6 = arith.constant 0.000000e+00 : f32
    %8 = vector.broadcast %cst_6 : f32 to vector<56x128xf32>
    %c0_7 = arith.constant 0 : index
    %c0_8 = arith.constant 0 : index
    %c0_9 = arith.constant 0 : index
    %9 = vector.load %arg3[%c0_7, %c0_8, %c0_9] : memref<9x56x168xf32, #tpu.memory_space<vmem>>, vector<1x56x168xf32>
    %10 = vector.shape_cast %9 : vector<1x56x168xf32> to vector<56x168xf32>
    %cst_10 = arith.constant dense<0.000000e+00> : vector<56x128xf32>
    %11 = tpu.matmul %10, %7, %cst_10 {dimension_numbers = #tpu.dot_dimension_numbers<[1], [0], [0], [1], [0, 0, 1, 1], [], []>} : vector<56x168xf32>, vector<168x128xf32>, vector<56x128xf32> -> vector<56x128xf32>
    %c0_11 = arith.constant 0 : index
    %c0_12 = arith.constant 0 : index
    %c0_13 = arith.constant 0 : index
    %12 = vector.load %arg4[%c0_11, %c0_12, %c0_13] : memref<9x128x128xf32, #tpu.memory_space<vmem>>, vector<1x128x128xf32>
    %13 = vector.shape_cast %12 : vector<1x128x128xf32> to vector<128x128xf32>
    %cst_14 = arith.constant dense<0.000000e+00> : vector<56x128xf32>
    %14 = tpu.matmul %11, %13, %cst_14 {dimension_numbers = #tpu.dot_dimension_numbers<[1], [0], [0], [1], [0, 0, 1, 1], [], []>} : vector<56x128xf32>, vector<128x128xf32>, vector<56x128xf32> -> vector<56x128xf32>
    %15 = arith.addf %8, %14 : vector<56x128xf32>
    %c1 = arith.constant 1 : index
    %c0_15 = arith.constant 0 : index
    %c0_16 = arith.constant 0 : index
    %16 = vector.load %arg3[%c1, %c0_15, %c0_16] : memref<9x56x168xf32, #tpu.memory_space<vmem>>, vector<1x56x168xf32>
    %17 = vector.shape_cast %16 : vector<1x56x168xf32> to vector<56x168xf32>
    %cst_17 = arith.constant dense<0.000000e+00> : vector<56x128xf32>
    %18 = tpu.matmul %17, %7, %cst_17 {dimension_numbers = #tpu.dot_dimension_numbers<[1], [0], [0], [1], [0, 0, 1, 1], [], []>} : vector<56x168xf32>, vector<168x128xf32>, vector<56x128xf32> -> vector<56x128xf32>
    %c1_18 = arith.constant 1 : index
    %c0_19 = arith.constant 0 : index
    %c0_20 = arith.constant 0 : index
    %19 = vector.load %arg4[%c1_18, %c0_19, %c0_20] : memref<9x128x128xf32, #tpu.memory_space<vmem>>, vector<1x128x128xf32>
    %20 = vector.shape_cast %19 : vector<1x128x128xf32> to vector<128x128xf32>
    %cst_21 = arith.constant dense<0.000000e+00> : vector<56x128xf32>
    %21 = tpu.matmul %18, %20, %cst_21 {dimension_numbers = #tpu.dot_dimension_numbers<[1], [0], [0], [1], [0, 0, 1, 1], [], []>} : vector<56x128xf32>, vector<128x128xf32>, vector<56x128xf32> -> vector<56x128xf32>
    %22 = arith.addf %15, %21 : vector<56x128xf32>
    %c2 = arith.constant 2 : index
    %c0_22 = arith.constant 0 : index
    %c0_23 = arith.constant 0 : index
    %23 = vector.load %arg3[%c2, %c0_22, %c0_23] : memref<9x56x168xf32, #tpu.memory_space<vmem>>, vector<1x56x168xf32>
    %24 = vector.shape_cast %23 : vector<1x56x168xf32> to vector<56x168xf32>
    %cst_24 = arith.constant dense<0.000000e+00> : vector<56x128xf32>
    %25 = tpu.matmul %24, %7, %cst_24 {dimension_numbers = #tpu.dot_dimension_numbers<[1], [0], [0], [1], [0, 0, 1, 1], [], []>} : vector<56x168xf32>, vector<168x128xf32>, vector<56x128xf32> -> vector<56x128xf32>
    %c2_25 = arith.constant 2 : index
    %c0_26 = arith.constant 0 : index
    %c0_27 = arith.constant 0 : index
    %26 = vector.load %arg4[%c2_25, %c0_26, %c0_27] : memref<9x128x128xf32, #tpu.memory_space<vmem>>, vector<1x128x128xf32>
    %27 = vector.shape_cast %26 : vector<1x128x128xf32> to vector<128x128xf32>
    %cst_28 = arith.constant dense<0.000000e+00> : vector<56x128xf32>
    %28 = tpu.matmul %25, %27, %cst_28 {dimension_numbers = #tpu.dot_dimension_numbers<[1], [0], [0], [1], [0, 0, 1, 1], [], []>} : vector<56x128xf32>, vector<128x128xf32>, vector<56x128xf32> -> vector<56x128xf32>
    %29 = arith.addf %22, %28 : vector<56x128xf32>
    %c3 = arith.constant 3 : index
    %c0_29 = arith.constant 0 : index
    %c0_30 = arith.constant 0 : index
    %30 = vector.load %arg3[%c3, %c0_29, %c0_30] : memref<9x56x168xf32, #tpu.memory_space<vmem>>, vector<1x56x168xf32>
    %31 = vector.shape_cast %30 : vector<1x56x168xf32> to vector<56x168xf32>
    %cst_31 = arith.constant dense<0.000000e+00> : vector<56x128xf32>
    %32 = tpu.matmul %31, %7, %cst_31 {dimension_numbers = #tpu.dot_dimension_numbers<[1], [0], [0], [1], [0, 0, 1, 1], [], []>} : vector<56x168xf32>, vector<168x128xf32>, vector<56x128xf32> -> vector<56x128xf32>
    %c3_32 = arith.constant 3 : index
    %c0_33 = arith.constant 0 : index
    %c0_34 = arith.constant 0 : index
    %33 = vector.load %arg4[%c3_32, %c0_33, %c0_34] : memref<9x128x128xf32, #tpu.memory_space<vmem>>, vector<1x128x128xf32>
    %34 = vector.shape_cast %33 : vector<1x128x128xf32> to vector<128x128xf32>
    %cst_35 = arith.constant dense<0.000000e+00> : vector<56x128xf32>
    %35 = tpu.matmul %32, %34, %cst_35 {dimension_numbers = #tpu.dot_dimension_numbers<[1], [0], [0], [1], [0, 0, 1, 1], [], []>} : vector<56x128xf32>, vector<128x128xf32>, vector<56x128xf32> -> vector<56x128xf32>
    %36 = arith.addf %29, %35 : vector<56x128xf32>
    %c4 = arith.constant 4 : index
    %c0_36 = arith.constant 0 : index
    %c0_37 = arith.constant 0 : index
    %37 = vector.load %arg3[%c4, %c0_36, %c0_37] : memref<9x56x168xf32, #tpu.memory_space<vmem>>, vector<1x56x168xf32>
    %38 = vector.shape_cast %37 : vector<1x56x168xf32> to vector<56x168xf32>
    %cst_38 = arith.constant dense<0.000000e+00> : vector<56x128xf32>
    %39 = tpu.matmul %38, %7, %cst_38 {dimension_numbers = #tpu.dot_dimension_numbers<[1], [0], [0], [1], [0, 0, 1, 1], [], []>} : vector<56x168xf32>, vector<168x128xf32>, vector<56x128xf32> -> vector<56x128xf32>
    %c4_39 = arith.constant 4 : index
    %c0_40 = arith.constant 0 : index
    %c0_41 = arith.constant 0 : index
    %40 = vector.load %arg4[%c4_39, %c0_40, %c0_41] : memref<9x128x128xf32, #tpu.memory_space<vmem>>, vector<1x128x128xf32>
    %41 = vector.shape_cast %40 : vector<1x128x128xf32> to vector<128x128xf32>
    %cst_42 = arith.constant dense<0.000000e+00> : vector<56x128xf32>
    %42 = tpu.matmul %39, %41, %cst_42 {dimension_numbers = #tpu.dot_dimension_numbers<[1], [0], [0], [1], [0, 0, 1, 1], [], []>} : vector<56x128xf32>, vector<128x128xf32>, vector<56x128xf32> -> vector<56x128xf32>
    %43 = arith.addf %36, %42 : vector<56x128xf32>
    %c5 = arith.constant 5 : index
    %c0_43 = arith.constant 0 : index
    %c0_44 = arith.constant 0 : index
    %44 = vector.load %arg3[%c5, %c0_43, %c0_44] : memref<9x56x168xf32, #tpu.memory_space<vmem>>, vector<1x56x168xf32>
    %45 = vector.shape_cast %44 : vector<1x56x168xf32> to vector<56x168xf32>
    %cst_45 = arith.constant dense<0.000000e+00> : vector<56x128xf32>
    %46 = tpu.matmul %45, %7, %cst_45 {dimension_numbers = #tpu.dot_dimension_numbers<[1], [0], [0], [1], [0, 0, 1, 1], [], []>} : vector<56x168xf32>, vector<168x128xf32>, vector<56x128xf32> -> vector<56x128xf32>
    %c5_46 = arith.constant 5 : index
    %c0_47 = arith.constant 0 : index
    %c0_48 = arith.constant 0 : index
    %47 = vector.load %arg4[%c5_46, %c0_47, %c0_48] : memref<9x128x128xf32, #tpu.memory_space<vmem>>, vector<1x128x128xf32>
    %48 = vector.shape_cast %47 : vector<1x128x128xf32> to vector<128x128xf32>
    %cst_49 = arith.constant dense<0.000000e+00> : vector<56x128xf32>
    %49 = tpu.matmul %46, %48, %cst_49 {dimension_numbers = #tpu.dot_dimension_numbers<[1], [0], [0], [1], [0, 0, 1, 1], [], []>} : vector<56x128xf32>, vector<128x128xf32>, vector<56x128xf32> -> vector<56x128xf32>
    %50 = arith.addf %43, %49 : vector<56x128xf32>
    %c6 = arith.constant 6 : index
    %c0_50 = arith.constant 0 : index
    %c0_51 = arith.constant 0 : index
    %51 = vector.load %arg3[%c6, %c0_50, %c0_51] : memref<9x56x168xf32, #tpu.memory_space<vmem>>, vector<1x56x168xf32>
    %52 = vector.shape_cast %51 : vector<1x56x168xf32> to vector<56x168xf32>
    %cst_52 = arith.constant dense<0.000000e+00> : vector<56x128xf32>
    %53 = tpu.matmul %52, %7, %cst_52 {dimension_numbers = #tpu.dot_dimension_numbers<[1], [0], [0], [1], [0, 0, 1, 1], [], []>} : vector<56x168xf32>, vector<168x128xf32>, vector<56x128xf32> -> vector<56x128xf32>
    %c6_53 = arith.constant 6 : index
    %c0_54 = arith.constant 0 : index
    %c0_55 = arith.constant 0 : index
    %54 = vector.load %arg4[%c6_53, %c0_54, %c0_55] : memref<9x128x128xf32, #tpu.memory_space<vmem>>, vector<1x128x128xf32>
    %55 = vector.shape_cast %54 : vector<1x128x128xf32> to vector<128x128xf32>
    %cst_56 = arith.constant dense<0.000000e+00> : vector<56x128xf32>
    %56 = tpu.matmul %53, %55, %cst_56 {dimension_numbers = #tpu.dot_dimension_numbers<[1], [0], [0], [1], [0, 0, 1, 1], [], []>} : vector<56x128xf32>, vector<128x128xf32>, vector<56x128xf32> -> vector<56x128xf32>
    %57 = arith.addf %50, %56 : vector<56x128xf32>
    %c7 = arith.constant 7 : index
    %c0_57 = arith.constant 0 : index
    %c0_58 = arith.constant 0 : index
    %58 = vector.load %arg3[%c7, %c0_57, %c0_58] : memref<9x56x168xf32, #tpu.memory_space<vmem>>, vector<1x56x168xf32>
    %59 = vector.shape_cast %58 : vector<1x56x168xf32> to vector<56x168xf32>
    %cst_59 = arith.constant dense<0.000000e+00> : vector<56x128xf32>
    %60 = tpu.matmul %59, %7, %cst_59 {dimension_numbers = #tpu.dot_dimension_numbers<[1], [0], [0], [1], [0, 0, 1, 1], [], []>} : vector<56x168xf32>, vector<168x128xf32>, vector<56x128xf32> -> vector<56x128xf32>
    %c7_60 = arith.constant 7 : index
    %c0_61 = arith.constant 0 : index
    %c0_62 = arith.constant 0 : index
    %61 = vector.load %arg4[%c7_60, %c0_61, %c0_62] : memref<9x128x128xf32, #tpu.memory_space<vmem>>, vector<1x128x128xf32>
    %62 = vector.shape_cast %61 : vector<1x128x128xf32> to vector<128x128xf32>
    %cst_63 = arith.constant dense<0.000000e+00> : vector<56x128xf32>
    %63 = tpu.matmul %60, %62, %cst_63 {dimension_numbers = #tpu.dot_dimension_numbers<[1], [0], [0], [1], [0, 0, 1, 1], [], []>} : vector<56x128xf32>, vector<128x128xf32>, vector<56x128xf32> -> vector<56x128xf32>
    %64 = arith.addf %57, %63 : vector<56x128xf32>
    %c8 = arith.constant 8 : index
    %c0_64 = arith.constant 0 : index
    %c0_65 = arith.constant 0 : index
    %65 = vector.load %arg3[%c8, %c0_64, %c0_65] : memref<9x56x168xf32, #tpu.memory_space<vmem>>, vector<1x56x168xf32>
    %66 = vector.shape_cast %65 : vector<1x56x168xf32> to vector<56x168xf32>
    %cst_66 = arith.constant dense<0.000000e+00> : vector<56x128xf32>
    %67 = tpu.matmul %66, %7, %cst_66 {dimension_numbers = #tpu.dot_dimension_numbers<[1], [0], [0], [1], [0, 0, 1, 1], [], []>} : vector<56x168xf32>, vector<168x128xf32>, vector<56x128xf32> -> vector<56x128xf32>
    %c8_67 = arith.constant 8 : index
    %c0_68 = arith.constant 0 : index
    %c0_69 = arith.constant 0 : index
    %68 = vector.load %arg4[%c8_67, %c0_68, %c0_69] : memref<9x128x128xf32, #tpu.memory_space<vmem>>, vector<1x128x128xf32>
    %69 = vector.shape_cast %68 : vector<1x128x128xf32> to vector<128x128xf32>
    %cst_70 = arith.constant dense<0.000000e+00> : vector<56x128xf32>
    %70 = tpu.matmul %67, %69, %cst_70 {dimension_numbers = #tpu.dot_dimension_numbers<[1], [0], [0], [1], [0, 0, 1, 1], [], []>} : vector<56x128xf32>, vector<128x128xf32>, vector<56x128xf32> -> vector<56x128xf32>
    %71 = arith.addf %64, %70 : vector<56x128xf32>
    %c0_71 = arith.constant 0 : index
    %c0_72 = arith.constant 0 : index
    %72 = vector.load %arg5[%c0_71, %c0_72] : memref<1x128xf32, #tpu.memory_space<vmem>>, vector<1x128xf32>
    %73 = vector.broadcast %72 : vector<1x128xf32> to vector<56x128xf32>
    %74 = arith.addf %71, %73 : vector<56x128xf32>
    %cst_73 = arith.constant 0.000000e+00 : f32
    %75 = vector.broadcast %cst_73 : f32 to vector<56x128xf32>
    %76 = arith.maximumf %74, %75 : vector<56x128xf32>
    %cst_74 = arith.constant 0.000000e+00 : f32
    %77 = vector.broadcast %cst_74 : f32 to vector<24x256xf32>
    %c0_75 = arith.constant 0 : index
    %c0_76 = arith.constant 0 : index
    %c0_77 = arith.constant 0 : index
    %78 = vector.load %arg6[%c0_75, %c0_76, %c0_77] : memref<9x24x56xf32, #tpu.memory_space<vmem>>, vector<1x24x56xf32>
    %79 = vector.shape_cast %78 : vector<1x24x56xf32> to vector<24x56xf32>
    %cst_78 = arith.constant dense<0.000000e+00> : vector<24x128xf32>
    %80 = tpu.matmul %79, %76, %cst_78 {dimension_numbers = #tpu.dot_dimension_numbers<[1], [0], [0], [1], [0, 0, 1, 1], [], []>} : vector<24x56xf32>, vector<56x128xf32>, vector<24x128xf32> -> vector<24x128xf32>
    %c0_79 = arith.constant 0 : index
    %c0_80 = arith.constant 0 : index
    %c0_81 = arith.constant 0 : index
    %81 = vector.load %arg7[%c0_79, %c0_80, %c0_81] : memref<9x128x256xf32, #tpu.memory_space<vmem>>, vector<1x128x256xf32>
    %82 = vector.shape_cast %81 : vector<1x128x256xf32> to vector<128x256xf32>
    %cst_82 = arith.constant dense<0.000000e+00> : vector<24x256xf32>
    %83 = tpu.matmul %80, %82, %cst_82 {dimension_numbers = #tpu.dot_dimension_numbers<[1], [0], [0], [1], [0, 0, 1, 1], [], []>} : vector<24x128xf32>, vector<128x256xf32>, vector<24x256xf32> -> vector<24x256xf32>
    %84 = arith.addf %77, %83 : vector<24x256xf32>
    %c1_83 = arith.constant 1 : index
    %c0_84 = arith.constant 0 : index
    %c0_85 = arith.constant 0 : index
    %85 = vector.load %arg6[%c1_83, %c0_84, %c0_85] : memref<9x24x56xf32, #tpu.memory_space<vmem>>, vector<1x24x56xf32>
    %86 = vector.shape_cast %85 : vector<1x24x56xf32> to vector<24x56xf32>
    %cst_86 = arith.constant dense<0.000000e+00> : vector<24x128xf32>
    %87 = tpu.matmul %86, %76, %cst_86 {dimension_numbers = #tpu.dot_dimension_numbers<[1], [0], [0], [1], [0, 0, 1, 1], [], []>} : vector<24x56xf32>, vector<56x128xf32>, vector<24x128xf32> -> vector<24x128xf32>
    %c1_87 = arith.constant 1 : index
    %c0_88 = arith.constant 0 : index
    %c0_89 = arith.constant 0 : index
    %88 = vector.load %arg7[%c1_87, %c0_88, %c0_89] : memref<9x128x256xf32, #tpu.memory_space<vmem>>, vector<1x128x256xf32>
    %89 = vector.shape_cast %88 : vector<1x128x256xf32> to vector<128x256xf32>
    %cst_90 = arith.constant dense<0.000000e+00> : vector<24x256xf32>
    %90 = tpu.matmul %87, %89, %cst_90 {dimension_numbers = #tpu.dot_dimension_numbers<[1], [0], [0], [1], [0, 0, 1, 1], [], []>} : vector<24x128xf32>, vector<128x256xf32>, vector<24x256xf32> -> vector<24x256xf32>
    %91 = arith.addf %84, %90 : vector<24x256xf32>
    %c2_91 = arith.constant 2 : index
    %c0_92 = arith.constant 0 : index
    %c0_93 = arith.constant 0 : index
    %92 = vector.load %arg6[%c2_91, %c0_92, %c0_93] : memref<9x24x56xf32, #tpu.memory_space<vmem>>, vector<1x24x56xf32>
    %93 = vector.shape_cast %92 : vector<1x24x56xf32> to vector<24x56xf32>
    %cst_94 = arith.constant dense<0.000000e+00> : vector<24x128xf32>
    %94 = tpu.matmul %93, %76, %cst_94 {dimension_numbers = #tpu.dot_dimension_numbers<[1], [0], [0], [1], [0, 0, 1, 1], [], []>} : vector<24x56xf32>, vector<56x128xf32>, vector<24x128xf32> -> vector<24x128xf32>
    %c2_95 = arith.constant 2 : index
    %c0_96 = arith.constant 0 : index
    %c0_97 = arith.constant 0 : index
    %95 = vector.load %arg7[%c2_95, %c0_96, %c0_97] : memref<9x128x256xf32, #tpu.memory_space<vmem>>, vector<1x128x256xf32>
    %96 = vector.shape_cast %95 : vector<1x128x256xf32> to vector<128x256xf32>
    %cst_98 = arith.constant dense<0.000000e+00> : vector<24x256xf32>
    %97 = tpu.matmul %94, %96, %cst_98 {dimension_numbers = #tpu.dot_dimension_numbers<[1], [0], [0], [1], [0, 0, 1, 1], [], []>} : vector<24x128xf32>, vector<128x256xf32>, vector<24x256xf32> -> vector<24x256xf32>
    %98 = arith.addf %91, %97 : vector<24x256xf32>
    %c3_99 = arith.constant 3 : index
    %c0_100 = arith.constant 0 : index
    %c0_101 = arith.constant 0 : index
    %99 = vector.load %arg6[%c3_99, %c0_100, %c0_101] : memref<9x24x56xf32, #tpu.memory_space<vmem>>, vector<1x24x56xf32>
    %100 = vector.shape_cast %99 : vector<1x24x56xf32> to vector<24x56xf32>
    %cst_102 = arith.constant dense<0.000000e+00> : vector<24x128xf32>
    %101 = tpu.matmul %100, %76, %cst_102 {dimension_numbers = #tpu.dot_dimension_numbers<[1], [0], [0], [1], [0, 0, 1, 1], [], []>} : vector<24x56xf32>, vector<56x128xf32>, vector<24x128xf32> -> vector<24x128xf32>
    %c3_103 = arith.constant 3 : index
    %c0_104 = arith.constant 0 : index
    %c0_105 = arith.constant 0 : index
    %102 = vector.load %arg7[%c3_103, %c0_104, %c0_105] : memref<9x128x256xf32, #tpu.memory_space<vmem>>, vector<1x128x256xf32>
    %103 = vector.shape_cast %102 : vector<1x128x256xf32> to vector<128x256xf32>
    %cst_106 = arith.constant dense<0.000000e+00> : vector<24x256xf32>
    %104 = tpu.matmul %101, %103, %cst_106 {dimension_numbers = #tpu.dot_dimension_numbers<[1], [0], [0], [1], [0, 0, 1, 1], [], []>} : vector<24x128xf32>, vector<128x256xf32>, vector<24x256xf32> -> vector<24x256xf32>
    %105 = arith.addf %98, %104 : vector<24x256xf32>
    %c4_107 = arith.constant 4 : index
    %c0_108 = arith.constant 0 : index
    %c0_109 = arith.constant 0 : index
    %106 = vector.load %arg6[%c4_107, %c0_108, %c0_109] : memref<9x24x56xf32, #tpu.memory_space<vmem>>, vector<1x24x56xf32>
    %107 = vector.shape_cast %106 : vector<1x24x56xf32> to vector<24x56xf32>
    %cst_110 = arith.constant dense<0.000000e+00> : vector<24x128xf32>
    %108 = tpu.matmul %107, %76, %cst_110 {dimension_numbers = #tpu.dot_dimension_numbers<[1], [0], [0], [1], [0, 0, 1, 1], [], []>} : vector<24x56xf32>, vector<56x128xf32>, vector<24x128xf32> -> vector<24x128xf32>
    %c4_111 = arith.constant 4 : index
    %c0_112 = arith.constant 0 : index
    %c0_113 = arith.constant 0 : index
    %109 = vector.load %arg7[%c4_111, %c0_112, %c0_113] : memref<9x128x256xf32, #tpu.memory_space<vmem>>, vector<1x128x256xf32>
    %110 = vector.shape_cast %109 : vector<1x128x256xf32> to vector<128x256xf32>
    %cst_114 = arith.constant dense<0.000000e+00> : vector<24x256xf32>
    %111 = tpu.matmul %108, %110, %cst_114 {dimension_numbers = #tpu.dot_dimension_numbers<[1], [0], [0], [1], [0, 0, 1, 1], [], []>} : vector<24x128xf32>, vector<128x256xf32>, vector<24x256xf32> -> vector<24x256xf32>
    %112 = arith.addf %105, %111 : vector<24x256xf32>
    %c5_115 = arith.constant 5 : index
    %c0_116 = arith.constant 0 : index
    %c0_117 = arith.constant 0 : index
    %113 = vector.load %arg6[%c5_115, %c0_116, %c0_117] : memref<9x24x56xf32, #tpu.memory_space<vmem>>, vector<1x24x56xf32>
    %114 = vector.shape_cast %113 : vector<1x24x56xf32> to vector<24x56xf32>
    %cst_118 = arith.constant dense<0.000000e+00> : vector<24x128xf32>
    %115 = tpu.matmul %114, %76, %cst_118 {dimension_numbers = #tpu.dot_dimension_numbers<[1], [0], [0], [1], [0, 0, 1, 1], [], []>} : vector<24x56xf32>, vector<56x128xf32>, vector<24x128xf32> -> vector<24x128xf32>
    %c5_119 = arith.constant 5 : index
    %c0_120 = arith.constant 0 : index
    %c0_121 = arith.constant 0 : index
    %116 = vector.load %arg7[%c5_119, %c0_120, %c0_121] : memref<9x128x256xf32, #tpu.memory_space<vmem>>, vector<1x128x256xf32>
    %117 = vector.shape_cast %116 : vector<1x128x256xf32> to vector<128x256xf32>
    %cst_122 = arith.constant dense<0.000000e+00> : vector<24x256xf32>
    %118 = tpu.matmul %115, %117, %cst_122 {dimension_numbers = #tpu.dot_dimension_numbers<[1], [0], [0], [1], [0, 0, 1, 1], [], []>} : vector<24x128xf32>, vector<128x256xf32>, vector<24x256xf32> -> vector<24x256xf32>
    %119 = arith.addf %112, %118 : vector<24x256xf32>
    %c6_123 = arith.constant 6 : index
    %c0_124 = arith.constant 0 : index
    %c0_125 = arith.constant 0 : index
    %120 = vector.load %arg6[%c6_123, %c0_124, %c0_125] : memref<9x24x56xf32, #tpu.memory_space<vmem>>, vector<1x24x56xf32>
    %121 = vector.shape_cast %120 : vector<1x24x56xf32> to vector<24x56xf32>
    %cst_126 = arith.constant dense<0.000000e+00> : vector<24x128xf32>
    %122 = tpu.matmul %121, %76, %cst_126 {dimension_numbers = #tpu.dot_dimension_numbers<[1], [0], [0], [1], [0, 0, 1, 1], [], []>} : vector<24x56xf32>, vector<56x128xf32>, vector<24x128xf32> -> vector<24x128xf32>
    %c6_127 = arith.constant 6 : index
    %c0_128 = arith.constant 0 : index
    %c0_129 = arith.constant 0 : index
    %123 = vector.load %arg7[%c6_127, %c0_128, %c0_129] : memref<9x128x256xf32, #tpu.memory_space<vmem>>, vector<1x128x256xf32>
    %124 = vector.shape_cast %123 : vector<1x128x256xf32> to vector<128x256xf32>
    %cst_130 = arith.constant dense<0.000000e+00> : vector<24x256xf32>
    %125 = tpu.matmul %122, %124, %cst_130 {dimension_numbers = #tpu.dot_dimension_numbers<[1], [0], [0], [1], [0, 0, 1, 1], [], []>} : vector<24x128xf32>, vector<128x256xf32>, vector<24x256xf32> -> vector<24x256xf32>
    %126 = arith.addf %119, %125 : vector<24x256xf32>
    %c7_131 = arith.constant 7 : index
    %c0_132 = arith.constant 0 : index
    %c0_133 = arith.constant 0 : index
    %127 = vector.load %arg6[%c7_131, %c0_132, %c0_133] : memref<9x24x56xf32, #tpu.memory_space<vmem>>, vector<1x24x56xf32>
    %128 = vector.shape_cast %127 : vector<1x24x56xf32> to vector<24x56xf32>
    %cst_134 = arith.constant dense<0.000000e+00> : vector<24x128xf32>
    %129 = tpu.matmul %128, %76, %cst_134 {dimension_numbers = #tpu.dot_dimension_numbers<[1], [0], [0], [1], [0, 0, 1, 1], [], []>} : vector<24x56xf32>, vector<56x128xf32>, vector<24x128xf32> -> vector<24x128xf32>
    %c7_135 = arith.constant 7 : index
    %c0_136 = arith.constant 0 : index
    %c0_137 = arith.constant 0 : index
    %130 = vector.load %arg7[%c7_135, %c0_136, %c0_137] : memref<9x128x256xf32, #tpu.memory_space<vmem>>, vector<1x128x256xf32>
    %131 = vector.shape_cast %130 : vector<1x128x256xf32> to vector<128x256xf32>
    %cst_138 = arith.constant dense<0.000000e+00> : vector<24x256xf32>
    %132 = tpu.matmul %129, %131, %cst_138 {dimension_numbers = #tpu.dot_dimension_numbers<[1], [0], [0], [1], [0, 0, 1, 1], [], []>} : vector<24x128xf32>, vector<128x256xf32>, vector<24x256xf32> -> vector<24x256xf32>
    %133 = arith.addf %126, %132 : vector<24x256xf32>
    %c8_139 = arith.constant 8 : index
    %c0_140 = arith.constant 0 : index
    %c0_141 = arith.constant 0 : index
    %134 = vector.load %arg6[%c8_139, %c0_140, %c0_141] : memref<9x24x56xf32, #tpu.memory_space<vmem>>, vector<1x24x56xf32>
    %135 = vector.shape_cast %134 : vector<1x24x56xf32> to vector<24x56xf32>
    %cst_142 = arith.constant dense<0.000000e+00> : vector<24x128xf32>
    %136 = tpu.matmul %135, %76, %cst_142 {dimension_numbers = #tpu.dot_dimension_numbers<[1], [0], [0], [1], [0, 0, 1, 1], [], []>} : vector<24x56xf32>, vector<56x128xf32>, vector<24x128xf32> -> vector<24x128xf32>
    %c8_143 = arith.constant 8 : index
    %c0_144 = arith.constant 0 : index
    %c0_145 = arith.constant 0 : index
    %137 = vector.load %arg7[%c8_143, %c0_144, %c0_145] : memref<9x128x256xf32, #tpu.memory_space<vmem>>, vector<1x128x256xf32>
    %138 = vector.shape_cast %137 : vector<1x128x256xf32> to vector<128x256xf32>
    %cst_146 = arith.constant dense<0.000000e+00> : vector<24x256xf32>
    %139 = tpu.matmul %136, %138, %cst_146 {dimension_numbers = #tpu.dot_dimension_numbers<[1], [0], [0], [1], [0, 0, 1, 1], [], []>} : vector<24x128xf32>, vector<128x256xf32>, vector<24x256xf32> -> vector<24x256xf32>
    %140 = arith.addf %133, %139 : vector<24x256xf32>
    %c0_147 = arith.constant 0 : index
    %c0_148 = arith.constant 0 : index
    %141 = vector.load %arg8[%c0_147, %c0_148] : memref<1x256xf32, #tpu.memory_space<vmem>>, vector<1x256xf32>
    %142 = vector.broadcast %141 : vector<1x256xf32> to vector<24x256xf32>
    %143 = arith.addf %140, %142 : vector<24x256xf32>
    %cst_149 = arith.constant 0.000000e+00 : f32
    %144 = vector.broadcast %cst_149 : f32 to vector<24x256xf32>
    %145 = arith.maximumf %143, %144 : vector<24x256xf32>
    %c0_150 = arith.constant 0 : index
    %c0_151 = arith.constant 0 : index
    %146 = vector.load %arg9[%c0_150, %c0_151] : memref<8x24xf32, #tpu.memory_space<vmem>>, vector<8x24xf32>
    %cst_152 = arith.constant dense<0.000000e+00> : vector<8x256xf32>
    %147 = tpu.matmul %146, %145, %cst_152 {dimension_numbers = #tpu.dot_dimension_numbers<[1], [0], [0], [1], [0, 0, 1, 1], [], []>} : vector<8x24xf32>, vector<24x256xf32>, vector<8x256xf32> -> vector<8x256xf32>
    %c0_153 = arith.constant 0 : index
    %c0_154 = arith.constant 0 : index
    %148 = vector.load %arg10[%c0_153, %c0_154] : memref<256x128xf32, #tpu.memory_space<vmem>>, vector<256x128xf32>
    %cst_155 = arith.constant dense<0.000000e+00> : vector<8x128xf32>
    %149 = tpu.matmul %147, %148, %cst_155 {dimension_numbers = #tpu.dot_dimension_numbers<[1], [0], [0], [1], [0, 0, 1, 1], [], []>} : vector<8x256xf32>, vector<256x128xf32>, vector<8x128xf32> -> vector<8x128xf32>
    %c0_156 = arith.constant 0 : index
    %c0_157 = arith.constant 0 : index
    %150 = vector.load %arg11[%c0_156, %c0_157] : memref<1x128xf32, #tpu.memory_space<vmem>>, vector<1x128xf32>
    %151 = vector.broadcast %150 : vector<1x128xf32> to vector<8x128xf32>
    %152 = arith.addf %149, %151 : vector<8x128xf32>
    %c0_158 = arith.constant 0 : index
    %c0_159 = arith.constant 0 : index
    %153 = vector.load %arg12[%c0_158, %c0_159] : memref<8x128xf32, #tpu.memory_space<vmem>>, vector<8x128xf32>
    tpu.vector_store %arg12[%c0_158, %c0_159], %152 {strides = array<i32>} : memref<8x128xf32, #tpu.memory_space<vmem>>, vector<8x128xf32>,
    return
  }
}

</mosaic_0001>

<bundles_post_ra>
// kernel: forward.1
= control target key start
LH: loop header
LB: loop body
LE: loop exit
PB: predicated region body
PF: predicated region fallthrough
CT: control target
= control target key end

     0   :  { %v6498_v0 = vmov 0.0   ;;  %vm109_vm0 = vcmask 195584   ;;  %vm378_vm1 = vcmask 326656   ;;  %vm6499_vm2 = vmmov 0   ;;  %s9929_s1 = inlined_call_operand.vmem [shape: f32[152,128], index: 1, kind: input, shape index: {}]   ;;  %s9930_s0 = inlined_call_operand.vmem [shape: f32[168,152], index: 0, kind: input, shape index: {}]   ;;  %s9931_s3 = inlined_call_operand.vmem [shape: f32[9,56,168], index: 3, kind: input, shape index: {}]   ;;  %s9932_s4 = inlined_call_operand.vmem [shape: f32[9,128,128], index: 4, kind: input, shape index: {}]   ;;  %s9933_s2 = inlined_call_operand.vmem [shape: f32[1,128], index: 2, kind: input, shape index: {}]   ;;  %s9934_s5 = inlined_call_operand.vmem [shape: f32[1,128], index: 5, kind: input, shape index: {}]   ;;  %s9935_s6 = inlined_call_operand.vmem [shape: f32[9,24,56], index: 6, kind: input, shape index: {}]   ;;  %s9936_s7 = inlined_call_operand.vmem [shape: f32[9,128,256], index: 7, kind: input, shape index: {}]   ;;  %s9937_s10 = inlined_call_operand.vmem [shape: f32[256,128], index: 10, kind: input, shape index: {}]   ;;  %s9938_s8 = inlined_call_operand.vmem [shape: f32[1,256], index: 8, kind: input, shape index: {}]   ;;  %s9939_s9 = inlined_call_operand.vmem [shape: f32[8,24], index: 9, kind: input, shape index: {}]   ;;  %s9940_s11 = inlined_call_operand.vmem [shape: f32[1,128], index: 11, kind: input, shape index: {}]   ;;  %s9941_s12 = inlined_call_operand.vmem [shape: f32[8,128], index: 12, kind: output, shape index: {}]  }
   0x1   :  { %173 = vmatprep.subr.mxu0 %v6498_v0  ;;  %v98_v1 = vld [vmem:[%s9929_s1 + $0x78] sm:$0xff]  ;;  %v97_v2 = vld [vmem:[%s9929_s1 + $0x70] sm:$0xff]  ;;  %400 = vmatprep.subr.mxu1 %v6498_v0  ;;  %v96_v3 = vld [vmem:[%s9929_s1 + $0x68] sm:$0xff]  ;;  %vm2713_vm3 = vcmask 457728  }
   0x2   :  { %174 = vmatpush1.msra.mxu0 %v98_v1  ;;  %v95_v4 = vld [vmem:[%s9929_s1 + $0x60] sm:$0xff]  ;;  %v94_v5 = vld [vmem:[%s9929_s1 + $0x58] sm:$0xff]  ;;  %v42_v6 = vld [vmem:[%s9930_s0 + $0x8] sm:$0xff] }
   0x3   :  { %175 = vmatprep.subr.mxu0 %v6498_v0  ;;  %4846 = vmatprep.mubr.msk.f32.mxu0 %vm109_vm0, %v42_v6  ;;  %v93_v7 = vld [vmem:[%s9929_s1 + $0x50] sm:$0xff]  ;;  %v92_v8 = vld [vmem:[%s9929_s1 + $0x48] sm:$0xff]  ;;  %v91_v9 = vld [vmem:[%s9929_s1 + $0x40] sm:$0xff] }
   0x4   :  { %176 = vmatpush1.msra.mxu0 %v97_v2  ;;  %v90_v10 = vld [vmem:[%s9929_s1 + $0x38] sm:$0xff]  ;;  %v89_v11 = vld [vmem:[%s9929_s1 + $0x30] sm:$0xff]  ;;  %v88_v12 = vld [vmem:[%s9929_s1 + $0x28] sm:$0xff] }
   0x5   :  { %177 = vmatprep.subr.mxu0 %v6498_v0  ;;  %v87_v13 = vld [vmem:[%s9929_s1 + $0x20] sm:$0xff]  ;;  %v86_v14 = vld [vmem:[%s9929_s1 + $0x18] sm:$0xff]  ;;  %v85_v15 = vld [vmem:[%s9929_s1 + $0x10] sm:$0xff] }
   0x6   :  { %178 = vmatpush1.msra.mxu0 %v96_v3  ;;  %v84_v16 = vld [vmem:[%s9929_s1 + $0x8] sm:$0xff]  ;;  %v83_v17 = vld [vmem:[%s9929_s1] sm:$0xff]  ;;  %v101_v18 = vld [vmem:[%s9929_s1 + $0x90] sm:$0xff] }
   0x7   :  { %179 = vmatprep.subr.mxu0 %v6498_v0  ;;  %v100_v19 = vld [vmem:[%s9929_s1 + $0x88] sm:$0xff]  ;;  %v99_v20 = vld [vmem:[%s9929_s1 + $0x80] sm:$0xff]  ;;  %v44_v22 = vld [vmem:[%s9930_s0 + $0x18] sm:$0xff] }
   0x8   :  { %180 = vmatpush1.msra.mxu0 %v95_v4  ;;  %v41_v21 = vld [vmem:[%s9930_s0] sm:$0xff]  ;;  %v43_v23 = vld [vmem:[%s9930_s0 + $0x10] sm:$0xff]  ;;  %v46_v24 = vld [vmem:[%s9930_s0 + $0x28] sm:$0xff] }
   0x9   :  { %181 = vmatprep.subr.mxu0 %v6498_v0  ;;  %v45_v25 = vld [vmem:[%s9930_s0 + $0x20] sm:$0xff]  ;;  %v48_v26 = vld [vmem:[%s9930_s0 + $0x38] sm:$0xff]  ;;  %v47_v27 = vld [vmem:[%s9930_s0 + $0x30] sm:$0xff] }
   0xa   :  { %182 = vmatpush1.msra.mxu0 %v94_v5  ;;  %v50_v28 = vld [vmem:[%s9930_s0 + $0x48] sm:$0xff]  ;;  %v49_v29 = vld [vmem:[%s9930_s0 + $0x40] sm:$0xff]  ;;  %v52_v30 = vld [vmem:[%s9930_s0 + $0x58] sm:$0xff] }
   0xb   :  { %183 = vmatprep.subr.mxu0 %v6498_v0  ;;  %v51_v31 = vld [vmem:[%s9930_s0 + $0x50] sm:$0xff]  ;;  %v54_v32 = vld [vmem:[%s9930_s0 + $0x68] sm:$0xff]  ;;  %v53_v33 = vld [vmem:[%s9930_s0 + $0x60] sm:$0xff] }
   0xc   :  { %184 = vmatpush1.msra.mxu0 %v93_v7  ;;  %v56_v34 = vld [vmem:[%s9930_s0 + $0x78] sm:$0xff]  ;;  %v55_v35 = vld [vmem:[%s9930_s0 + $0x70] sm:$0xff]  ;;  %v58_v36 = vld [vmem:[%s9930_s0 + $0x88] sm:$0xff] }
   0xd   :  { %185 = vmatprep.subr.mxu0 %v6498_v0  ;;  %v57_v37 = vld [vmem:[%s9930_s0 + $0x80] sm:$0xff]  ;;  %v60_v38 = vld [vmem:[%s9930_s0 + $0x98] sm:$0xff]  ;;  %v59_v39 = vld [vmem:[%s9930_s0 + $0x90] sm:$0xff] }
   0xe   :  { %186 = vmatpush1.msra.mxu0 %v92_v8  ;;  %v62_v40 = vld [vmem:[%s9930_s0 + $0xa8] sm:$0xff]  ;;  %v61_v41 = vld [vmem:[%s9930_s0 + $0xa0] sm:$0xff]  ;;  %v64_v42 = vld [vmem:[%s9930_s0 + $0xb8] sm:$0xff] }
   0xf   :  { %187 = vmatprep.subr.mxu0 %v6498_v0  ;;  %v63_v43 = vld [vmem:[%s9930_s0 + $0xb0] sm:$0xff]  ;;  %v66_v44 = vld [vmem:[%s9930_s0 + $0xc8] sm:$0xff]  ;;  %v65_v45 = vld [vmem:[%s9930_s0 + $0xc0] sm:$0xff] }
  0x10   :  { %188 = vmatpush1.msra.mxu0 %v91_v9  ;;  %v68_v46 = vld [vmem:[%s9930_s0 + $0xd8] sm:$0xff]  ;;  %v67_v47 = vld [vmem:[%s9930_s0 + $0xd0] sm:$0xff]  ;;  %v70_v48 = vld [vmem:[%s9930_s0 + $0xe8] sm:$0xff] }
  0x11   :  { %189 = vmatprep.subr.mxu0 %v6498_v0  ;;  %v69_v49 = vld [vmem:[%s9930_s0 + $0xe0] sm:$0xff]  ;;  %v72_v50 = vld [vmem:[%s9930_s0 + $0xf8] sm:$0xff]  ;;  %v71_v51 = vld [vmem:[%s9930_s0 + $0xf0] sm:$0xff] }
  0x12   :  { %190 = vmatpush1.msra.mxu0 %v90_v10  ;;  %v74_v52 = vld [vmem:[%s9930_s0 + $0x108] sm:$0xff]  ;;  %v73_v53 = vld [vmem:[%s9930_s0 + $0x100] sm:$0xff]  ;;  %v76_v54 = vld [vmem:[%s9930_s0 + $0x118] sm:$0xff] }
  0x13   :  { %191 = vmatprep.subr.mxu0 %v6498_v0  ;;  %v75_v55 = vld [vmem:[%s9930_s0 + $0x110] sm:$0xff]  ;;  %v78_v56 = vld [vmem:[%s9930_s0 + $0x128] sm:$0xff]  ;;  %v77_v57 = vld [vmem:[%s9930_s0 + $0x120] sm:$0xff] }
  0x14   :  { %192 = vmatpush1.msra.mxu0 %v89_v11  ;;  %v80_v58 = vld [vmem:[%s9930_s0 + $0x138] sm:$0xff]  ;;  %v79_v59 = vld [vmem:[%s9930_s0 + $0x130] sm:$0xff]  ;;  %v82_v60 = vld [vmem:[%s9930_s0 + $0x148] sm:$0xff] }
  0x15   :  { %193 = vmatprep.subr.mxu0 %v6498_v0  ;;  %v81_v61 = vld [vmem:[%s9930_s0 + $0x140] sm:$0xff]  ;;  %v365_v62 = vld [vmem:[%s9931_s3 + $0x8] sm:$0xff] }
  0x16   :  { %194 = vmatpush1.msra.mxu0 %v88_v12  ;;  %4867 = vmatprep.mubr.msk.f32.mxu1 %vm378_vm1, %v365_v62 }
  0x17   :  { %195 = vmatprep.subr.mxu0 %v6498_v0 }
  0x18   :  { %196 = vmatpush1.msra.mxu0 %v87_v13 }
  0x19   :  { %197 = vmatprep.subr.mxu0 %v6498_v0 }
  0x1a   :  { %198 = vmatpush1.msra.mxu0 %v86_v14 }
  0x1b   :  { %199 = vmatprep.subr.mxu0 %v6498_v0 }
  0x1c   :  { %200 = vmatpush1.msra.mxu0 %v85_v15 }
  0x1d   :  { %201 = vmatprep.subr.mxu0 %v6498_v0 }
  0x1e   :  { %202 = vmatpush1.msra.mxu0 %v84_v16 }
  0x1f   :  { %203 = vmatprep.subr.mxu0 %v6498_v0 }
  0x20   :  { %204 = vmatpush1.msra.mxu0 %v83_v17 }
  0x21   :  { %231 = vmatprep.subr.mxu0 %v6498_v0 }
  0x22   :  { %232 = vmatpush2.msra.mxu0 %v101_v18 }
  0x23   :  { %233 = vmatprep.subr.mxu0 %v6498_v0 }
  0x24   :  { %234 = vmatpush2.msra.mxu0 %v100_v19 }
  0x25   :  { %235 = vmatprep.subr.mxu0 %v6498_v0 }
  0x26   :  { %236 = vmatpush2.msra.mxu0 %v99_v20 }
  0x27   :  { %238 = vmatmul.mubr.f32.vlgmr.msra.gmra.mxu0 %v41_v21  ;;  %5865 = vmatprep.subr.mxu0 %v6498_v0 }
  0x28   :  { %4847 = vmatprep.mubr.msk.f32.mxu0 %vm109_vm0, %v44_v22 }
  0x2b   :  { %243 = vmatmul.mubr.f32.gmra.mxu0 %v43_v23  ;;  %v515_v23 = vld [vmem:[%s9932_s4 + $0x78] sm:$0xff] }
  0x2c   :  { %4848 = vmatprep.mubr.msk.f32.mxu0 %vm109_vm0, %v46_v24  ;;  %v514_v24 = vld [vmem:[%s9932_s4 + $0x70] sm:$0xff]  ;;  %5866 = vmatpush3.msra.mxu0 %v515_v23 }
  0x2d   :  { %5867 = vmatprep.subr.mxu0 %v6498_v0 }
  0x2e   :  { %5868 = vmatpush3.msra.mxu0 %v514_v24 }
  0x2f   :  { %248 = vmatmul.mubr.f32.gmra.mxu0 %v45_v25  ;;  %5869 = vmatprep.subr.mxu0 %v6498_v0 }
  0x30   :  { %4849 = vmatprep.mubr.msk.f32.mxu0 %vm109_vm0, %v48_v26  ;;  %v513_v26 = vld [vmem:[%s9932_s4 + $0x68] sm:$0xff] }
  0x31   :  { %5870 = vmatpush3.msra.mxu0 %v513_v26 }
  0x32   :  { %5871 = vmatprep.subr.mxu0 %v6498_v0 }
  0x33   :  { %253 = vmatmul.mubr.f32.gmra.mxu0 %v47_v27 }
  0x34   :  { %4850 = vmatprep.mubr.msk.f32.mxu0 %vm109_vm0, %v50_v28  ;;  %v512_v28 = vld [vmem:[%s9932_s4 + $0x60] sm:$0xff] }
  0x35   :  { %5872 = vmatpush3.msra.mxu0 %v512_v28 }
  0x36   :  { %5873 = vmatprep.subr.mxu0 %v6498_v0 }
  0x37   :  { %258 = vmatmul.mubr.f32.gmra.mxu0 %v49_v29 }
  0x38   :  { %4851 = vmatprep.mubr.msk.f32.mxu0 %vm109_vm0, %v52_v30  ;;  %v511_v30 = vld [vmem:[%s9932_s4 + $0x58] sm:$0xff] }
  0x39   :  { %5874 = vmatpush3.msra.mxu0 %v511_v30 }
  0x3a   :  { %5875 = vmatprep.subr.mxu0 %v6498_v0 }
  0x3b   :  { %263 = vmatmul.mubr.f32.gmra.mxu0 %v51_v31 }
  0x3c   :  { %4852 = vmatprep.mubr.msk.f32.mxu0 %vm109_vm0, %v54_v32  ;;  %v510_v32 = vld [vmem:[%s9932_s4 + $0x50] sm:$0xff] }
  0x3d   :  { %5876 = vmatpush3.msra.mxu0 %v510_v32 }
  0x3e   :  { %5877 = vmatprep.subr.mxu0 %v6498_v0 }
  0x3f   :  { %268 = vmatmul.mubr.f32.gmra.mxu0 %v53_v33 }
  0x40   :  { %4853 = vmatprep.mubr.msk.f32.mxu0 %vm109_vm0, %v56_v34  ;;  %v509_v34 = vld [vmem:[%s9932_s4 + $0x48] sm:$0xff] }
  0x41   :  { %5878 = vmatpush3.msra.mxu0 %v509_v34 }
  0x42   :  { %5879 = vmatprep.subr.mxu0 %v6498_v0 }
  0x43   :  { %273 = vmatmul.mubr.f32.gmra.mxu0 %v55_v35 }
  0x44   :  { %4854 = vmatprep.mubr.msk.f32.mxu0 %vm109_vm0, %v58_v36  ;;  %v508_v36 = vld [vmem:[%s9932_s4 + $0x40] sm:$0xff] }
  0x45   :  { %5880 = vmatpush3.msra.mxu0 %v508_v36 }
  0x46   :  { %5881 = vmatprep.subr.mxu0 %v6498_v0 }
  0x47   :  { %278 = vmatmul.mubr.f32.gmra.mxu0 %v57_v37 }
  0x48   :  { %4855 = vmatprep.mubr.msk.f32.mxu0 %vm109_vm0, %v60_v38  ;;  %v507_v38 = vld [vmem:[%s9932_s4 + $0x38] sm:$0xff] }
  0x49   :  { %5882 = vmatpush3.msra.mxu0 %v507_v38  ;;  %v367_v38 = vld [vmem:[%s9931_s3 + $0x18] sm:$0xff] }
  0x4a   :  { %5883 = vmatprep.subr.mxu0 %v6498_v0 }
  0x4b   :  { %283 = vmatmul.mubr.f32.gmra.mxu0 %v59_v39  ;;  %v6853_v39 = vld [vmem:[%s9933_s2] ss:$0 sm:$0xff] }
  0x4c   :  { %4856 = vmatprep.mubr.msk.f32.mxu0 %vm109_vm0, %v62_v40 }
  0x4f   :  { %288 = vmatmul.mubr.f32.gmra.mxu0 %v61_v41 }
  0x50   :  { %4857 = vmatprep.mubr.msk.f32.mxu0 %vm109_vm0, %v64_v42 }
  0x53   :  { %293 = vmatmul.mubr.f32.gmra.mxu0 %v63_v43  ;;  %v506_v43 = vld [vmem:[%s9932_s4 + $0x30] sm:$0xff] }
  0x54   :  { %4858 = vmatprep.mubr.msk.f32.mxu0 %vm109_vm0, %v66_v44  ;;  %5884 = vmatpush3.msra.mxu0 %v506_v43  ;;  %v370_v43 = vld [vmem:[%s9931_s3 + $0x30] sm:$0xff] }
  0x55   :  { %5885 = vmatprep.subr.mxu0 %v6498_v0 }
  0x57   :  { %298 = vmatmul.mubr.f32.gmra.mxu0 %v65_v45 }
  0x58   :  { %4859 = vmatprep.mubr.msk.f32.mxu0 %vm109_vm0, %v68_v46 }
  0x5b   :  { %303 = vmatmul.mubr.f32.gmra.mxu0 %v67_v47  ;;  %v505_v47 = vld [vmem:[%s9932_s4 + $0x28] sm:$0xff] }
  0x5c   :  { %4860 = vmatprep.mubr.msk.f32.mxu0 %vm109_vm0, %v70_v48  ;;  %5886 = vmatpush3.msra.mxu0 %v505_v47  ;;  %v375_v47 = vld [vmem:[%s9931_s3 + $0x58] sm:$0xff] }
  0x5d   :  { %5887 = vmatprep.subr.mxu0 %v6498_v0 }
  0x5f   :  { %308 = vmatmul.mubr.f32.gmra.mxu0 %v69_v49 }
  0x60   :  { %4861 = vmatprep.mubr.msk.f32.mxu0 %vm109_vm0, %v72_v50 }
  0x63   :  { %313 = vmatmul.mubr.f32.gmra.mxu0 %v71_v51  ;;  %v504_v51 = vld [vmem:[%s9932_s4 + $0x20] sm:$0xff] }
  0x64   :  { %4862 = vmatprep.mubr.msk.f32.mxu0 %vm109_vm0, %v74_v52  ;;  %5888 = vmatpush3.msra.mxu0 %v504_v51  ;;  %v376_v51 = vld [vmem:[%s9931_s3 + $0x60] sm:$0xff] }
  0x65   :  { %5889 = vmatprep.subr.mxu0 %v6498_v0 }
  0x67   :  { %318 = vmatmul.mubr.f32.gmra.mxu0 %v73_v53 }
  0x68   :  { %4863 = vmatprep.mubr.msk.f32.mxu0 %vm109_vm0, %v76_v54 }
  0x6b   :  { %323 = vmatmul.mubr.f32.gmra.mxu0 %v75_v55  ;;  %v503_v55 = vld [vmem:[%s9932_s4 + $0x18] sm:$0xff] }
  0x6c   :  { %4864 = vmatprep.mubr.msk.f32.mxu0 %vm109_vm0, %v78_v56  ;;  %5890 = vmatpush3.msra.mxu0 %v503_v55  ;;  %v4877_v55 = vld [vmem:[%s9931_s3 + $0x88] sm:$0xff] }
  0x6d   :  { %5891 = vmatprep.subr.mxu0 %v6498_v0 }
  0x6f   :  { %328 = vmatmul.mubr.f32.gmra.mxu0 %v77_v57 }
  0x70   :  { %4865 = vmatprep.mubr.msk.f32.mxu0 %vm109_vm0, %v80_v58 }
  0x73   :  { %333 = vmatmul.mubr.f32.gmra.mxu0 %v79_v59  ;;  %v502_v59 = vld [vmem:[%s9932_s4 + $0x10] sm:$0xff] }
  0x74   :  { %4866 = vmatprep.mubr.msk.f32.mxu0 %vm109_vm0, %v82_v60  ;;  %5892 = vmatpush3.msra.mxu0 %v502_v59  ;;  %v4878_v59 = vld [vmem:[%s9931_s3 + $0x90] sm:$0xff] }
  0x75   :  { %5893 = vmatprep.subr.mxu0 %v6498_v0 }
  0x77   :  { %338 = vmatmul.mubr.f32.gmra.mxu0 %v81_v61 }
  0x78   :  { %5897 = vmatprep.mubr.msk.f32.mxu0 %vm6499_vm2, %v6498_v0 }
  0xe7   :  { %v6794_v63 = vpop.f32.mrf.mxu0 }
  0xe9   :  { %v241_v1 = vpop.f32.mrf.mxu0 }
  0xea   :  { %v501_v1 = vld [vmem:[%s9932_s4 + $0x8] sm:$0xff] }
  0xeb   :  { %v6796_v2 = vpop.f32.mrf.mxu0  ;;  %5894 = vmatpush3.msra.mxu0 %v501_v1  ;;  %v4883_v1 = vld [vmem:[%s9931_s3 + $0xb8] sm:$0xff] }
  0xec   :  { %5895 = vmatprep.subr.mxu0 %v6498_v0 }
  0xed   :  { %v246_v3 = vpop.f32.mrf.mxu0 }
  0xef   :  { %v6798_v4 = vpop.f32.mrf.mxu0 }
  0xf0   :  { %v250_v24 = vadd.f32 %v6853_v39, %v6798_v4 }
  0xf1   :  { %v251_v5 = vpop.f32.mrf.mxu0 }
  0xf3   :  { %v6800_v6 = vpop.f32.mrf.mxu0 }
  0xf5   :  { %v256_v7 = vpop.f32.mrf.mxu0 }
  0xf7   :  { %v6802_v8 = vpop.f32.mrf.mxu0 }
  0xf9   :  { %v261_v9 = vpop.f32.mrf.mxu0 }
  0xfb   :  { %v6804_v10 = vpop.f32.mrf.mxu0 }
  0xfd   :  { %v266_v11 = vpop.f32.mrf.mxu0 }
  0xff   :  { %v6806_v12 = vpop.f32.mrf.mxu0 }
 0x101   :  { %v271_v13 = vpop.f32.mrf.mxu0 }
 0x103   :  { %v6808_v14 = vpop.f32.mrf.mxu0 }
 0x104   :  { %v275_v11 = vadd.f32 %v6853_v39, %v6808_v14  ;;  %v265_v14 = vadd.f32 %v6853_v39, %v6804_v10  ;;  %v255_v10 = vadd.f32 %v6853_v39, %v6800_v6  ;;  %v240_v6 = vadd.f32 %v6853_v39, %v6794_v63 }
 0x105   :  { %v276_v15 = vpop.f32.mrf.mxu0 }
 0x106   :  { %v6944_v23 = vmax.f32 %v265_v14, 0.0  ;;  %v6956_v26 = vmax.f32 %v255_v10, 0.0  ;;  %v4909_v14 = vld [vmem:[%s9932_s4 + $0xf0] sm:$0xff] }
 0x107   :  { %v6810_v16 = vpop.f32.mrf.mxu0  ;;  %v4905_v10 = vld [vmem:[%s9932_s4 + $0xd0] sm:$0xff] }
 0x108   :  { %v280_v5 = vadd.f32 %v6853_v39, %v6810_v16  ;;  %v270_v16 = vadd.f32 %v6853_v39, %v6806_v12  ;;  %v260_v12 = vadd.f32 %v6853_v39, %v6802_v8 }
 0x109   :  { %v281_v17 = vpop.f32.mrf.mxu0 }
 0x10a   :  { %v6926_v17 = vmax.f32 %v280_v5, 0.0  ;;  %v6950_v8 = vmax.f32 %v260_v12, 0.0  ;;  %v4885_v5 = vld [vmem:[%s9931_s3 + $0xc8] sm:$0xff]  ;;  %v4907_v12 = vld [vmem:[%s9932_s4 + $0xe0] sm:$0xff] }
 0x10b   :  { %v6812_v18 = vpop.f32.mrf.mxu0 }
 0x10c   :  { %v285_v61 = vadd.f32 %v6853_v39, %v6812_v18 }
 0x10d   :  { %v286_v19 = vpop.f32.mrf.mxu0 }
 0x10e   :  { %v6919_v13 = vmax.f32 %v285_v61, 0.0  ;;  %v6932_v19 = vmax.f32 %v275_v11, 0.0  ;;  %v4880_v61 = vld [vmem:[%s9931_s3 + $0xa0] sm:$0xff]  ;;  %v4887_v11 = vld [vmem:[%s9931_s3 + $0xd8] sm:$0xff] }
 0x10f   :  { %v6814_v20 = vpop.f32.mrf.mxu0 }
 0x110   :  { %v290_v57 = vadd.f32 %v6853_v39, %v6814_v20 }
 0x111   :  { %v291_v21 = vpop.f32.mrf.mxu0 }
 0x112   :  { %v6912_v7 = vmax.f32 %v290_v57, 0.0  ;;  %v6938_v21 = vmax.f32 %v270_v16, 0.0  ;;  %v4879_v57 = vld [vmem:[%s9931_s3 + $0x98] sm:$0xff]  ;;  %v500_v16 = vld [vmem:[%s9932_s4] sm:$0xff] }
 0x113   :  { %v294_v22 = vpop.f32.mrf.mxu0  ;;  %5896 = vmatpush3.msra.mxu0 %v500_v16 }
 0x114   :  { %v295_v53 = vadd.f32 %v6853_v39, %v294_v22  ;;  %5918 = vmatprep.subr.mxu0 %v6498_v0 }
 0x115   :  { %v296_v25 = vpop.f32.mrf.mxu0 }
 0x116   :  { %v6902_v62 = vmax.f32 %v295_v53, 0.0  ;;  %v245_v25 = vadd.f32 %v6853_v39, %v6796_v2  ;;  %v6971_v2 = vmax.f32 %v240_v6, 0.0  ;;  %v4874_v53 = vld [vmem:[%s9931_s3 + $0x70] sm:$0xff]  ;;  %v4902_v6 = vld [vmem:[%s9932_s4 + $0xb8] sm:$0xff] }
 0x117   :  { %v299_v27 = vpop.f32.mrf.mxu0 }
 0x118   :  { %v300_v49 = vadd.f32 %v6853_v39, %v299_v27  ;;  %v6962_v27 = vmax.f32 %v250_v24, 0.0  ;;  %v6967_v28 = vmax.f32 %v245_v25, 0.0  ;;  %v4904_v24 = vld [vmem:[%s9932_s4 + $0xc8] sm:$0xff]  ;;  %v4903_v25 = vld [vmem:[%s9932_s4 + $0xc0] sm:$0xff] }
 0x119   :  { %v301_v29 = vpop.f32.mrf.mxu0 }
 0x11a   :  { %v6892_v58 = vmax.f32 %v300_v49, 0.0  ;;  %v377_v49 = vld [vmem:[%s9931_s3 + $0x68] sm:$0xff] }
 0x11b   :  { %v304_v31 = vpop.f32.mrf.mxu0 }
 0x11c   :  { %v305_v45 = vadd.f32 %v6853_v39, %v304_v31 }
 0x11d   :  { %v306_v33 = vpop.f32.mrf.mxu0 }
 0x11e   :  { %v6880_v54 = vmax.f32 %v305_v45, 0.0  ;;  %v372_v45 = vld [vmem:[%s9931_s3 + $0x40] sm:$0xff] }
 0x11f   :  { %v309_v35 = vpop.f32.mrf.mxu0 }
 0x120   :  { %v310_v41 = vadd.f32 %v6853_v39, %v309_v35 }
 0x121   :  { %v311_v37 = vpop.f32.mrf.mxu0 }
 0x122   :  { %v6871_v50 = vmax.f32 %v310_v41, 0.0  ;;  %v364_v37 = vld [vmem:[%s9931_s3] sm:$0xff] }
 0x123   :  { %v314_v40 = vpop.f32.mrf.mxu0  ;;  %v368_v41 = vld [vmem:[%s9931_s3 + $0x20] sm:$0xff] }
 0x124   :  { %v315_v42 = vadd.f32 %v6853_v39, %v314_v40  ;;  %v369_v40 = vld [vmem:[%s9931_s3 + $0x28] sm:$0xff] }
 0x125   :  { %v316_v44 = vpop.f32.mrf.mxu0 }
 0x126   :  { %v6862_v46 = vmax.f32 %v315_v42, 0.0  ;;  %v371_v42 = vld [vmem:[%s9931_s3 + $0x38] sm:$0xff]  ;;  %v373_v44 = vld [vmem:[%s9931_s3 + $0x48] sm:$0xff] }
 0x127   :  { %v6868_v48 = vpop.f32.mrf.mxu0 }
 0x128   :  { %401 = vmatpush1.msra.mxu1 %v6862_v46  ;;  %v320_v33 = vadd.f32 %v6853_v39, %v6868_v48  ;;  %v374_v48 = vld [vmem:[%s9931_s3 + $0x50] sm:$0xff] }
 0x129   :  { %402 = vmatprep.subr.mxu1 %v6498_v0  ;;  %v321_v52 = vpop.f32.mrf.mxu0 }
 0x12a   :  { %403 = vmatpush1.msra.mxu1 %v6871_v50  ;;  %v6997_v36 = vmax.f32 %v320_v33, 0.0  ;;  %v4875_v52 = vld [vmem:[%s9931_s3 + $0x78] sm:$0xff]  ;;  %v4897_v33 = vld [vmem:[%s9932_s4 + $0x90] sm:$0xff] }
 0x12b   :  { %404 = vmatprep.subr.mxu1 %v6498_v0  ;;  %v6888_v56 = vpop.f32.mrf.mxu0 }
 0x12c   :  { %405 = vmatpush1.msra.mxu1 %v6880_v54  ;;  %v325_v31 = vadd.f32 %v6853_v39, %v6888_v56  ;;  %v4876_v56 = vld [vmem:[%s9931_s3 + $0x80] sm:$0xff] }
 0x12d   :  { %406 = vmatprep.subr.mxu1 %v6498_v0  ;;  %v326_v60 = vpop.f32.mrf.mxu0 }
 0x12e   :  { %407 = vmatpush1.msra.mxu1 %v6892_v58  ;;  %v6993_v35 = vmax.f32 %v325_v31, 0.0  ;;  %v4881_v60 = vld [vmem:[%s9931_s3 + $0xa8] sm:$0xff]  ;;  %v4898_v31 = vld [vmem:[%s9932_s4 + $0x98] sm:$0xff] }
 0x12f   :  { %408 = vmatprep.subr.mxu1 %v6498_v0  ;;  %v329_v3 = vpop.f32.mrf.mxu0 }
 0x130   :  { %409 = vmatpush1.msra.mxu1 %v6902_v62  ;;  %v330_v63 = vadd.f32 %v6853_v39, %v329_v3  ;;  %v4882_v3 = vld [vmem:[%s9931_s3 + $0xb0] sm:$0xff] }
 0x131   :  { %410 = vmatprep.subr.mxu1 %v6498_v0  ;;  %v331_v9 = vpop.f32.mrf.mxu0 }
 0x132   :  { %411 = vmatpush1.msra.mxu1 %v6912_v7  ;;  %v6989_v34 = vmax.f32 %v330_v63, 0.0  ;;  %v4884_v9 = vld [vmem:[%s9931_s3 + $0xc0] sm:$0xff] }
 0x133   :  { %412 = vmatprep.subr.mxu1 %v6498_v0  ;;  %v334_v15 = vpop.f32.mrf.mxu0  ;;  %v4899_v63 = vld [vmem:[%s9932_s4 + $0xa0] sm:$0xff] }
 0x134   :  { %413 = vmatpush1.msra.mxu1 %v6919_v13  ;;  %v335_v29 = vadd.f32 %v6853_v39, %v334_v15  ;;  %v4886_v15 = vld [vmem:[%s9931_s3 + $0xd0] sm:$0xff] }
 0x135   :  { %414 = vmatprep.subr.mxu1 %v6498_v0  ;;  %v336_v18 = vpop.f32.mrf.mxu0 }
 0x136   :  { %415 = vmatpush1.msra.mxu1 %v6926_v17  ;;  %v6983_v32 = vmax.f32 %v335_v29, 0.0  ;;  %v4910_v18 = vld [vmem:[%s9932_s4 + $0xf8] sm:$0xff]  ;;  %v4900_v29 = vld [vmem:[%s9932_s4 + $0xa8] sm:$0xff] }
 0x137   :  { %416 = vmatprep.subr.mxu1 %v6498_v0  ;;  %v339_v20 = vpop.f32.mrf.mxu0 }
 0x138   :  { %417 = vmatpush1.msra.mxu1 %v6932_v19  ;;  %v340_v4 = vadd.f32 %v6853_v39, %v339_v20  ;;  %v366_v39 = vld [vmem:[%s9931_s3 + $0x10] sm:$0xff]  ;;  %v4908_v20 = vld [vmem:[%s9932_s4 + $0xe8] sm:$0xff] }
 0x139   :  { %418 = vmatprep.subr.mxu1 %v6498_v0  ;;  %v341_v22 = vpop.f32.mrf.mxu0 }
 0x13a   :  { %419 = vmatpush1.msra.mxu1 %v6938_v21  ;;  %v6974_v30 = vmax.f32 %v340_v4, 0.0  ;;  %v4906_v22 = vld [vmem:[%s9932_s4 + $0xd8] sm:$0xff]  ;;  %v4901_v4 = vld [vmem:[%s9932_s4 + $0xb0] sm:$0xff] }
 0x13b   :  { %420 = vmatprep.subr.mxu1 %v6498_v0 }
 0x13c   :  { %421 = vmatpush1.msra.mxu1 %v6944_v23 }
 0x13d   :  { %422 = vmatprep.subr.mxu1 %v6498_v0 }
 0x13e   :  { %423 = vmatpush1.msra.mxu1 %v6950_v8 }
 0x13f   :  { %424 = vmatprep.subr.mxu1 %v6498_v0 }
 0x140   :  { %425 = vmatpush1.msra.mxu1 %v6956_v26 }
 0x141   :  { %426 = vmatprep.subr.mxu1 %v6498_v0 }
 0x142   :  { %427 = vmatpush1.msra.mxu1 %v6962_v27 }
 0x143   :  { %428 = vmatprep.subr.mxu1 %v6498_v0 }
 0x144   :  { %429 = vmatpush1.msra.mxu1 %v6967_v28 }
 0x145   :  { %430 = vmatprep.subr.mxu1 %v6498_v0 }
 0x146   :  { %431 = vmatpush1.msra.mxu1 %v6971_v2 }
 0x147   :  { %454 = vmatprep.subr.mxu1 %v6498_v0 }
 0x148   :  { %455 = vmatpush2.msra.mxu1 %v6974_v30 }
 0x149   :  { %456 = vmatprep.subr.mxu1 %v6498_v0 }
 0x14a   :  { %457 = vmatpush2.msra.mxu1 %v6983_v32 }
 0x14b   :  { %458 = vmatprep.subr.mxu1 %v6498_v0 }
 0x14c   :  { %459 = vmatpush2.msra.mxu1 %v6989_v34 }
 0x14d   :  { %460 = vmatprep.subr.mxu1 %v6498_v0 }
 0x14e   :  { %461 = vmatpush2.msra.mxu1 %v6993_v35 }
 0x14f   :  { %462 = vmatprep.subr.mxu1 %v6498_v0 }
 0x150   :  { %463 = vmatpush2.msra.mxu1 %v6997_v36 }
 0x151   :  { %465 = vmatmul.mubr.f32.vlgmr.msra.gmra.mxu1 %v364_v37  ;;  %552 = vmatprep.subr.mxu1 %v6498_v0  ;;  %v4896_v37 = vld [vmem:[%s9932_s4 + $0x88] sm:$0xff] }
 0x152   :  { %553 = vmatpush1.msra.mxu1 %v6862_v46  ;;  %4868 = vmatprep.mubr.msk.f32.mxu1 %vm378_vm1, %v367_v38  ;;  %v4895_v38 = vld [vmem:[%s9932_s4 + $0x80] sm:$0xff] }
 0x153   :  { %554 = vmatprep.subr.mxu1 %v6498_v0 }
 0x154   :  { %555 = vmatpush1.msra.mxu1 %v6871_v50 }
 0x155   :  { %556 = vmatprep.subr.mxu1 %v6498_v0  ;;  %470 = vmatmul.mubr.f32.gmra.mxu1 %v366_v39 }
 0x156   :  { %557 = vmatpush1.msra.mxu1 %v6880_v54  ;;  %4869 = vmatprep.mubr.msk.f32.mxu1 %vm378_vm1, %v369_v40 }
 0x157   :  { %558 = vmatprep.subr.mxu1 %v6498_v0 }
 0x158   :  { %559 = vmatpush1.msra.mxu1 %v6892_v58 }
 0x159   :  { %560 = vmatprep.subr.mxu1 %v6498_v0  ;;  %475 = vmatmul.mubr.f32.gmra.mxu1 %v368_v41 }
 0x15a   :  { %561 = vmatpush1.msra.mxu1 %v6902_v62  ;;  %4870 = vmatprep.mubr.msk.f32.mxu1 %vm378_vm1, %v371_v42 }
 0x15b   :  { %562 = vmatprep.subr.mxu1 %v6498_v0 }
 0x15c   :  { %563 = vmatpush1.msra.mxu1 %v6912_v7 }
 0x15d   :  { %564 = vmatprep.subr.mxu1 %v6498_v0  ;;  %480 = vmatmul.mubr.f32.gmra.mxu1 %v370_v43 }
 0x15e   :  { %565 = vmatpush1.msra.mxu1 %v6919_v13  ;;  %4871 = vmatprep.mubr.msk.f32.mxu1 %vm378_vm1, %v373_v44 }
 0x15f   :  { %566 = vmatprep.subr.mxu1 %v6498_v0 }
 0x160   :  { %567 = vmatpush1.msra.mxu1 %v6926_v17 }
 0x161   :  { %568 = vmatprep.subr.mxu1 %v6498_v0  ;;  %485 = vmatmul.mubr.f32.gmra.mxu1 %v372_v45 }
 0x162   :  { %569 = vmatpush1.msra.mxu1 %v6932_v19  ;;  %4872 = vmatprep.mubr.msk.f32.mxu1 %vm378_vm1, %v375_v47 }
 0x163   :  { %570 = vmatprep.subr.mxu1 %v6498_v0 }
 0x164   :  { %571 = vmatpush1.msra.mxu1 %v6938_v21 }
 0x165   :  { %572 = vmatprep.subr.mxu1 %v6498_v0  ;;  %490 = vmatmul.mubr.f32.gmra.mxu1 %v374_v48 }
 0x166   :  { %573 = vmatpush1.msra.mxu1 %v6944_v23  ;;  %4873 = vmatprep.mubr.msk.f32.mxu1 %vm378_vm1, %v377_v49 }
 0x167   :  { %574 = vmatprep.subr.mxu1 %v6498_v0 }
 0x168   :  { %575 = vmatpush1.msra.mxu1 %v6950_v8 }
 0x169   :  { %576 = vmatprep.subr.mxu1 %v6498_v0  ;;  %495 = vmatmul.mubr.f32.gmra.mxu1 %v376_v51 }
 0x16a   :  { %577 = vmatpush1.msra.mxu1 %v6956_v26  ;;  %4888 = vmatprep.mubr.msk.f32.mxu1 %vm378_vm1, %v4875_v52 }
 0x16b   :  { %578 = vmatprep.subr.mxu1 %v6498_v0 }
 0x16c   :  { %579 = vmatpush1.msra.mxu1 %v6962_v27 }
 0x16d   :  { %580 = vmatprep.subr.mxu1 %v6498_v0 }
 0x16e   :  { %581 = vmatpush1.msra.mxu1 %v6967_v28 }
 0x16f   :  { %582 = vmatprep.subr.mxu1 %v6498_v0 }
 0x170   :  { %583 = vmatpush1.msra.mxu1 %v6971_v2 }
 0x171   :  { %606 = vmatprep.subr.mxu1 %v6498_v0 }
 0x172   :  { %607 = vmatpush2.msra.mxu1 %v6974_v30 }
 0x173   :  { %608 = vmatprep.subr.mxu1 %v6498_v0 }
 0x174   :  { %609 = vmatpush2.msra.mxu1 %v6983_v32 }
 0x175   :  { %610 = vmatprep.subr.mxu1 %v6498_v0 }
 0x176   :  { %611 = vmatpush2.msra.mxu1 %v6989_v34 }
 0x177   :  { %612 = vmatprep.subr.mxu1 %v6498_v0 }
 0x178   :  { %613 = vmatpush2.msra.mxu1 %v6993_v35 }
 0x179   :  { %614 = vmatprep.subr.mxu1 %v6498_v0 }
 0x17a   :  { %615 = vmatpush2.msra.mxu1 %v6997_v36 }
 0x17b   :  { %617 = vmatmul.mubr.f32.vlgmr.msra.gmra.mxu1 %v4874_v53  ;;  %5812 = vmatprep.subr.mxu1 %v6498_v0 }
 0x17c   :  { %4889 = vmatprep.mubr.msk.f32.mxu1 %vm378_vm1, %v4877_v55  ;;  %5813 = vmatpush3.msra.mxu1 %v4910_v18  ;;  %v4912_v18 = vld [vmem:[%s9931_s3 + $0xe8] sm:$0xff] }
 0x17d   :  { %5814 = vmatprep.subr.mxu1 %v6498_v0 }
 0x17e   :  { %5815 = vmatpush3.msra.mxu1 %v4909_v14 }
 0x17f   :  { %622 = vmatmul.mubr.f32.gmra.mxu1 %v4876_v56  ;;  %5816 = vmatprep.subr.mxu1 %v6498_v0 }
 0x180   :  { %4890 = vmatprep.mubr.msk.f32.mxu1 %vm378_vm1, %v4879_v57  ;;  %5817 = vmatpush3.msra.mxu1 %v4908_v20 }
 0x181   :  { %5818 = vmatprep.subr.mxu1 %v6498_v0 }
 0x182   :  { %5819 = vmatpush3.msra.mxu1 %v4907_v12  ;;  %v4911_v12 = vld [vmem:[%s9931_s3 + $0xe0] sm:$0xff] }
 0x183   :  { %627 = vmatmul.mubr.f32.gmra.mxu1 %v4878_v59  ;;  %5820 = vmatprep.subr.mxu1 %v6498_v0 }
 0x184   :  { %4891 = vmatprep.mubr.msk.f32.mxu1 %vm378_vm1, %v4881_v60  ;;  %5821 = vmatpush3.msra.mxu1 %v4906_v22  ;;  %v4914_v22 = vld [vmem:[%s9931_s3 + $0xf8] sm:$0xff] }
 0x185   :  { %5822 = vmatprep.subr.mxu1 %v6498_v0 }
 0x186   :  { %5823 = vmatpush3.msra.mxu1 %v4905_v10  ;;  %v4913_v10 = vld [vmem:[%s9931_s3 + $0xf0] sm:$0xff] }
 0x187   :  { %632 = vmatmul.mubr.f32.gmra.mxu1 %v4880_v61  ;;  %5824 = vmatprep.subr.mxu1 %v6498_v0 }
 0x188   :  { %4892 = vmatprep.mubr.msk.f32.mxu1 %vm378_vm1, %v4883_v1  ;;  %5825 = vmatpush3.msra.mxu1 %v4904_v24  ;;  %v4916_v24 = vld [vmem:[%s9931_s3 + $0x108] sm:$0xff] }
 0x189   :  { %5826 = vmatprep.subr.mxu1 %v6498_v0 }
 0x18a   :  { %5827 = vmatpush3.msra.mxu1 %v4903_v25  ;;  %v4915_v25 = vld [vmem:[%s9931_s3 + $0x100] sm:$0xff] }
 0x18b   :  { %637 = vmatmul.mubr.f32.gmra.mxu1 %v4882_v3  ;;  %5828 = vmatprep.subr.mxu1 %v6498_v0 }
 0x18c   :  { %4893 = vmatprep.mubr.msk.f32.mxu1 %vm378_vm1, %v4885_v5  ;;  %5829 = vmatpush3.msra.mxu1 %v4902_v6  ;;  %v4918_v6 = vld [vmem:[%s9931_s3 + $0x118] sm:$0xff] }
 0x18d   :  { %5830 = vmatprep.subr.mxu1 %v6498_v0 }
 0x18e   :  { %5831 = vmatpush3.msra.mxu1 %v4901_v4  ;;  %v4917_v4 = vld [vmem:[%s9931_s3 + $0x110] sm:$0xff] }
 0x18f   :  { %642 = vmatmul.mubr.f32.gmra.mxu1 %v4884_v9  ;;  %5832 = vmatprep.subr.mxu1 %v6498_v0 }
 0x190   :  { %4894 = vmatprep.mubr.msk.f32.mxu1 %vm378_vm1, %v4887_v11  ;;  %5833 = vmatpush3.msra.mxu1 %v4900_v29  ;;  %v4920_v29 = vld [vmem:[%s9931_s3 + $0x128] sm:$0xff] }
 0x191   :  { %5834 = vmatprep.subr.mxu1 %v6498_v0 }
 0x192   :  { %5835 = vmatpush3.msra.mxu1 %v4899_v63  ;;  %v4919_v63 = vld [vmem:[%s9931_s3 + $0x120] sm:$0xff] }
 0x193   :  { %647 = vmatmul.mubr.f32.gmra.mxu1 %v4886_v15  ;;  %5836 = vmatprep.subr.mxu1 %v6498_v0 }
 0x194   :  { %5844 = vmatprep.mubr.msk.f32.mxu1 %vm6499_vm2, %v6498_v0  ;;  %5837 = vmatpush3.msra.mxu1 %v4898_v31  ;;  %v4922_v31 = vld [vmem:[%s9931_s3 + $0x138] sm:$0xff] }
 0x195   :  { %5838 = vmatprep.subr.mxu1 %v6498_v0 }
 0x196   :  { %5839 = vmatpush3.msra.mxu1 %v4897_v33  ;;  %v4921_v33 = vld [vmem:[%s9931_s3 + $0x130] sm:$0xff] }
 0x197   :  { %5840 = vmatprep.subr.mxu1 %v6498_v0 }
 0x198   :  { %5841 = vmatpush3.msra.mxu1 %v4896_v37  ;;  %v4924_v37 = vld [vmem:[%s9931_s3 + $0x148] sm:$0xff] }
 0x199   :  { %5842 = vmatprep.subr.mxu1 %v6498_v0 }
 0x19a   :  { %5843 = vmatpush3.msra.mxu1 %v4895_v38  ;;  %v4923_v38 = vld [vmem:[%s9931_s3 + $0x140] sm:$0xff] }
 0x19b   :  { %905 = vmatprep.subr.mxu1 %v6498_v0 }
 0x211   :  { %v466_v39 = vpop.f32.mrf.mxu1 }
 0x212   :  { %5898 = vmatmul.mubr.f32.vlgmr.msra.gmra.mxu0 %v466_v39  ;;  %v4947_v39 = vld [vmem:[%s9932_s4 + $0x178] sm:$0xff] }
 0x213   :  { %v468_v40 = vpop.f32.mrf.mxu1  ;;  %5900 = vmatprep.mubr.msk.f32.mxu0 %vm6499_vm2, %v6498_v0  ;;  %5919 = vmatpush3.msra.mxu0 %v4947_v39 }
 0x214   :  { %5920 = vmatprep.subr.mxu0 %v6498_v0  ;;  %v4946_v40 = vld [vmem:[%s9932_s4 + $0x170] sm:$0xff] }
 0x215   :  { %v471_v41 = vpop.f32.mrf.mxu1  ;;  %5921 = vmatpush3.msra.mxu0 %v4946_v40 }
 0x216   :  { %5901 = vmatmul.mubr.f32.gmra.mxu0 %v471_v41  ;;  %5922 = vmatprep.subr.mxu0 %v6498_v0  ;;  %v4945_v41 = vld [vmem:[%s9932_s4 + $0x168] sm:$0xff] }
 0x217   :  { %v473_v42 = vpop.f32.mrf.mxu1  ;;  %5903 = vmatprep.mubr.msk.f32.mxu0 %vm6499_vm2, %v6498_v0  ;;  %5923 = vmatpush3.msra.mxu0 %v4945_v41 }
 0x218   :  { %5924 = vmatprep.subr.mxu0 %v6498_v0  ;;  %v4944_v42 = vld [vmem:[%s9932_s4 + $0x160] sm:$0xff] }
 0x219   :  { %v476_v43 = vpop.f32.mrf.mxu1  ;;  %5925 = vmatpush3.msra.mxu0 %v4944_v42 }
 0x21a   :  { %5904 = vmatmul.mubr.f32.gmra.mxu0 %v476_v43  ;;  %5926 = vmatprep.subr.mxu0 %v6498_v0  ;;  %v4943_v43 = vld [vmem:[%s9932_s4 + $0x158] sm:$0xff] }
 0x21b   :  { %v478_v44 = vpop.f32.mrf.mxu1  ;;  %5906 = vmatprep.mubr.msk.f32.mxu0 %vm6499_vm2, %v6498_v0  ;;  %5927 = vmatpush3.msra.mxu0 %v4943_v43 }
 0x21c   :  { %5928 = vmatprep.subr.mxu0 %v6498_v0  ;;  %v4942_v44 = vld [vmem:[%s9932_s4 + $0x150] sm:$0xff] }
 0x21d   :  { %v481_v45 = vpop.f32.mrf.mxu1  ;;  %5929 = vmatpush3.msra.mxu0 %v4942_v44 }
 0x21e   :  { %5907 = vmatmul.mubr.f32.gmra.mxu0 %v481_v45  ;;  %5930 = vmatprep.subr.mxu0 %v6498_v0  ;;  %v4941_v45 = vld [vmem:[%s9932_s4 + $0x148] sm:$0xff] }
 0x21f   :  { %v483_v47 = vpop.f32.mrf.mxu1  ;;  %5909 = vmatprep.mubr.msk.f32.mxu0 %vm6499_vm2, %v6498_v0  ;;  %5931 = vmatpush3.msra.mxu0 %v4941_v45 }
 0x220   :  { %5932 = vmatprep.subr.mxu0 %v6498_v0  ;;  %v4940_v47 = vld [vmem:[%s9932_s4 + $0x140] sm:$0xff] }
 0x221   :  { %v486_v48 = vpop.f32.mrf.mxu1  ;;  %5933 = vmatpush3.msra.mxu0 %v4940_v47 }
 0x222   :  { %5910 = vmatmul.mubr.f32.gmra.mxu0 %v486_v48  ;;  %v4939_v48 = vld [vmem:[%s9932_s4 + $0x138] sm:$0xff]  ;;  %5934 = vmatprep.subr.mxu0 %v6498_v0 }
 0x223   :  { %v488_v49 = vpop.f32.mrf.mxu1  ;;  %5912 = vmatprep.mubr.msk.f32.mxu0 %vm6499_vm2, %v6498_v0  ;;  %5935 = vmatpush3.msra.mxu0 %v4939_v48 }
 0x224   :  { %v4938_v49 = vld [vmem:[%s9932_s4 + $0x130] sm:$0xff]  ;;  %5936 = vmatprep.subr.mxu0 %v6498_v0 }
 0x225   :  { %v491_v51 = vpop.f32.mrf.mxu1  ;;  %5937 = vmatpush3.msra.mxu0 %v4938_v49 }
 0x226   :  { %5913 = vmatmul.mubr.f32.gmra.mxu0 %v491_v51  ;;  %v4937_v51 = vld [vmem:[%s9932_s4 + $0x128] sm:$0xff]  ;;  %5938 = vmatprep.subr.mxu0 %v6498_v0 }
 0x227   :  { %v493_v52 = vpop.f32.mrf.mxu1  ;;  %5915 = vmatprep.mubr.msk.f32.mxu0 %vm6499_vm2, %v6498_v0  ;;  %5939 = vmatpush3.msra.mxu0 %v4937_v51 }
 0x228   :  { %v4936_v52 = vld [vmem:[%s9932_s4 + $0x120] sm:$0xff]  ;;  %5940 = vmatprep.subr.mxu0 %v6498_v0 }
 0x229   :  { %v496_v53 = vpop.f32.mrf.mxu1  ;;  %5941 = vmatpush3.msra.mxu0 %v4936_v52 }
 0x22a   :  { %5916 = vmatmul.mubr.f32.gmra.mxu0 %v496_v53  ;;  %v4935_v53 = vld [vmem:[%s9932_s4 + $0x118] sm:$0xff]  ;;  %5942 = vmatprep.subr.mxu0 %v6498_v0 }
 0x22b   :  { %v498_v55 = vpop.f32.mrf.mxu1  ;;  %5950 = vmatprep.mubr.msk.f32.mxu0 %vm6499_vm2, %v6498_v0  ;;  %5943 = vmatpush3.msra.mxu0 %v4935_v53 }
 0x22c   :  { %v4934_v55 = vld [vmem:[%s9932_s4 + $0x110] sm:$0xff]  ;;  %5944 = vmatprep.subr.mxu0 %v6498_v0 }
 0x22d   :  { %5945 = vmatpush3.msra.mxu0 %v4934_v55 }
 0x22e   :  { %5946 = vmatprep.subr.mxu0 %v6498_v0 }
 0x23b   :  { %v618_v56 = vpop.f32.mrf.mxu1 }
 0x23c   :  { %5845 = vmatmul.mubr.f32.vlgmr.msra.gmra.mxu1 %v618_v56  ;;  %v4933_v56 = vld [vmem:[%s9932_s4 + $0x108] sm:$0xff] }
 0x23d   :  { %906 = vmatpush1.msra.mxu1 %v6862_v46  ;;  %v620_v57 = vpop.f32.mrf.mxu1  ;;  %5847 = vmatprep.mubr.msk.f32.mxu1 %vm6499_vm2, %v6498_v0 }
 0x23e   :  { %907 = vmatprep.subr.mxu1 %v6498_v0  ;;  %v4932_v57 = vld [vmem:[%s9932_s4 + $0x100] sm:$0xff]  ;;  %5947 = vmatpush3.msra.mxu0 %v4933_v56 }
 0x23f   :  { %908 = vmatpush1.msra.mxu1 %v6871_v50  ;;  %v623_v59 = vpop.f32.mrf.mxu1  ;;  %5948 = vmatprep.subr.mxu0 %v6498_v0 }
 0x240   :  { %909 = vmatprep.subr.mxu1 %v6498_v0  ;;  %5848 = vmatmul.mubr.f32.gmra.mxu1 %v623_v59 }
 0x241   :  { %910 = vmatpush1.msra.mxu1 %v6880_v54  ;;  %v625_v60 = vpop.f32.mrf.mxu1  ;;  %5850 = vmatprep.mubr.msk.f32.mxu1 %vm6499_vm2, %v6498_v0 }
 0x242   :  { %911 = vmatprep.subr.mxu1 %v6498_v0  ;;  %5949 = vmatpush3.msra.mxu0 %v4932_v57 }
 0x243   :  { %912 = vmatpush1.msra.mxu1 %v6892_v58  ;;  %v628_v61 = vpop.f32.mrf.mxu1  ;;  %1165 = vmatprep.subr.mxu0 %v6498_v0 }
 0x244   :  { %913 = vmatprep.subr.mxu1 %v6498_v0  ;;  %5851 = vmatmul.mubr.f32.gmra.mxu1 %v628_v61 }
 0x245   :  { %914 = vmatpush1.msra.mxu1 %v6902_v62  ;;  %v630_v1 = vpop.f32.mrf.mxu1  ;;  %5853 = vmatprep.mubr.msk.f32.mxu1 %vm6499_vm2, %v6498_v0 }
 0x246   :  { %915 = vmatprep.subr.mxu1 %v6498_v0 }
 0x247   :  { %916 = vmatpush1.msra.mxu1 %v6912_v7  ;;  %v633_v3 = vpop.f32.mrf.mxu1 }
 0x248   :  { %917 = vmatprep.subr.mxu1 %v6498_v0  ;;  %5854 = vmatmul.mubr.f32.gmra.mxu1 %v633_v3 }
 0x249   :  { %918 = vmatpush1.msra.mxu1 %v6919_v13  ;;  %v635_v5 = vpop.f32.mrf.mxu1  ;;  %5856 = vmatprep.mubr.msk.f32.mxu1 %vm6499_vm2, %v6498_v0 }
 0x24a   :  { %919 = vmatprep.subr.mxu1 %v6498_v0 }
 0x24b   :  { %920 = vmatpush1.msra.mxu1 %v6926_v17  ;;  %v638_v9 = vpop.f32.mrf.mxu1 }
 0x24c   :  { %921 = vmatprep.subr.mxu1 %v6498_v0  ;;  %5857 = vmatmul.mubr.f32.gmra.mxu1 %v638_v9 }
 0x24d   :  { %922 = vmatpush1.msra.mxu1 %v6932_v19  ;;  %v640_v11 = vpop.f32.mrf.mxu1  ;;  %5859 = vmatprep.mubr.msk.f32.mxu1 %vm6499_vm2, %v6498_v0 }
 0x24e   :  { %923 = vmatprep.subr.mxu1 %v6498_v0 }
 0x24f   :  { %924 = vmatpush1.msra.mxu1 %v6938_v21  ;;  %v643_v15 = vpop.f32.mrf.mxu1 }
 0x250   :  { %925 = vmatprep.subr.mxu1 %v6498_v0  ;;  %5860 = vmatmul.mubr.f32.gmra.mxu1 %v643_v15 }
 0x251   :  { %926 = vmatpush1.msra.mxu1 %v6944_v23  ;;  %v645_v16 = vpop.f32.mrf.mxu1  ;;  %5862 = vmatprep.mubr.msk.f32.mxu1 %vm6499_vm2, %v6498_v0 }
 0x252   :  { %927 = vmatprep.subr.mxu1 %v6498_v0 }
 0x253   :  { %928 = vmatpush1.msra.mxu1 %v6950_v8  ;;  %v648_v14 = vpop.f32.mrf.mxu1 }
 0x254   :  { %929 = vmatprep.subr.mxu1 %v6498_v0  ;;  %5863 = vmatmul.mubr.f32.gmra.mxu1 %v648_v14 }
 0x255   :  { %930 = vmatpush1.msra.mxu1 %v6956_v26  ;;  %v650_v20 = vpop.f32.mrf.mxu1  ;;  %4925 = vmatprep.mubr.msk.f32.mxu1 %vm378_vm1, %v4912_v18 }
 0x256   :  { %931 = vmatprep.subr.mxu1 %v6498_v0 }
 0x257   :  { %932 = vmatpush1.msra.mxu1 %v6962_v27 }
 0x258   :  { %933 = vmatprep.subr.mxu1 %v6498_v0 }
 0x259   :  { %934 = vmatpush1.msra.mxu1 %v6967_v28 }
 0x25a   :  { %935 = vmatprep.subr.mxu1 %v6498_v0 }
 0x25b   :  { %936 = vmatpush1.msra.mxu1 %v6971_v2 }
 0x25c   :  { %959 = vmatprep.subr.mxu1 %v6498_v0 }
 0x25d   :  { %960 = vmatpush2.msra.mxu1 %v6974_v30 }
 0x25e   :  { %961 = vmatprep.subr.mxu1 %v6498_v0 }
 0x25f   :  { %962 = vmatpush2.msra.mxu1 %v6983_v32 }
 0x260   :  { %963 = vmatprep.subr.mxu1 %v6498_v0 }
 0x261   :  { %964 = vmatpush2.msra.mxu1 %v6989_v34 }
 0x262   :  { %965 = vmatprep.subr.mxu1 %v6498_v0 }
 0x263   :  { %966 = vmatpush2.msra.mxu1 %v6993_v35 }
 0x264   :  { %967 = vmatprep.subr.mxu1 %v6498_v0 }
 0x265   :  { %968 = vmatpush2.msra.mxu1 %v6997_v36 }
 0x266   :  { %970 = vmatmul.mubr.f32.vlgmr.msra.gmra.mxu1 %v4911_v12  ;;  %5971 = vmatprep.subr.mxu1 %v6498_v0 }
 0x267   :  { %4926 = vmatprep.mubr.msk.f32.mxu1 %vm378_vm1, %v4914_v22 }
 0x26a   :  { %975 = vmatmul.mubr.f32.gmra.mxu1 %v4913_v10 }
 0x26b   :  { %4927 = vmatprep.mubr.msk.f32.mxu1 %vm378_vm1, %v4916_v24 }
 0x26e   :  { %980 = vmatmul.mubr.f32.gmra.mxu1 %v4915_v25 }
 0x26f   :  { %4928 = vmatprep.mubr.msk.f32.mxu1 %vm378_vm1, %v4918_v6 }
 0x272   :  { %985 = vmatmul.mubr.f32.gmra.mxu1 %v4917_v4 }
 0x273   :  { %4929 = vmatprep.mubr.msk.f32.mxu1 %vm378_vm1, %v4920_v29 }
 0x276   :  { %990 = vmatmul.mubr.f32.gmra.mxu1 %v4919_v63 }
 0x277   :  { %4930 = vmatprep.mubr.msk.f32.mxu1 %vm378_vm1, %v4922_v31 }
 0x27a   :  { %995 = vmatmul.mubr.f32.gmra.mxu1 %v4921_v33 }
 0x27b   :  { %4931 = vmatprep.mubr.msk.f32.mxu1 %vm378_vm1, %v4924_v37 }
 0x27e   :  { %1000 = vmatmul.mubr.f32.gmra.mxu1 %v4923_v38 }
 0x27f   :  { %6003 = vmatprep.mubr.msk.f32.mxu1 %vm6499_vm2, %v6498_v0 }
 0x2d2   :  { %v835_v59 = vpop.f32.mrf.mxu0 }
 0x2d4   :  { %v5899_v60 = vpop.f32.mrf.mxu0 }
 0x2d6   :  { %v840_v61 = vpop.f32.mrf.mxu0 }
 0x2d8   :  { %v5902_v1 = vpop.f32.mrf.mxu0 }
 0x2da   :  { %v845_v3 = vpop.f32.mrf.mxu0 }
 0x2dc   :  { %v5905_v5 = vpop.f32.mrf.mxu0 }
 0x2dd   :  { %v4949_v5 = vld [vmem:[%s9931_s3 + $0x158] sm:$0xff] }
 0x2de   :  { %v850_v9 = vpop.f32.mrf.mxu0 }
 0x2e0   :  { %v5908_v11 = vpop.f32.mrf.mxu0 }
 0x2e2   :  { %v855_v15 = vpop.f32.mrf.mxu0 }
 0x2e4   :  { %v5911_v16 = vpop.f32.mrf.mxu0 }
 0x2e5   :  { %v4951_v16 = vld [vmem:[%s9931_s3 + $0x168] sm:$0xff] }
 0x2e6   :  { %v860_v18 = vpop.f32.mrf.mxu0 }
 0x2e8   :  { %v5914_v14 = vpop.f32.mrf.mxu0 }
 0x2e9   :  { %v4953_v14 = vld [vmem:[%s9931_s3 + $0x178] sm:$0xff] }
 0x2ea   :  { %v865_v20 = vpop.f32.mrf.mxu0 }
 0x2ec   :  { %v5917_v12 = vpop.f32.mrf.mxu0 }
 0x2ed   :  { %v4955_v12 = vld [vmem:[%s9931_s3 + $0x188] sm:$0xff] }
 0x2fc   :  { %v735_v22 = vpop.f32.mrf.mxu1 }
 0x2fd   :  { %v7394_v10 = vadd.f32 %v835_v59, %v735_v22  ;;  %v4954_v22 = vld [vmem:[%s9931_s3 + $0x180] sm:$0xff] }
 0x2fe   :  { %v5846_v24 = vpop.f32.mrf.mxu1 }
 0x2ff   :  { %v4957_v24 = vld [vmem:[%s9931_s3 + $0x198] sm:$0xff] }
 0x300   :  { %v740_v25 = vpop.f32.mrf.mxu1 }
 0x301   :  { %v7396_v6 = vadd.f32 %v840_v61, %v740_v25  ;;  %v4956_v25 = vld [vmem:[%s9931_s3 + $0x190] sm:$0xff] }
 0x302   :  { %v5849_v4 = vpop.f32.mrf.mxu1 }
 0x303   :  { %v4959_v4 = vld [vmem:[%s9931_s3 + $0x1a8] sm:$0xff] }
 0x304   :  { %v745_v29 = vpop.f32.mrf.mxu1 }
 0x305   :  { %v7398_v63 = vadd.f32 %v845_v3, %v745_v29  ;;  %v4958_v29 = vld [vmem:[%s9931_s3 + $0x1a0] sm:$0xff] }
 0x306   :  { %v5852_v31 = vpop.f32.mrf.mxu1 }
 0x307   :  { %v4961_v31 = vld [vmem:[%s9931_s3 + $0x1b8] sm:$0xff] }
 0x308   :  { %v750_v33 = vpop.f32.mrf.mxu1 }
 0x309   :  { %v7400_v37 = vadd.f32 %v850_v9, %v750_v33  ;;  %v4960_v33 = vld [vmem:[%s9931_s3 + $0x1b0] sm:$0xff] }
 0x30a   :  { %v5855_v38 = vpop.f32.mrf.mxu1 }
 0x30b   :  { %v4984_v38 = vld [vmem:[%s9932_s4 + $0x1f8] sm:$0xff] }
 0x30c   :  { %v755_v39 = vpop.f32.mrf.mxu1  ;;  %5972 = vmatpush3.msra.mxu1 %v4984_v38 }
 0x30d   :  { %v7402_v40 = vadd.f32 %v855_v15, %v755_v39  ;;  %v4948_v15 = vld [vmem:[%s9931_s3 + $0x150] sm:$0xff]  ;;  %5973 = vmatprep.subr.mxu1 %v6498_v0 }
 0x30e   :  { %v5858_v41 = vpop.f32.mrf.mxu1  ;;  %v4983_v39 = vld [vmem:[%s9932_s4 + $0x1f0] sm:$0xff] }
 0x30f   :  { %5974 = vmatpush3.msra.mxu1 %v4983_v39  ;;  %v4982_v41 = vld [vmem:[%s9932_s4 + $0x1e8] sm:$0xff] }
 0x310   :  { %v760_v42 = vpop.f32.mrf.mxu1  ;;  %5975 = vmatprep.subr.mxu1 %v6498_v0 }
 0x311   :  { %v7404_v43 = vadd.f32 %v860_v18, %v760_v42  ;;  %v4950_v18 = vld [vmem:[%s9931_s3 + $0x160] sm:$0xff]  ;;  %5976 = vmatpush3.msra.mxu1 %v4982_v41 }
 0x312   :  { %v5861_v44 = vpop.f32.mrf.mxu1  ;;  %5977 = vmatprep.subr.mxu1 %v6498_v0  ;;  %v4981_v42 = vld [vmem:[%s9932_s4 + $0x1e0] sm:$0xff] }
 0x313   :  { %5978 = vmatpush3.msra.mxu1 %v4981_v42  ;;  %v4980_v44 = vld [vmem:[%s9932_s4 + $0x1d8] sm:$0xff] }
 0x314   :  { %v765_v45 = vpop.f32.mrf.mxu1  ;;  %5979 = vmatprep.subr.mxu1 %v6498_v0 }
 0x315   :  { %v7406_v47 = vadd.f32 %v865_v20, %v765_v45  ;;  %v4952_v20 = vld [vmem:[%s9931_s3 + $0x170] sm:$0xff]  ;;  %5980 = vmatpush3.msra.mxu1 %v4980_v44 }
 0x316   :  { %v5864_v48 = vpop.f32.mrf.mxu1  ;;  %5981 = vmatprep.subr.mxu1 %v6498_v0  ;;  %v4979_v45 = vld [vmem:[%s9932_s4 + $0x1d0] sm:$0xff] }
 0x317   :  { %5982 = vmatpush3.msra.mxu1 %v4979_v45  ;;  %v4978_v48 = vld [vmem:[%s9932_s4 + $0x1c8] sm:$0xff] }
 0x318   :  { %5983 = vmatprep.subr.mxu1 %v6498_v0 }
 0x319   :  { %5984 = vmatpush3.msra.mxu1 %v4978_v48 }
 0x31a   :  { %5985 = vmatprep.subr.mxu1 %v6498_v0 }
 0x326   :  { %v971_v49 = vpop.f32.mrf.mxu1 }
 0x327   :  { %5951 = vmatmul.mubr.f32.vlgmr.msra.gmra.mxu0 %v971_v49  ;;  %v4977_v49 = vld [vmem:[%s9932_s4 + $0x1c0] sm:$0xff] }
 0x328   :  { %1166 = vmatpush1.msra.mxu0 %v6862_v46  ;;  %v973_v51 = vpop.f32.mrf.mxu1  ;;  %5953 = vmatprep.mubr.msk.f32.mxu0 %vm6499_vm2, %v6498_v0 }
 0x329   :  { %1167 = vmatprep.subr.mxu0 %v6498_v0  ;;  %5986 = vmatpush3.msra.mxu1 %v4977_v49  ;;  %v4976_v51 = vld [vmem:[%s9932_s4 + $0x1b8] sm:$0xff]  ;;  %v4986_v49 = vld [vmem:[%s9931_s3 + $0x1c8] sm:$0xff] }
 0x32a   :  { %1168 = vmatpush1.msra.mxu0 %v6871_v50  ;;  %v976_v52 = vpop.f32.mrf.mxu1  ;;  %5987 = vmatprep.subr.mxu1 %v6498_v0 }
 0x32b   :  { %1169 = vmatprep.subr.mxu0 %v6498_v0  ;;  %5954 = vmatmul.mubr.f32.gmra.mxu0 %v976_v52  ;;  %v4975_v52 = vld [vmem:[%s9932_s4 + $0x1b0] sm:$0xff] }
 0x32c   :  { %1170 = vmatpush1.msra.mxu0 %v6880_v54  ;;  %v978_v53 = vpop.f32.mrf.mxu1  ;;  %5956 = vmatprep.mubr.msk.f32.mxu0 %vm6499_vm2, %v6498_v0 }
 0x32d   :  { %1171 = vmatprep.subr.mxu0 %v6498_v0  ;;  %5988 = vmatpush3.msra.mxu1 %v4976_v51  ;;  %v4974_v53 = vld [vmem:[%s9932_s4 + $0x1a8] sm:$0xff] }
 0x32e   :  { %1172 = vmatpush1.msra.mxu0 %v6892_v58  ;;  %v981_v55 = vpop.f32.mrf.mxu1  ;;  %5989 = vmatprep.subr.mxu1 %v6498_v0 }
 0x32f   :  { %1173 = vmatprep.subr.mxu0 %v6498_v0  ;;  %5957 = vmatmul.mubr.f32.gmra.mxu0 %v981_v55  ;;  %v4973_v55 = vld [vmem:[%s9932_s4 + $0x1a0] sm:$0xff] }
 0x330   :  { %1174 = vmatpush1.msra.mxu0 %v6902_v62  ;;  %v983_v56 = vpop.f32.mrf.mxu1  ;;  %5959 = vmatprep.mubr.msk.f32.mxu0 %vm6499_vm2, %v6498_v0 }
 0x331   :  { %1175 = vmatprep.subr.mxu0 %v6498_v0  ;;  %5990 = vmatpush3.msra.mxu1 %v4975_v52  ;;  %v4972_v56 = vld [vmem:[%s9932_s4 + $0x198] sm:$0xff] }
 0x332   :  { %1176 = vmatpush1.msra.mxu0 %v6912_v7  ;;  %v986_v57 = vpop.f32.mrf.mxu1  ;;  %5991 = vmatprep.subr.mxu1 %v6498_v0 }
 0x333   :  { %1177 = vmatprep.subr.mxu0 %v6498_v0  ;;  %5960 = vmatmul.mubr.f32.gmra.mxu0 %v986_v57  ;;  %v4971_v57 = vld [vmem:[%s9932_s4 + $0x190] sm:$0xff] }
 0x334   :  { %1178 = vmatpush1.msra.mxu0 %v6919_v13  ;;  %v988_v59 = vpop.f32.mrf.mxu1  ;;  %5962 = vmatprep.mubr.msk.f32.mxu0 %vm6499_vm2, %v6498_v0 }
 0x335   :  { %1179 = vmatprep.subr.mxu0 %v6498_v0  ;;  %5992 = vmatpush3.msra.mxu1 %v4974_v53  ;;  %v4970_v59 = vld [vmem:[%s9932_s4 + $0x188] sm:$0xff]  ;;  %v4985_v53 = vld [vmem:[%s9931_s3 + $0x1c0] sm:$0xff] }
 0x336   :  { %1180 = vmatpush1.msra.mxu0 %v6926_v17  ;;  %v991_v60 = vpop.f32.mrf.mxu1  ;;  %5993 = vmatprep.subr.mxu1 %v6498_v0 }
 0x337   :  { %1181 = vmatprep.subr.mxu0 %v6498_v0  ;;  %5963 = vmatmul.mubr.f32.gmra.mxu0 %v991_v60  ;;  %v4969_v60 = vld [vmem:[%s9932_s4 + $0x180] sm:$0xff] }
 0x338   :  { %1182 = vmatpush1.msra.mxu0 %v6932_v19  ;;  %v993_v61 = vpop.f32.mrf.mxu1  ;;  %5965 = vmatprep.mubr.msk.f32.mxu0 %vm6499_vm2, %v6498_v0 }
 0x339   :  { %1183 = vmatprep.subr.mxu0 %v6498_v0  ;;  %5994 = vmatpush3.msra.mxu1 %v4973_v55  ;;  %v4988_v55 = vld [vmem:[%s9931_s3 + $0x1d8] sm:$0xff] }
 0x33a   :  { %1184 = vmatpush1.msra.mxu0 %v6938_v21  ;;  %v996_v1 = vpop.f32.mrf.mxu1  ;;  %5995 = vmatprep.subr.mxu1 %v6498_v0 }
 0x33b   :  { %1185 = vmatprep.subr.mxu0 %v6498_v0  ;;  %5966 = vmatmul.mubr.f32.gmra.mxu0 %v996_v1 }
 0x33c   :  { %1186 = vmatpush1.msra.mxu0 %v6944_v23  ;;  %v998_v3 = vpop.f32.mrf.mxu1  ;;  %5968 = vmatprep.mubr.msk.f32.mxu0 %vm6499_vm2, %v6498_v0 }
 0x33d   :  { %1187 = vmatprep.subr.mxu0 %v6498_v0  ;;  %5996 = vmatpush3.msra.mxu1 %v4972_v56  ;;  %v4987_v56 = vld [vmem:[%s9931_s3 + $0x1d0] sm:$0xff] }
 0x33e   :  { %1188 = vmatpush1.msra.mxu0 %v6950_v8  ;;  %v1001_v9 = vpop.f32.mrf.mxu1  ;;  %5997 = vmatprep.subr.mxu1 %v6498_v0 }
 0x33f   :  { %1189 = vmatprep.subr.mxu0 %v6498_v0  ;;  %5969 = vmatmul.mubr.f32.gmra.mxu0 %v1001_v9 }
 0x340   :  { %1190 = vmatpush1.msra.mxu0 %v6956_v26  ;;  %v1003_v11 = vpop.f32.mrf.mxu1  ;;  %4962 = vmatprep.mubr.msk.f32.mxu0 %vm378_vm1, %v4949_v5 }
 0x341   :  { %1191 = vmatprep.subr.mxu0 %v6498_v0  ;;  %5998 = vmatpush3.msra.mxu1 %v4971_v57  ;;  %v4990_v57 = vld [vmem:[%s9931_s3 + $0x1e8] sm:$0xff] }
 0x342   :  { %1192 = vmatpush1.msra.mxu0 %v6962_v27  ;;  %5999 = vmatprep.subr.mxu1 %v6498_v0 }
 0x343   :  { %1193 = vmatprep.subr.mxu0 %v6498_v0  ;;  %6000 = vmatpush3.msra.mxu1 %v4970_v59  ;;  %v4989_v59 = vld [vmem:[%s9931_s3 + $0x1e0] sm:$0xff] }
 0x344   :  { %1194 = vmatpush1.msra.mxu0 %v6967_v28  ;;  %6001 = vmatprep.subr.mxu1 %v6498_v0 }
 0x345   :  { %1195 = vmatprep.subr.mxu0 %v6498_v0  ;;  %6002 = vmatpush3.msra.mxu1 %v4969_v60  ;;  %v4992_v60 = vld [vmem:[%s9931_s3 + $0x1f8] sm:$0xff] }
 0x346   :  { %1196 = vmatpush1.msra.mxu0 %v6971_v2  ;;  %1425 = vmatprep.subr.mxu1 %v6498_v0 }
 0x347   :  { %1219 = vmatprep.subr.mxu0 %v6498_v0 }
 0x348   :  { %1220 = vmatpush2.msra.mxu0 %v6974_v30 }
 0x349   :  { %1221 = vmatprep.subr.mxu0 %v6498_v0 }
 0x34a   :  { %1222 = vmatpush2.msra.mxu0 %v6983_v32 }
 0x34b   :  { %1223 = vmatprep.subr.mxu0 %v6498_v0 }
 0x34c   :  { %1224 = vmatpush2.msra.mxu0 %v6989_v34 }
 0x34d   :  { %1225 = vmatprep.subr.mxu0 %v6498_v0 }
 0x34e   :  { %1226 = vmatpush2.msra.mxu0 %v6993_v35 }
 0x34f   :  { %1227 = vmatprep.subr.mxu0 %v6498_v0 }
 0x350   :  { %1228 = vmatpush2.msra.mxu0 %v6997_v36 }
 0x351   :  { %1230 = vmatmul.mubr.f32.vlgmr.msra.gmra.mxu0 %v4948_v15  ;;  %6024 = vmatprep.subr.mxu0 %v6498_v0 }
 0x352   :  { %4963 = vmatprep.mubr.msk.f32.mxu0 %vm378_vm1, %v4951_v16 }
 0x355   :  { %1235 = vmatmul.mubr.f32.gmra.mxu0 %v4950_v18 }
 0x356   :  { %4964 = vmatprep.mubr.msk.f32.mxu0 %vm378_vm1, %v4953_v14 }
 0x359   :  { %1240 = vmatmul.mubr.f32.gmra.mxu0 %v4952_v20 }
 0x35a   :  { %4965 = vmatprep.mubr.msk.f32.mxu0 %vm378_vm1, %v4955_v12 }
 0x35d   :  { %1245 = vmatmul.mubr.f32.gmra.mxu0 %v4954_v22 }
 0x35e   :  { %4966 = vmatprep.mubr.msk.f32.mxu0 %vm378_vm1, %v4957_v24 }
 0x361   :  { %1250 = vmatmul.mubr.f32.gmra.mxu0 %v4956_v25 }
 0x362   :  { %4967 = vmatprep.mubr.msk.f32.mxu0 %vm378_vm1, %v4959_v4 }
 0x365   :  { %1255 = vmatmul.mubr.f32.gmra.mxu0 %v4958_v29 }
 0x366   :  { %4968 = vmatprep.mubr.msk.f32.mxu0 %vm378_vm1, %v4961_v31 }
 0x369   :  { %1260 = vmatmul.mubr.f32.gmra.mxu0 %v4960_v33 }
 0x36a   :  { %6056 = vmatprep.mubr.msk.f32.mxu0 %vm6499_vm2, %v6498_v0 }
 0x3e7   :  { %v1088_v61 = vpop.f32.mrf.mxu0 }
 0x3e8   :  { %v7578_v1 = vadd.f32 %v1088_v61, %v7394_v10  ;;  %v4991_v61 = vld [vmem:[%s9931_s3 + $0x1f0] sm:$0xff] }
 0x3e9   :  { %v5952_v3 = vpop.f32.mrf.mxu0 }
 0x3ea   :  { %v4994_v3 = vld [vmem:[%s9931_s3 + $0x208] sm:$0xff] }
 0x3eb   :  { %v1093_v5 = vpop.f32.mrf.mxu0 }
 0x3ec   :  { %v7581_v9 = vadd.f32 %v1093_v5, %v7396_v6  ;;  %v4993_v5 = vld [vmem:[%s9931_s3 + $0x200] sm:$0xff] }
 0x3ed   :  { %v5955_v11 = vpop.f32.mrf.mxu0 }
 0x3ee   :  { %v4996_v11 = vld [vmem:[%s9931_s3 + $0x218] sm:$0xff] }
 0x3ef   :  { %v1098_v15 = vpop.f32.mrf.mxu0 }
 0x3f0   :  { %v7584_v16 = vadd.f32 %v1098_v15, %v7398_v63  ;;  %v4995_v15 = vld [vmem:[%s9931_s3 + $0x210] sm:$0xff] }
 0x3f1   :  { %v5958_v18 = vpop.f32.mrf.mxu0 }
 0x3f2   :  { %v4998_v18 = vld [vmem:[%s9931_s3 + $0x228] sm:$0xff] }
 0x3f3   :  { %v1103_v14 = vpop.f32.mrf.mxu0 }
 0x3f4   :  { %v7587_v20 = vadd.f32 %v1103_v14, %v7400_v37  ;;  %v4997_v14 = vld [vmem:[%s9931_s3 + $0x220] sm:$0xff] }
 0x3f5   :  { %v5961_v12 = vpop.f32.mrf.mxu0 }
 0x3f6   :  { %v5021_v12 = vld [vmem:[%s9932_s4 + $0x278] sm:$0xff] }
 0x3f7   :  { %v1108_v22 = vpop.f32.mrf.mxu0  ;;  %6025 = vmatpush3.msra.mxu0 %v5021_v12 }
 0x3f8   :  { %v7590_v10 = vadd.f32 %v1108_v22, %v7402_v40  ;;  %6026 = vmatprep.subr.mxu0 %v6498_v0  ;;  %v5020_v22 = vld [vmem:[%s9932_s4 + $0x270] sm:$0xff] }
 0x3f9   :  { %v5964_v24 = vpop.f32.mrf.mxu0  ;;  %6027 = vmatpush3.msra.mxu0 %v5020_v22 }
 0x3fa   :  { %6028 = vmatprep.subr.mxu0 %v6498_v0  ;;  %v5019_v24 = vld [vmem:[%s9932_s4 + $0x268] sm:$0xff] }
 0x3fb   :  { %v1113_v25 = vpop.f32.mrf.mxu0  ;;  %6029 = vmatpush3.msra.mxu0 %v5019_v24 }
 0x3fc   :  { %v7593_v6 = vadd.f32 %v1113_v25, %v7404_v43  ;;  %6030 = vmatprep.subr.mxu0 %v6498_v0  ;;  %v5018_v25 = vld [vmem:[%s9932_s4 + $0x260] sm:$0xff] }
 0x3fd   :  { %v5967_v4 = vpop.f32.mrf.mxu0  ;;  %6031 = vmatpush3.msra.mxu0 %v5018_v25 }
 0x3fe   :  { %6032 = vmatprep.subr.mxu0 %v6498_v0  ;;  %v5017_v4 = vld [vmem:[%s9932_s4 + $0x258] sm:$0xff] }
 0x3ff   :  { %v1118_v29 = vpop.f32.mrf.mxu0  ;;  %6033 = vmatpush3.msra.mxu0 %v5017_v4 }
 0x400   :  { %v7596_v63 = vadd.f32 %v1118_v29, %v7406_v47  ;;  %6034 = vmatprep.subr.mxu0 %v6498_v0  ;;  %v5016_v29 = vld [vmem:[%s9932_s4 + $0x250] sm:$0xff] }
 0x401   :  { %v5970_v31 = vpop.f32.mrf.mxu0  ;;  %6035 = vmatpush3.msra.mxu0 %v5016_v29 }
 0x402   :  { %6036 = vmatprep.subr.mxu0 %v6498_v0  ;;  %v5015_v31 = vld [vmem:[%s9932_s4 + $0x248] sm:$0xff] }
 0x403   :  { %6037 = vmatpush3.msra.mxu0 %v5015_v31 }
 0x404   :  { %6038 = vmatprep.subr.mxu0 %v6498_v0 }
 0x411   :  { %v1231_v33 = vpop.f32.mrf.mxu0 }
 0x412   :  { %6004 = vmatmul.mubr.f32.vlgmr.msra.gmra.mxu1 %v1231_v33  ;;  %v5014_v33 = vld [vmem:[%s9932_s4 + $0x240] sm:$0xff] }
 0x413   :  { %1426 = vmatpush1.msra.mxu1 %v6862_v46  ;;  %v1233_v37 = vpop.f32.mrf.mxu0  ;;  %6006 = vmatprep.mubr.msk.f32.mxu1 %vm6499_vm2, %v6498_v0 }
 0x414   :  { %1427 = vmatprep.subr.mxu1 %v6498_v0  ;;  %6039 = vmatpush3.msra.mxu0 %v5014_v33  ;;  %v5013_v37 = vld [vmem:[%s9932_s4 + $0x238] sm:$0xff] }
 0x415   :  { %1428 = vmatpush1.msra.mxu1 %v6871_v50  ;;  %v1236_v40 = vpop.f32.mrf.mxu0  ;;  %6040 = vmatprep.subr.mxu0 %v6498_v0  ;;  %v5023_v33 = vld [vmem:[%s9931_s3 + $0x238] sm:$0xff] }
 0x416   :  { %1429 = vmatprep.subr.mxu1 %v6498_v0  ;;  %6007 = vmatmul.mubr.f32.gmra.mxu1 %v1236_v40  ;;  %v5012_v40 = vld [vmem:[%s9932_s4 + $0x230] sm:$0xff] }
 0x417   :  { %1430 = vmatpush1.msra.mxu1 %v6880_v54  ;;  %v1238_v43 = vpop.f32.mrf.mxu0  ;;  %6009 = vmatprep.mubr.msk.f32.mxu1 %vm6499_vm2, %v6498_v0 }
 0x418   :  { %1431 = vmatprep.subr.mxu1 %v6498_v0  ;;  %6041 = vmatpush3.msra.mxu0 %v5013_v37  ;;  %v5011_v43 = vld [vmem:[%s9932_s4 + $0x228] sm:$0xff] }
 0x419   :  { %1432 = vmatpush1.msra.mxu1 %v6892_v58  ;;  %v1241_v47 = vpop.f32.mrf.mxu0  ;;  %6042 = vmatprep.subr.mxu0 %v6498_v0 }
 0x41a   :  { %1433 = vmatprep.subr.mxu1 %v6498_v0  ;;  %6010 = vmatmul.mubr.f32.gmra.mxu1 %v1241_v47  ;;  %v5010_v47 = vld [vmem:[%s9932_s4 + $0x220] sm:$0xff] }
 0x41b   :  { %1434 = vmatpush1.msra.mxu1 %v6902_v62  ;;  %v1243_v38 = vpop.f32.mrf.mxu0  ;;  %6012 = vmatprep.mubr.msk.f32.mxu1 %vm6499_vm2, %v6498_v0 }
 0x41c   :  { %1435 = vmatprep.subr.mxu1 %v6498_v0  ;;  %6043 = vmatpush3.msra.mxu0 %v5012_v40  ;;  %v5009_v38 = vld [vmem:[%s9932_s4 + $0x218] sm:$0xff] }
 0x41d   :  { %1436 = vmatpush1.msra.mxu1 %v6912_v7  ;;  %v1246_v39 = vpop.f32.mrf.mxu0  ;;  %6044 = vmatprep.subr.mxu0 %v6498_v0 }
 0x41e   :  { %1437 = vmatprep.subr.mxu1 %v6498_v0  ;;  %6013 = vmatmul.mubr.f32.gmra.mxu1 %v1246_v39  ;;  %v5008_v39 = vld [vmem:[%s9932_s4 + $0x210] sm:$0xff] }
 0x41f   :  { %1438 = vmatpush1.msra.mxu1 %v6919_v13  ;;  %v1248_v41 = vpop.f32.mrf.mxu0  ;;  %6015 = vmatprep.mubr.msk.f32.mxu1 %vm6499_vm2, %v6498_v0 }
 0x420   :  { %1439 = vmatprep.subr.mxu1 %v6498_v0  ;;  %6045 = vmatpush3.msra.mxu0 %v5011_v43  ;;  %v5007_v41 = vld [vmem:[%s9932_s4 + $0x208] sm:$0xff]  ;;  %v5022_v43 = vld [vmem:[%s9931_s3 + $0x230] sm:$0xff] }
 0x421   :  { %1440 = vmatpush1.msra.mxu1 %v6926_v17  ;;  %v1251_v42 = vpop.f32.mrf.mxu0  ;;  %6046 = vmatprep.subr.mxu0 %v6498_v0 }
 0x422   :  { %1441 = vmatprep.subr.mxu1 %v6498_v0  ;;  %6016 = vmatmul.mubr.f32.gmra.mxu1 %v1251_v42  ;;  %v5006_v42 = vld [vmem:[%s9932_s4 + $0x200] sm:$0xff] }
 0x423   :  { %1442 = vmatpush1.msra.mxu1 %v6932_v19  ;;  %v1253_v44 = vpop.f32.mrf.mxu0  ;;  %6018 = vmatprep.mubr.msk.f32.mxu1 %vm6499_vm2, %v6498_v0 }
 0x424   :  { %1443 = vmatprep.subr.mxu1 %v6498_v0  ;;  %6047 = vmatpush3.msra.mxu0 %v5010_v47  ;;  %v5025_v47 = vld [vmem:[%s9931_s3 + $0x248] sm:$0xff] }
 0x425   :  { %1444 = vmatpush1.msra.mxu1 %v6938_v21  ;;  %v1256_v45 = vpop.f32.mrf.mxu0  ;;  %6048 = vmatprep.subr.mxu0 %v6498_v0 }
 0x426   :  { %1445 = vmatprep.subr.mxu1 %v6498_v0  ;;  %6019 = vmatmul.mubr.f32.gmra.mxu1 %v1256_v45 }
 0x427   :  { %1446 = vmatpush1.msra.mxu1 %v6944_v23  ;;  %v1258_v48 = vpop.f32.mrf.mxu0  ;;  %6021 = vmatprep.mubr.msk.f32.mxu1 %vm6499_vm2, %v6498_v0 }
 0x428   :  { %1447 = vmatprep.subr.mxu1 %v6498_v0  ;;  %6049 = vmatpush3.msra.mxu0 %v5009_v38  ;;  %v5024_v38 = vld [vmem:[%s9931_s3 + $0x240] sm:$0xff] }
 0x429   :  { %1448 = vmatpush1.msra.mxu1 %v6950_v8  ;;  %v1261_v51 = vpop.f32.mrf.mxu0  ;;  %6050 = vmatprep.subr.mxu0 %v6498_v0 }
 0x42a   :  { %1449 = vmatprep.subr.mxu1 %v6498_v0  ;;  %6022 = vmatmul.mubr.f32.gmra.mxu1 %v1261_v51 }
 0x42b   :  { %1450 = vmatpush1.msra.mxu1 %v6956_v26  ;;  %v1263_v52 = vpop.f32.mrf.mxu0  ;;  %4999 = vmatprep.mubr.msk.f32.mxu1 %vm378_vm1, %v4986_v49 }
 0x42c   :  { %1451 = vmatprep.subr.mxu1 %v6498_v0  ;;  %6051 = vmatpush3.msra.mxu0 %v5008_v39  ;;  %v5027_v39 = vld [vmem:[%s9931_s3 + $0x258] sm:$0xff] }
 0x42d   :  { %1452 = vmatpush1.msra.mxu1 %v6962_v27  ;;  %6052 = vmatprep.subr.mxu0 %v6498_v0 }
 0x42e   :  { %1453 = vmatprep.subr.mxu1 %v6498_v0  ;;  %6053 = vmatpush3.msra.mxu0 %v5007_v41  ;;  %v5026_v41 = vld [vmem:[%s9931_s3 + $0x250] sm:$0xff] }
 0x42f   :  { %1454 = vmatpush1.msra.mxu1 %v6967_v28  ;;  %6054 = vmatprep.subr.mxu0 %v6498_v0 }
 0x430   :  { %1455 = vmatprep.subr.mxu1 %v6498_v0  ;;  %6055 = vmatpush3.msra.mxu0 %v5006_v42  ;;  %v5029_v42 = vld [vmem:[%s9931_s3 + $0x268] sm:$0xff] }
 0x431   :  { %1456 = vmatpush1.msra.mxu1 %v6971_v2  ;;  %1685 = vmatprep.subr.mxu0 %v6498_v0 }
 0x432   :  { %1479 = vmatprep.subr.mxu1 %v6498_v0 }
 0x433   :  { %1480 = vmatpush2.msra.mxu1 %v6974_v30 }
 0x434   :  { %1481 = vmatprep.subr.mxu1 %v6498_v0 }
 0x435   :  { %1482 = vmatpush2.msra.mxu1 %v6983_v32 }
 0x436   :  { %1483 = vmatprep.subr.mxu1 %v6498_v0 }
 0x437   :  { %1484 = vmatpush2.msra.mxu1 %v6989_v34 }
 0x438   :  { %1485 = vmatprep.subr.mxu1 %v6498_v0 }
 0x439   :  { %1486 = vmatpush2.msra.mxu1 %v6993_v35 }
 0x43a   :  { %1487 = vmatprep.subr.mxu1 %v6498_v0 }
 0x43b   :  { %1488 = vmatpush2.msra.mxu1 %v6997_v36 }
 0x43c   :  { %1490 = vmatmul.mubr.f32.vlgmr.msra.gmra.mxu1 %v4985_v53  ;;  %6077 = vmatprep.subr.mxu1 %v6498_v0 }
 0x43d   :  { %5000 = vmatprep.mubr.msk.f32.mxu1 %vm378_vm1, %v4988_v55 }
 0x440   :  { %1495 = vmatmul.mubr.f32.gmra.mxu1 %v4987_v56 }
 0x441   :  { %5001 = vmatprep.mubr.msk.f32.mxu1 %vm378_vm1, %v4990_v57 }
 0x444   :  { %1500 = vmatmul.mubr.f32.gmra.mxu1 %v4989_v59 }
 0x445   :  { %5002 = vmatprep.mubr.msk.f32.mxu1 %vm378_vm1, %v4992_v60 }
 0x448   :  { %1505 = vmatmul.mubr.f32.gmra.mxu1 %v4991_v61 }
 0x449   :  { %5003 = vmatprep.mubr.msk.f32.mxu1 %vm378_vm1, %v4994_v3 }
 0x44c   :  { %1510 = vmatmul.mubr.f32.gmra.mxu1 %v4993_v5 }
 0x44d   :  { %5004 = vmatprep.mubr.msk.f32.mxu1 %vm378_vm1, %v4996_v11 }
 0x450   :  { %1515 = vmatmul.mubr.f32.gmra.mxu1 %v4995_v15 }
 0x451   :  { %5005 = vmatprep.mubr.msk.f32.mxu1 %vm378_vm1, %v4998_v18 }
 0x454   :  { %1520 = vmatmul.mubr.f32.gmra.mxu1 %v4997_v14 }
 0x455   :  { %6109 = vmatprep.mubr.msk.f32.mxu1 %vm6499_vm2, %v6498_v0 }
 0x4d2   :  { %v1348_v44 = vpop.f32.mrf.mxu1 }
 0x4d3   :  { %v7768_v45 = vadd.f32 %v1348_v44, %v7578_v1  ;;  %v5028_v44 = vld [vmem:[%s9931_s3 + $0x260] sm:$0xff] }
 0x4d4   :  { %v6005_v48 = vpop.f32.mrf.mxu1 }
 0x4d5   :  { %v5031_v48 = vld [vmem:[%s9931_s3 + $0x278] sm:$0xff] }
 0x4d6   :  { %v1353_v49 = vpop.f32.mrf.mxu1 }
 0x4d7   :  { %v7771_v51 = vadd.f32 %v1353_v49, %v7581_v9  ;;  %v5030_v49 = vld [vmem:[%s9931_s3 + $0x270] sm:$0xff] }
 0x4d8   :  { %v6008_v52 = vpop.f32.mrf.mxu1 }
 0x4d9   :  { %v5033_v52 = vld [vmem:[%s9931_s3 + $0x288] sm:$0xff] }
 0x4da   :  { %v1358_v53 = vpop.f32.mrf.mxu1 }
 0x4db   :  { %v7774_v55 = vadd.f32 %v1358_v53, %v7584_v16  ;;  %v5032_v53 = vld [vmem:[%s9931_s3 + $0x280] sm:$0xff] }
 0x4dc   :  { %v6011_v56 = vpop.f32.mrf.mxu1 }
 0x4dd   :  { %v5035_v56 = vld [vmem:[%s9931_s3 + $0x298] sm:$0xff] }
 0x4de   :  { %v1363_v57 = vpop.f32.mrf.mxu1 }
 0x4df   :  { %v7777_v59 = vadd.f32 %v1363_v57, %v7587_v20  ;;  %v5034_v57 = vld [vmem:[%s9931_s3 + $0x290] sm:$0xff] }
 0x4e0   :  { %v6014_v60 = vpop.f32.mrf.mxu1 }
 0x4e1   :  { %v5058_v60 = vld [vmem:[%s9932_s4 + $0x2f8] sm:$0xff] }
 0x4e2   :  { %v1368_v61 = vpop.f32.mrf.mxu1  ;;  %6078 = vmatpush3.msra.mxu1 %v5058_v60 }
 0x4e3   :  { %v7780_v1 = vadd.f32 %v1368_v61, %v7590_v10  ;;  %6079 = vmatprep.subr.mxu1 %v6498_v0  ;;  %v5057_v61 = vld [vmem:[%s9932_s4 + $0x2f0] sm:$0xff] }
 0x4e4   :  { %v6017_v3 = vpop.f32.mrf.mxu1  ;;  %6080 = vmatpush3.msra.mxu1 %v5057_v61 }
 0x4e5   :  { %6081 = vmatprep.subr.mxu1 %v6498_v0  ;;  %v5056_v3 = vld [vmem:[%s9932_s4 + $0x2e8] sm:$0xff] }
 0x4e6   :  { %v1373_v5 = vpop.f32.mrf.mxu1  ;;  %6082 = vmatpush3.msra.mxu1 %v5056_v3 }
 0x4e7   :  { %v7783_v9 = vadd.f32 %v1373_v5, %v7593_v6  ;;  %6083 = vmatprep.subr.mxu1 %v6498_v0  ;;  %v5055_v5 = vld [vmem:[%s9932_s4 + $0x2e0] sm:$0xff] }
 0x4e8   :  { %v6020_v11 = vpop.f32.mrf.mxu1  ;;  %6084 = vmatpush3.msra.mxu1 %v5055_v5 }
 0x4e9   :  { %6085 = vmatprep.subr.mxu1 %v6498_v0  ;;  %v5054_v11 = vld [vmem:[%s9932_s4 + $0x2d8] sm:$0xff] }
 0x4ea   :  { %v1378_v15 = vpop.f32.mrf.mxu1  ;;  %6086 = vmatpush3.msra.mxu1 %v5054_v11 }
 0x4eb   :  { %v7786_v16 = vadd.f32 %v1378_v15, %v7596_v63  ;;  %6087 = vmatprep.subr.mxu1 %v6498_v0  ;;  %v5053_v15 = vld [vmem:[%s9932_s4 + $0x2d0] sm:$0xff] }
 0x4ec   :  { %v6023_v18 = vpop.f32.mrf.mxu1  ;;  %6088 = vmatpush3.msra.mxu1 %v5053_v15 }
 0x4ed   :  { %6089 = vmatprep.subr.mxu1 %v6498_v0  ;;  %v5052_v18 = vld [vmem:[%s9932_s4 + $0x2c8] sm:$0xff] }
 0x4ee   :  { %6090 = vmatpush3.msra.mxu1 %v5052_v18 }
 0x4ef   :  { %6091 = vmatprep.subr.mxu1 %v6498_v0 }
 0x4fc   :  { %v1491_v14 = vpop.f32.mrf.mxu1 }
 0x4fd   :  { %6057 = vmatmul.mubr.f32.vlgmr.msra.gmra.mxu0 %v1491_v14  ;;  %v5051_v14 = vld [vmem:[%s9932_s4 + $0x2c0] sm:$0xff] }
 0x4fe   :  { %1686 = vmatpush1.msra.mxu0 %v6862_v46  ;;  %v1493_v20 = vpop.f32.mrf.mxu1  ;;  %6059 = vmatprep.mubr.msk.f32.mxu0 %vm6499_vm2, %v6498_v0 }
 0x4ff   :  { %1687 = vmatprep.subr.mxu0 %v6498_v0  ;;  %6092 = vmatpush3.msra.mxu1 %v5051_v14  ;;  %v5050_v20 = vld [vmem:[%s9932_s4 + $0x2b8] sm:$0xff]  ;;  %v5060_v14 = vld [vmem:[%s9931_s3 + $0x2a8] sm:$0xff] }
 0x500   :  { %1688 = vmatpush1.msra.mxu0 %v6871_v50  ;;  %v1496_v10 = vpop.f32.mrf.mxu1  ;;  %6093 = vmatprep.subr.mxu1 %v6498_v0 }
 0x501   :  { %1689 = vmatprep.subr.mxu0 %v6498_v0  ;;  %6060 = vmatmul.mubr.f32.gmra.mxu0 %v1496_v10  ;;  %v5049_v10 = vld [vmem:[%s9932_s4 + $0x2b0] sm:$0xff] }
 0x502   :  { %1690 = vmatpush1.msra.mxu0 %v6880_v54  ;;  %v1498_v6 = vpop.f32.mrf.mxu1  ;;  %6062 = vmatprep.mubr.msk.f32.mxu0 %vm6499_vm2, %v6498_v0 }
 0x503   :  { %1691 = vmatprep.subr.mxu0 %v6498_v0  ;;  %6094 = vmatpush3.msra.mxu1 %v5050_v20  ;;  %v5048_v6 = vld [vmem:[%s9932_s4 + $0x2a8] sm:$0xff] }
 0x504   :  { %1692 = vmatpush1.msra.mxu0 %v6892_v58  ;;  %v1501_v63 = vpop.f32.mrf.mxu1  ;;  %6095 = vmatprep.subr.mxu1 %v6498_v0 }
 0x505   :  { %1693 = vmatprep.subr.mxu0 %v6498_v0  ;;  %6063 = vmatmul.mubr.f32.gmra.mxu0 %v1501_v63  ;;  %v5047_v63 = vld [vmem:[%s9932_s4 + $0x2a0] sm:$0xff] }
 0x506   :  { %1694 = vmatpush1.msra.mxu0 %v6902_v62  ;;  %v1503_v12 = vpop.f32.mrf.mxu1  ;;  %6065 = vmatprep.mubr.msk.f32.mxu0 %vm6499_vm2, %v6498_v0 }
 0x507   :  { %1695 = vmatprep.subr.mxu0 %v6498_v0  ;;  %6096 = vmatpush3.msra.mxu1 %v5049_v10  ;;  %v5046_v12 = vld [vmem:[%s9932_s4 + $0x298] sm:$0xff] }
 0x508   :  { %1696 = vmatpush1.msra.mxu0 %v6912_v7  ;;  %v1506_v22 = vpop.f32.mrf.mxu1  ;;  %6097 = vmatprep.subr.mxu1 %v6498_v0 }
 0x509   :  { %1697 = vmatprep.subr.mxu0 %v6498_v0  ;;  %6066 = vmatmul.mubr.f32.gmra.mxu0 %v1506_v22  ;;  %v5045_v22 = vld [vmem:[%s9932_s4 + $0x290] sm:$0xff] }
 0x50a   :  { %1698 = vmatpush1.msra.mxu0 %v6919_v13  ;;  %v1508_v24 = vpop.f32.mrf.mxu1  ;;  %6068 = vmatprep.mubr.msk.f32.mxu0 %vm6499_vm2, %v6498_v0 }
 0x50b   :  { %1699 = vmatprep.subr.mxu0 %v6498_v0  ;;  %6098 = vmatpush3.msra.mxu1 %v5048_v6  ;;  %v5044_v24 = vld [vmem:[%s9932_s4 + $0x288] sm:$0xff]  ;;  %v5059_v6 = vld [vmem:[%s9931_s3 + $0x2a0] sm:$0xff] }
 0x50c   :  { %1700 = vmatpush1.msra.mxu0 %v6926_v17  ;;  %v1511_v25 = vpop.f32.mrf.mxu1  ;;  %6099 = vmatprep.subr.mxu1 %v6498_v0 }
 0x50d   :  { %1701 = vmatprep.subr.mxu0 %v6498_v0  ;;  %6069 = vmatmul.mubr.f32.gmra.mxu0 %v1511_v25  ;;  %v5043_v25 = vld [vmem:[%s9932_s4 + $0x280] sm:$0xff] }
 0x50e   :  { %1702 = vmatpush1.msra.mxu0 %v6932_v19  ;;  %v1513_v4 = vpop.f32.mrf.mxu1  ;;  %6071 = vmatprep.mubr.msk.f32.mxu0 %vm6499_vm2, %v6498_v0 }
 0x50f   :  { %1703 = vmatprep.subr.mxu0 %v6498_v0  ;;  %6100 = vmatpush3.msra.mxu1 %v5047_v63  ;;  %v5062_v63 = vld [vmem:[%s9931_s3 + $0x2b8] sm:$0xff] }
 0x510   :  { %1704 = vmatpush1.msra.mxu0 %v6938_v21  ;;  %v1516_v29 = vpop.f32.mrf.mxu1  ;;  %6101 = vmatprep.subr.mxu1 %v6498_v0 }
 0x511   :  { %1705 = vmatprep.subr.mxu0 %v6498_v0  ;;  %6072 = vmatmul.mubr.f32.gmra.mxu0 %v1516_v29 }
 0x512   :  { %1706 = vmatpush1.msra.mxu0 %v6944_v23  ;;  %v1518_v31 = vpop.f32.mrf.mxu1  ;;  %6074 = vmatprep.mubr.msk.f32.mxu0 %vm6499_vm2, %v6498_v0 }
 0x513   :  { %1707 = vmatprep.subr.mxu0 %v6498_v0  ;;  %6102 = vmatpush3.msra.mxu1 %v5046_v12  ;;  %v5061_v12 = vld [vmem:[%s9931_s3 + $0x2b0] sm:$0xff] }
 0x514   :  { %1708 = vmatpush1.msra.mxu0 %v6950_v8  ;;  %v1521_v37 = vpop.f32.mrf.mxu1  ;;  %6103 = vmatprep.subr.mxu1 %v6498_v0 }
 0x515   :  { %1709 = vmatprep.subr.mxu0 %v6498_v0  ;;  %6075 = vmatmul.mubr.f32.gmra.mxu0 %v1521_v37 }
 0x516   :  { %1710 = vmatpush1.msra.mxu0 %v6956_v26  ;;  %v1523_v40 = vpop.f32.mrf.mxu1  ;;  %5036 = vmatprep.mubr.msk.f32.mxu0 %vm378_vm1, %v5023_v33 }
 0x517   :  { %1711 = vmatprep.subr.mxu0 %v6498_v0  ;;  %6104 = vmatpush3.msra.mxu1 %v5045_v22  ;;  %v5064_v22 = vld [vmem:[%s9931_s3 + $0x2c8] sm:$0xff] }
 0x518   :  { %1712 = vmatpush1.msra.mxu0 %v6962_v27  ;;  %6105 = vmatprep.subr.mxu1 %v6498_v0 }
 0x519   :  { %1713 = vmatprep.subr.mxu0 %v6498_v0  ;;  %6106 = vmatpush3.msra.mxu1 %v5044_v24  ;;  %v5063_v24 = vld [vmem:[%s9931_s3 + $0x2c0] sm:$0xff] }
 0x51a   :  { %1714 = vmatpush1.msra.mxu0 %v6967_v28  ;;  %6107 = vmatprep.subr.mxu1 %v6498_v0 }
 0x51b   :  { %1715 = vmatprep.subr.mxu0 %v6498_v0  ;;  %6108 = vmatpush3.msra.mxu1 %v5043_v25  ;;  %v5066_v25 = vld [vmem:[%s9931_s3 + $0x2d8] sm:$0xff] }
 0x51c   :  { %1716 = vmatpush1.msra.mxu0 %v6971_v2  ;;  %1945 = vmatprep.subr.mxu1 %v6498_v0 }
 0x51d   :  { %1739 = vmatprep.subr.mxu0 %v6498_v0 }
 0x51e   :  { %1740 = vmatpush2.msra.mxu0 %v6974_v30 }
 0x51f   :  { %1741 = vmatprep.subr.mxu0 %v6498_v0 }
 0x520   :  { %1742 = vmatpush2.msra.mxu0 %v6983_v32 }
 0x521   :  { %1743 = vmatprep.subr.mxu0 %v6498_v0 }
 0x522   :  { %1744 = vmatpush2.msra.mxu0 %v6989_v34 }
 0x523   :  { %1745 = vmatprep.subr.mxu0 %v6498_v0 }
 0x524   :  { %1746 = vmatpush2.msra.mxu0 %v6993_v35 }
 0x525   :  { %1747 = vmatprep.subr.mxu0 %v6498_v0 }
 0x526   :  { %1748 = vmatpush2.msra.mxu0 %v6997_v36 }
 0x527   :  { %1750 = vmatmul.mubr.f32.vlgmr.msra.gmra.mxu0 %v5022_v43  ;;  %6130 = vmatprep.subr.mxu0 %v6498_v0 }
 0x528   :  { %5037 = vmatprep.mubr.msk.f32.mxu0 %vm378_vm1, %v5025_v47 }
 0x52b   :  { %1755 = vmatmul.mubr.f32.gmra.mxu0 %v5024_v38 }
 0x52c   :  { %5038 = vmatprep.mubr.msk.f32.mxu0 %vm378_vm1, %v5027_v39 }
 0x52f   :  { %1760 = vmatmul.mubr.f32.gmra.mxu0 %v5026_v41 }
 0x530   :  { %5039 = vmatprep.mubr.msk.f32.mxu0 %vm378_vm1, %v5029_v42 }
 0x533   :  { %1765 = vmatmul.mubr.f32.gmra.mxu0 %v5028_v44 }
 0x534   :  { %5040 = vmatprep.mubr.msk.f32.mxu0 %vm378_vm1, %v5031_v48 }
 0x537   :  { %1770 = vmatmul.mubr.f32.gmra.mxu0 %v5030_v49 }
 0x538   :  { %5041 = vmatprep.mubr.msk.f32.mxu0 %vm378_vm1, %v5033_v52 }
 0x53b   :  { %1775 = vmatmul.mubr.f32.gmra.mxu0 %v5032_v53 }
 0x53c   :  { %5042 = vmatprep.mubr.msk.f32.mxu0 %vm378_vm1, %v5035_v56 }
 0x53f   :  { %1780 = vmatmul.mubr.f32.gmra.mxu0 %v5034_v57 }
 0x540   :  { %6162 = vmatprep.mubr.msk.f32.mxu0 %vm6499_vm2, %v6498_v0 }
 0x5bd   :  { %v1608_v4 = vpop.f32.mrf.mxu0 }
 0x5be   :  { %v7958_v29 = vadd.f32 %v1608_v4, %v7768_v45  ;;  %v5065_v4 = vld [vmem:[%s9931_s3 + $0x2d0] sm:$0xff] }
 0x5bf   :  { %v6058_v31 = vpop.f32.mrf.mxu0 }
 0x5c0   :  { %v5068_v31 = vld [vmem:[%s9931_s3 + $0x2e8] sm:$0xff] }
 0x5c1   :  { %v1613_v33 = vpop.f32.mrf.mxu0 }
 0x5c2   :  { %v7961_v37 = vadd.f32 %v1613_v33, %v7771_v51  ;;  %v5067_v33 = vld [vmem:[%s9931_s3 + $0x2e0] sm:$0xff] }
 0x5c3   :  { %v6061_v40 = vpop.f32.mrf.mxu0 }
 0x5c4   :  { %v5070_v40 = vld [vmem:[%s9931_s3 + $0x2f8] sm:$0xff] }
 0x5c5   :  { %v1618_v43 = vpop.f32.mrf.mxu0 }
 0x5c6   :  { %v7964_v47 = vadd.f32 %v1618_v43, %v7774_v55  ;;  %v5069_v43 = vld [vmem:[%s9931_s3 + $0x2f0] sm:$0xff] }
 0x5c7   :  { %v6064_v38 = vpop.f32.mrf.mxu0 }
 0x5c8   :  { %v5072_v38 = vld [vmem:[%s9931_s3 + $0x308] sm:$0xff] }
 0x5c9   :  { %v1623_v39 = vpop.f32.mrf.mxu0 }
 0x5ca   :  { %v7967_v41 = vadd.f32 %v1623_v39, %v7777_v59  ;;  %v5071_v39 = vld [vmem:[%s9931_s3 + $0x300] sm:$0xff] }
 0x5cb   :  { %v6067_v42 = vpop.f32.mrf.mxu0 }
 0x5cc   :  { %v5095_v42 = vld [vmem:[%s9932_s4 + $0x378] sm:$0xff] }
 0x5cd   :  { %v1628_v44 = vpop.f32.mrf.mxu0  ;;  %6131 = vmatpush3.msra.mxu0 %v5095_v42 }
 0x5ce   :  { %v7970_v45 = vadd.f32 %v1628_v44, %v7780_v1  ;;  %6132 = vmatprep.subr.mxu0 %v6498_v0  ;;  %v5094_v44 = vld [vmem:[%s9932_s4 + $0x370] sm:$0xff] }
 0x5cf   :  { %v6070_v48 = vpop.f32.mrf.mxu0  ;;  %6133 = vmatpush3.msra.mxu0 %v5094_v44 }
 0x5d0   :  { %6134 = vmatprep.subr.mxu0 %v6498_v0  ;;  %v5093_v48 = vld [vmem:[%s9932_s4 + $0x368] sm:$0xff] }
 0x5d1   :  { %v1633_v49 = vpop.f32.mrf.mxu0  ;;  %6135 = vmatpush3.msra.mxu0 %v5093_v48 }
 0x5d2   :  { %v7973_v51 = vadd.f32 %v1633_v49, %v7783_v9  ;;  %6136 = vmatprep.subr.mxu0 %v6498_v0  ;;  %v5092_v49 = vld [vmem:[%s9932_s4 + $0x360] sm:$0xff] }
 0x5d3   :  { %v6073_v52 = vpop.f32.mrf.mxu0  ;;  %6137 = vmatpush3.msra.mxu0 %v5092_v49 }
 0x5d4   :  { %6138 = vmatprep.subr.mxu0 %v6498_v0  ;;  %v5091_v52 = vld [vmem:[%s9932_s4 + $0x358] sm:$0xff] }
 0x5d5   :  { %v1638_v53 = vpop.f32.mrf.mxu0  ;;  %6139 = vmatpush3.msra.mxu0 %v5091_v52 }
 0x5d6   :  { %v7976_v55 = vadd.f32 %v1638_v53, %v7786_v16  ;;  %6140 = vmatprep.subr.mxu0 %v6498_v0  ;;  %v5090_v53 = vld [vmem:[%s9932_s4 + $0x350] sm:$0xff] }
 0x5d7   :  { %v6076_v56 = vpop.f32.mrf.mxu0  ;;  %6141 = vmatpush3.msra.mxu0 %v5090_v53 }
 0x5d8   :  { %6142 = vmatprep.subr.mxu0 %v6498_v0  ;;  %v5089_v56 = vld [vmem:[%s9932_s4 + $0x348] sm:$0xff] }
 0x5d9   :  { %6143 = vmatpush3.msra.mxu0 %v5089_v56 }
 0x5da   :  { %6144 = vmatprep.subr.mxu0 %v6498_v0 }
 0x5e7   :  { %v1751_v57 = vpop.f32.mrf.mxu0 }
 0x5e8   :  { %6110 = vmatmul.mubr.f32.vlgmr.msra.gmra.mxu1 %v1751_v57  ;;  %v5088_v57 = vld [vmem:[%s9932_s4 + $0x340] sm:$0xff] }
 0x5e9   :  { %1946 = vmatpush1.msra.mxu1 %v6862_v46  ;;  %v1753_v59 = vpop.f32.mrf.mxu0  ;;  %6112 = vmatprep.mubr.msk.f32.mxu1 %vm6499_vm2, %v6498_v0 }
 0x5ea   :  { %1947 = vmatprep.subr.mxu1 %v6498_v0  ;;  %6145 = vmatpush3.msra.mxu0 %v5088_v57  ;;  %v5087_v59 = vld [vmem:[%s9932_s4 + $0x338] sm:$0xff] }
 0x5eb   :  { %1948 = vmatpush1.msra.mxu1 %v6871_v50  ;;  %v1756_v1 = vpop.f32.mrf.mxu0  ;;  %6146 = vmatprep.subr.mxu0 %v6498_v0  ;;  %v5097_v57 = vld [vmem:[%s9931_s3 + $0x318] sm:$0xff] }
 0x5ec   :  { %1949 = vmatprep.subr.mxu1 %v6498_v0  ;;  %6113 = vmatmul.mubr.f32.gmra.mxu1 %v1756_v1  ;;  %v5086_v1 = vld [vmem:[%s9932_s4 + $0x330] sm:$0xff] }
 0x5ed   :  { %1950 = vmatpush1.msra.mxu1 %v6880_v54  ;;  %v1758_v9 = vpop.f32.mrf.mxu0  ;;  %6115 = vmatprep.mubr.msk.f32.mxu1 %vm6499_vm2, %v6498_v0 }
 0x5ee   :  { %1951 = vmatprep.subr.mxu1 %v6498_v0  ;;  %6147 = vmatpush3.msra.mxu0 %v5087_v59  ;;  %v5085_v9 = vld [vmem:[%s9932_s4 + $0x328] sm:$0xff] }
 0x5ef   :  { %1952 = vmatpush1.msra.mxu1 %v6892_v58  ;;  %v1761_v16 = vpop.f32.mrf.mxu0  ;;  %6148 = vmatprep.subr.mxu0 %v6498_v0 }
 0x5f0   :  { %1953 = vmatprep.subr.mxu1 %v6498_v0  ;;  %6116 = vmatmul.mubr.f32.gmra.mxu1 %v1761_v16  ;;  %v5084_v16 = vld [vmem:[%s9932_s4 + $0x320] sm:$0xff] }
 0x5f1   :  { %1954 = vmatpush1.msra.mxu1 %v6902_v62  ;;  %v1763_v60 = vpop.f32.mrf.mxu0  ;;  %6118 = vmatprep.mubr.msk.f32.mxu1 %vm6499_vm2, %v6498_v0 }
 0x5f2   :  { %1955 = vmatprep.subr.mxu1 %v6498_v0  ;;  %6149 = vmatpush3.msra.mxu0 %v5086_v1  ;;  %v5083_v60 = vld [vmem:[%s9932_s4 + $0x318] sm:$0xff] }
 0x5f3   :  { %1956 = vmatpush1.msra.mxu1 %v6912_v7  ;;  %v1766_v61 = vpop.f32.mrf.mxu0  ;;  %6150 = vmatprep.subr.mxu0 %v6498_v0 }
 0x5f4   :  { %1957 = vmatprep.subr.mxu1 %v6498_v0  ;;  %6119 = vmatmul.mubr.f32.gmra.mxu1 %v1766_v61  ;;  %v5082_v61 = vld [vmem:[%s9932_s4 + $0x310] sm:$0xff] }
 0x5f5   :  { %1958 = vmatpush1.msra.mxu1 %v6919_v13  ;;  %v1768_v3 = vpop.f32.mrf.mxu0  ;;  %6121 = vmatprep.mubr.msk.f32.mxu1 %vm6499_vm2, %v6498_v0 }
 0x5f6   :  { %1959 = vmatprep.subr.mxu1 %v6498_v0  ;;  %6151 = vmatpush3.msra.mxu0 %v5085_v9  ;;  %v5081_v3 = vld [vmem:[%s9932_s4 + $0x308] sm:$0xff]  ;;  %v5096_v9 = vld [vmem:[%s9931_s3 + $0x310] sm:$0xff] }
 0x5f7   :  { %1960 = vmatpush1.msra.mxu1 %v6926_v17  ;;  %v1771_v5 = vpop.f32.mrf.mxu0  ;;  %6152 = vmatprep.subr.mxu0 %v6498_v0 }
 0x5f8   :  { %1961 = vmatprep.subr.mxu1 %v6498_v0  ;;  %6122 = vmatmul.mubr.f32.gmra.mxu1 %v1771_v5  ;;  %v5080_v5 = vld [vmem:[%s9932_s4 + $0x300] sm:$0xff] }
 0x5f9   :  { %1962 = vmatpush1.msra.mxu1 %v6932_v19  ;;  %v1773_v11 = vpop.f32.mrf.mxu0  ;;  %6124 = vmatprep.mubr.msk.f32.mxu1 %vm6499_vm2, %v6498_v0 }
 0x5fa   :  { %1963 = vmatprep.subr.mxu1 %v6498_v0  ;;  %6153 = vmatpush3.msra.mxu0 %v5084_v16  ;;  %v5099_v16 = vld [vmem:[%s9931_s3 + $0x328] sm:$0xff] }
 0x5fb   :  { %1964 = vmatpush1.msra.mxu1 %v6938_v21  ;;  %v1776_v15 = vpop.f32.mrf.mxu0  ;;  %6154 = vmatprep.subr.mxu0 %v6498_v0 }
 0x5fc   :  { %1965 = vmatprep.subr.mxu1 %v6498_v0  ;;  %6125 = vmatmul.mubr.f32.gmra.mxu1 %v1776_v15 }
 0x5fd   :  { %1966 = vmatpush1.msra.mxu1 %v6944_v23  ;;  %v1778_v18 = vpop.f32.mrf.mxu0  ;;  %6127 = vmatprep.mubr.msk.f32.mxu1 %vm6499_vm2, %v6498_v0 }
 0x5fe   :  { %1967 = vmatprep.subr.mxu1 %v6498_v0  ;;  %6155 = vmatpush3.msra.mxu0 %v5083_v60  ;;  %v5098_v60 = vld [vmem:[%s9931_s3 + $0x320] sm:$0xff] }
 0x5ff   :  { %1968 = vmatpush1.msra.mxu1 %v6950_v8  ;;  %v1781_v20 = vpop.f32.mrf.mxu0  ;;  %6156 = vmatprep.subr.mxu0 %v6498_v0 }
 0x600   :  { %1969 = vmatprep.subr.mxu1 %v6498_v0  ;;  %6128 = vmatmul.mubr.f32.gmra.mxu1 %v1781_v20 }
 0x601   :  { %1970 = vmatpush1.msra.mxu1 %v6956_v26  ;;  %v1783_v10 = vpop.f32.mrf.mxu0  ;;  %5073 = vmatprep.mubr.msk.f32.mxu1 %vm378_vm1, %v5060_v14 }
 0x602   :  { %1971 = vmatprep.subr.mxu1 %v6498_v0  ;;  %6157 = vmatpush3.msra.mxu0 %v5082_v61  ;;  %v5101_v61 = vld [vmem:[%s9931_s3 + $0x338] sm:$0xff] }
 0x603   :  { %1972 = vmatpush1.msra.mxu1 %v6962_v27  ;;  %6158 = vmatprep.subr.mxu0 %v6498_v0 }
 0x604   :  { %1973 = vmatprep.subr.mxu1 %v6498_v0  ;;  %6159 = vmatpush3.msra.mxu0 %v5081_v3  ;;  %v5100_v3 = vld [vmem:[%s9931_s3 + $0x330] sm:$0xff] }
 0x605   :  { %1974 = vmatpush1.msra.mxu1 %v6967_v28  ;;  %6160 = vmatprep.subr.mxu0 %v6498_v0 }
 0x606   :  { %1975 = vmatprep.subr.mxu1 %v6498_v0  ;;  %6161 = vmatpush3.msra.mxu0 %v5080_v5  ;;  %v5103_v5 = vld [vmem:[%s9931_s3 + $0x348] sm:$0xff] }
 0x607   :  { %1976 = vmatpush1.msra.mxu1 %v6971_v2  ;;  %2205 = vmatprep.subr.mxu0 %v6498_v0 }
 0x608   :  { %1999 = vmatprep.subr.mxu1 %v6498_v0 }
 0x609   :  { %2000 = vmatpush2.msra.mxu1 %v6974_v30 }
 0x60a   :  { %2001 = vmatprep.subr.mxu1 %v6498_v0 }
 0x60b   :  { %2002 = vmatpush2.msra.mxu1 %v6983_v32 }
 0x60c   :  { %2003 = vmatprep.subr.mxu1 %v6498_v0 }
 0x60d   :  { %2004 = vmatpush2.msra.mxu1 %v6989_v34 }
 0x60e   :  { %2005 = vmatprep.subr.mxu1 %v6498_v0 }
 0x60f   :  { %2006 = vmatpush2.msra.mxu1 %v6993_v35 }
 0x610   :  { %2007 = vmatprep.subr.mxu1 %v6498_v0 }
 0x611   :  { %2008 = vmatpush2.msra.mxu1 %v6997_v36 }
 0x612   :  { %2010 = vmatmul.mubr.f32.vlgmr.msra.gmra.mxu1 %v5059_v6  ;;  %6183 = vmatprep.subr.mxu1 %v6498_v0 }
 0x613   :  { %5074 = vmatprep.mubr.msk.f32.mxu1 %vm378_vm1, %v5062_v63 }
 0x616   :  { %2015 = vmatmul.mubr.f32.gmra.mxu1 %v5061_v12 }
 0x617   :  { %5075 = vmatprep.mubr.msk.f32.mxu1 %vm378_vm1, %v5064_v22 }
 0x61a   :  { %2020 = vmatmul.mubr.f32.gmra.mxu1 %v5063_v24 }
 0x61b   :  { %5076 = vmatprep.mubr.msk.f32.mxu1 %vm378_vm1, %v5066_v25 }
 0x61e   :  { %2025 = vmatmul.mubr.f32.gmra.mxu1 %v5065_v4 }
 0x61f   :  { %5077 = vmatprep.mubr.msk.f32.mxu1 %vm378_vm1, %v5068_v31 }
 0x622   :  { %2030 = vmatmul.mubr.f32.gmra.mxu1 %v5067_v33 }
 0x623   :  { %5078 = vmatprep.mubr.msk.f32.mxu1 %vm378_vm1, %v5070_v40 }
 0x626   :  { %2035 = vmatmul.mubr.f32.gmra.mxu1 %v5069_v43 }
 0x627   :  { %5079 = vmatprep.mubr.msk.f32.mxu1 %vm378_vm1, %v5072_v38 }
 0x62a   :  { %2040 = vmatmul.mubr.f32.gmra.mxu1 %v5071_v39 }
 0x62b   :  { %6215 = vmatprep.mubr.msk.f32.mxu1 %vm6499_vm2, %v6498_v0 }
 0x6a8   :  { %v1868_v11 = vpop.f32.mrf.mxu1 }
 0x6a9   :  { %v8148_v15 = vadd.f32 %v1868_v11, %v7958_v29  ;;  %v5102_v11 = vld [vmem:[%s9931_s3 + $0x340] sm:$0xff] }
 0x6aa   :  { %v6111_v18 = vpop.f32.mrf.mxu1 }
 0x6ab   :  { %v5105_v18 = vld [vmem:[%s9931_s3 + $0x358] sm:$0xff] }
 0x6ac   :  { %v1873_v14 = vpop.f32.mrf.mxu1 }
 0x6ad   :  { %v8151_v20 = vadd.f32 %v1873_v14, %v7961_v37  ;;  %v5104_v14 = vld [vmem:[%s9931_s3 + $0x350] sm:$0xff] }
 0x6ae   :  { %v6114_v10 = vpop.f32.mrf.mxu1 }
 0x6af   :  { %v5107_v10 = vld [vmem:[%s9931_s3 + $0x368] sm:$0xff] }
 0x6b0   :  { %v1878_v6 = vpop.f32.mrf.mxu1 }
 0x6b1   :  { %v8154_v63 = vadd.f32 %v1878_v6, %v7964_v47  ;;  %v5106_v6 = vld [vmem:[%s9931_s3 + $0x360] sm:$0xff] }
 0x6b2   :  { %v6117_v12 = vpop.f32.mrf.mxu1 }
 0x6b3   :  { %v5109_v12 = vld [vmem:[%s9931_s3 + $0x378] sm:$0xff] }
 0x6b4   :  { %v1883_v22 = vpop.f32.mrf.mxu1 }
 0x6b5   :  { %v8157_v24 = vadd.f32 %v1883_v22, %v7967_v41  ;;  %v5108_v22 = vld [vmem:[%s9931_s3 + $0x370] sm:$0xff] }
 0x6b6   :  { %v6120_v25 = vpop.f32.mrf.mxu1 }
 0x6b7   :  { %v5132_v25 = vld [vmem:[%s9932_s4 + $0x3f8] sm:$0xff] }
 0x6b8   :  { %v1888_v4 = vpop.f32.mrf.mxu1  ;;  %6184 = vmatpush3.msra.mxu1 %v5132_v25  ;;  %v5146_v25 = vld [vmem:[%s9931_s3 + $0x3e8] sm:$0xff] }
 0x6b9   :  { %v8160_v29 = vadd.f32 %v1888_v4, %v7970_v45  ;;  %6185 = vmatprep.subr.mxu1 %v6498_v0  ;;  %v5131_v4 = vld [vmem:[%s9932_s4 + $0x3f0] sm:$0xff] }
 0x6ba   :  { %v6123_v31 = vpop.f32.mrf.mxu1  ;;  %6186 = vmatpush3.msra.mxu1 %v5131_v4  ;;  %v5145_v4 = vld [vmem:[%s9931_s3 + $0x3e0] sm:$0xff] }
 0x6bb   :  { %6187 = vmatprep.subr.mxu1 %v6498_v0  ;;  %v5130_v31 = vld [vmem:[%s9932_s4 + $0x3e8] sm:$0xff] }
 0x6bc   :  { %v1893_v33 = vpop.f32.mrf.mxu1  ;;  %6188 = vmatpush3.msra.mxu1 %v5130_v31  ;;  %v5169_v31 = vld [vmem:[%s9932_s4 + $0x478] sm:$0xff] }
 0x6bd   :  { %v8163_v37 = vadd.f32 %v1893_v33, %v7973_v51  ;;  %6189 = vmatprep.subr.mxu1 %v6498_v0  ;;  %v5129_v33 = vld [vmem:[%s9932_s4 + $0x3e0] sm:$0xff] }
 0x6be   :  { %v6126_v40 = vpop.f32.mrf.mxu1  ;;  %6190 = vmatpush3.msra.mxu1 %v5129_v33  ;;  %v5168_v33 = vld [vmem:[%s9932_s4 + $0x470] sm:$0xff] }
 0x6bf   :  { %6191 = vmatprep.subr.mxu1 %v6498_v0  ;;  %v5128_v40 = vld [vmem:[%s9932_s4 + $0x3d8] sm:$0xff] }
 0x6c0   :  { %v1898_v43 = vpop.f32.mrf.mxu1  ;;  %6192 = vmatpush3.msra.mxu1 %v5128_v40  ;;  %v5167_v40 = vld [vmem:[%s9932_s4 + $0x468] sm:$0xff] }
 0x6c1   :  { %v8166_v47 = vadd.f32 %v1898_v43, %v7976_v55  ;;  %6193 = vmatprep.subr.mxu1 %v6498_v0  ;;  %v5127_v43 = vld [vmem:[%s9932_s4 + $0x3d0] sm:$0xff] }
 0x6c2   :  { %v6129_v38 = vpop.f32.mrf.mxu1  ;;  %6194 = vmatpush3.msra.mxu1 %v5127_v43  ;;  %v5166_v43 = vld [vmem:[%s9932_s4 + $0x460] sm:$0xff] }
 0x6c3   :  { %6195 = vmatprep.subr.mxu1 %v6498_v0  ;;  %v5126_v38 = vld [vmem:[%s9932_s4 + $0x3c8] sm:$0xff] }
 0x6c4   :  { %6196 = vmatpush3.msra.mxu1 %v5126_v38  ;;  %v5165_v38 = vld [vmem:[%s9932_s4 + $0x458] sm:$0xff] }
 0x6c5   :  { %6197 = vmatprep.subr.mxu1 %v6498_v0 }
 0x6d2   :  { %v2011_v39 = vpop.f32.mrf.mxu1 }
 0x6d3   :  { %6163 = vmatmul.mubr.f32.vlgmr.msra.gmra.mxu0 %v2011_v39  ;;  %v5125_v39 = vld [vmem:[%s9932_s4 + $0x3c0] sm:$0xff] }
 0x6d4   :  { %2206 = vmatpush1.msra.mxu0 %v6862_v46  ;;  %v2013_v41 = vpop.f32.mrf.mxu1  ;;  %6165 = vmatprep.mubr.msk.f32.mxu0 %vm6499_vm2, %v6498_v0 }
 0x6d5   :  { %2207 = vmatprep.subr.mxu0 %v6498_v0  ;;  %6198 = vmatpush3.msra.mxu1 %v5125_v39  ;;  %v5124_v41 = vld [vmem:[%s9932_s4 + $0x3b8] sm:$0xff]  ;;  %v5164_v39 = vld [vmem:[%s9932_s4 + $0x450] sm:$0xff] }
 0x6d6   :  { %2208 = vmatpush1.msra.mxu0 %v6871_v50  ;;  %v2016_v45 = vpop.f32.mrf.mxu1  ;;  %6199 = vmatprep.subr.mxu1 %v6498_v0 }
 0x6d7   :  { %2209 = vmatprep.subr.mxu0 %v6498_v0  ;;  %6166 = vmatmul.mubr.f32.gmra.mxu0 %v2016_v45  ;;  %v5123_v45 = vld [vmem:[%s9932_s4 + $0x3b0] sm:$0xff] }
 0x6d8   :  { %2210 = vmatpush1.msra.mxu0 %v6880_v54  ;;  %v2018_v51 = vpop.f32.mrf.mxu1  ;;  %6168 = vmatprep.mubr.msk.f32.mxu0 %vm6499_vm2, %v6498_v0 }
 0x6d9   :  { %2211 = vmatprep.subr.mxu0 %v6498_v0  ;;  %6200 = vmatpush3.msra.mxu1 %v5124_v41  ;;  %v5122_v51 = vld [vmem:[%s9932_s4 + $0x3a8] sm:$0xff] }
 0x6da   :  { %2212 = vmatpush1.msra.mxu0 %v6892_v58  ;;  %v2021_v55 = vpop.f32.mrf.mxu1  ;;  %6201 = vmatprep.subr.mxu1 %v6498_v0  ;;  %v5163_v41 = vld [vmem:[%s9932_s4 + $0x448] sm:$0xff] }
 0x6db   :  { %2213 = vmatprep.subr.mxu0 %v6498_v0  ;;  %6169 = vmatmul.mubr.f32.gmra.mxu0 %v2021_v55  ;;  %v5121_v55 = vld [vmem:[%s9932_s4 + $0x3a0] sm:$0xff] }
 0x6dc   :  { %2214 = vmatpush1.msra.mxu0 %v6902_v62  ;;  %v2023_v42 = vpop.f32.mrf.mxu1  ;;  %6171 = vmatprep.mubr.msk.f32.mxu0 %vm6499_vm2, %v6498_v0 }
 0x6dd   :  { %2215 = vmatprep.subr.mxu0 %v6498_v0  ;;  %6202 = vmatpush3.msra.mxu1 %v5123_v45  ;;  %v5120_v42 = vld [vmem:[%s9932_s4 + $0x398] sm:$0xff]  ;;  %v5162_v45 = vld [vmem:[%s9932_s4 + $0x440] sm:$0xff] }
 0x6de   :  { %2216 = vmatpush1.msra.mxu0 %v6912_v7  ;;  %v2026_v44 = vpop.f32.mrf.mxu1  ;;  %6203 = vmatprep.subr.mxu1 %v6498_v0 }
 0x6df   :  { %2217 = vmatprep.subr.mxu0 %v6498_v0  ;;  %6172 = vmatmul.mubr.f32.gmra.mxu0 %v2026_v44  ;;  %v5119_v44 = vld [vmem:[%s9932_s4 + $0x390] sm:$0xff] }
 0x6e0   :  { %2218 = vmatpush1.msra.mxu0 %v6919_v13  ;;  %v2028_v48 = vpop.f32.mrf.mxu1  ;;  %6174 = vmatprep.mubr.msk.f32.mxu0 %vm6499_vm2, %v6498_v0 }
 0x6e1   :  { %2219 = vmatprep.subr.mxu0 %v6498_v0  ;;  %6204 = vmatpush3.msra.mxu1 %v5122_v51  ;;  %v5118_v48 = vld [vmem:[%s9932_s4 + $0x388] sm:$0xff]  ;;  %v5161_v51 = vld [vmem:[%s9932_s4 + $0x438] sm:$0xff] }
 0x6e2   :  { %2220 = vmatpush1.msra.mxu0 %v6926_v17  ;;  %v2031_v49 = vpop.f32.mrf.mxu1  ;;  %6205 = vmatprep.subr.mxu1 %v6498_v0 }
 0x6e3   :  { %2221 = vmatprep.subr.mxu0 %v6498_v0  ;;  %6175 = vmatmul.mubr.f32.gmra.mxu0 %v2031_v49  ;;  %v5117_v49 = vld [vmem:[%s9932_s4 + $0x380] sm:$0xff] }
 0x6e4   :  { %2222 = vmatpush1.msra.mxu0 %v6932_v19  ;;  %v2033_v52 = vpop.f32.mrf.mxu1  ;;  %6177 = vmatprep.mubr.msk.f32.mxu0 %vm6499_vm2, %v6498_v0 }
 0x6e5   :  { %2223 = vmatprep.subr.mxu0 %v6498_v0  ;;  %6206 = vmatpush3.msra.mxu1 %v5121_v55  ;;  %v5160_v55 = vld [vmem:[%s9932_s4 + $0x430] sm:$0xff] }
 0x6e6   :  { %2224 = vmatpush1.msra.mxu0 %v6938_v21  ;;  %v2036_v53 = vpop.f32.mrf.mxu1  ;;  %6207 = vmatprep.subr.mxu1 %v6498_v0 }
 0x6e7   :  { %2225 = vmatprep.subr.mxu0 %v6498_v0  ;;  %6178 = vmatmul.mubr.f32.gmra.mxu0 %v2036_v53 }
 0x6e8   :  { %2226 = vmatpush1.msra.mxu0 %v6944_v23  ;;  %v2038_v56 = vpop.f32.mrf.mxu1  ;;  %6180 = vmatprep.mubr.msk.f32.mxu0 %vm6499_vm2, %v6498_v0 }
 0x6e9   :  { %2227 = vmatprep.subr.mxu0 %v6498_v0  ;;  %6208 = vmatpush3.msra.mxu1 %v5120_v42  ;;  %v5159_v42 = vld [vmem:[%s9932_s4 + $0x428] sm:$0xff] }
 0x6ea   :  { %2228 = vmatpush1.msra.mxu0 %v6950_v8  ;;  %v2041_v59 = vpop.f32.mrf.mxu1  ;;  %6209 = vmatprep.subr.mxu1 %v6498_v0 }
 0x6eb   :  { %2229 = vmatprep.subr.mxu0 %v6498_v0  ;;  %6181 = vmatmul.mubr.f32.gmra.mxu0 %v2041_v59 }
 0x6ec   :  { %2230 = vmatpush1.msra.mxu0 %v6956_v26  ;;  %v2043_v1 = vpop.f32.mrf.mxu1  ;;  %5110 = vmatprep.mubr.msk.f32.mxu0 %vm378_vm1, %v5097_v57 }
 0x6ed   :  { %2231 = vmatprep.subr.mxu0 %v6498_v0  ;;  %6210 = vmatpush3.msra.mxu1 %v5119_v44  ;;  %v5158_v44 = vld [vmem:[%s9932_s4 + $0x420] sm:$0xff] }
 0x6ee   :  { %2232 = vmatpush1.msra.mxu0 %v6962_v27  ;;  %6211 = vmatprep.subr.mxu1 %v6498_v0 }
 0x6ef   :  { %2233 = vmatprep.subr.mxu0 %v6498_v0  ;;  %6212 = vmatpush3.msra.mxu1 %v5118_v48  ;;  %v5157_v48 = vld [vmem:[%s9932_s4 + $0x418] sm:$0xff] }
 0x6f0   :  { %2234 = vmatpush1.msra.mxu0 %v6967_v28  ;;  %6213 = vmatprep.subr.mxu1 %v6498_v0 }
 0x6f1   :  { %2235 = vmatprep.subr.mxu0 %v6498_v0  ;;  %6214 = vmatpush3.msra.mxu1 %v5117_v49  ;;  %v5156_v49 = vld [vmem:[%s9932_s4 + $0x410] sm:$0xff] }
 0x6f2   :  { %2236 = vmatpush1.msra.mxu0 %v6971_v2  ;;  %2465 = vmatprep.subr.mxu1 %v6498_v0 }
 0x6f3   :  { %2259 = vmatprep.subr.mxu0 %v6498_v0 }
 0x6f4   :  { %2260 = vmatpush2.msra.mxu0 %v6974_v30 }
 0x6f5   :  { %2261 = vmatprep.subr.mxu0 %v6498_v0 }
 0x6f6   :  { %2262 = vmatpush2.msra.mxu0 %v6983_v32 }
 0x6f7   :  { %2263 = vmatprep.subr.mxu0 %v6498_v0 }
 0x6f8   :  { %2264 = vmatpush2.msra.mxu0 %v6989_v34 }
 0x6f9   :  { %2265 = vmatprep.subr.mxu0 %v6498_v0 }
 0x6fa   :  { %2266 = vmatpush2.msra.mxu0 %v6993_v35 }
 0x6fb   :  { %2267 = vmatprep.subr.mxu0 %v6498_v0 }
 0x6fc   :  { %2268 = vmatpush2.msra.mxu0 %v6997_v36 }
 0x6fd   :  { %2270 = vmatmul.mubr.f32.vlgmr.msra.gmra.mxu0 %v5096_v9  ;;  %6236 = vmatprep.subr.mxu0 %v6498_v0 }
 0x6fe   :  { %5111 = vmatprep.mubr.msk.f32.mxu0 %vm378_vm1, %v5099_v16  ;;  %6237 = vmatpush3.msra.mxu0 %v5169_v31 }
 0x6ff   :  { %6238 = vmatprep.subr.mxu0 %v6498_v0 }
 0x700   :  { %6239 = vmatpush3.msra.mxu0 %v5168_v33 }
 0x701   :  { %2275 = vmatmul.mubr.f32.gmra.mxu0 %v5098_v60  ;;  %6240 = vmatprep.subr.mxu0 %v6498_v0 }
 0x702   :  { %5112 = vmatprep.mubr.msk.f32.mxu0 %vm378_vm1, %v5101_v61  ;;  %6241 = vmatpush3.msra.mxu0 %v5167_v40 }
 0x703   :  { %6242 = vmatprep.subr.mxu0 %v6498_v0 }
 0x704   :  { %6243 = vmatpush3.msra.mxu0 %v5166_v43 }
 0x705   :  { %2280 = vmatmul.mubr.f32.gmra.mxu0 %v5100_v3  ;;  %6244 = vmatprep.subr.mxu0 %v6498_v0 }
 0x706   :  { %5113 = vmatprep.mubr.msk.f32.mxu0 %vm378_vm1, %v5103_v5  ;;  %6245 = vmatpush3.msra.mxu0 %v5165_v38  ;;  %v5170_v38 = vld [vmem:[%s9934_s5] ss:$0 sm:$0xff] }
 0x707   :  { %6246 = vmatprep.subr.mxu0 %v6498_v0 }
 0x708   :  { %6247 = vmatpush3.msra.mxu0 %v5164_v39 }
 0x709   :  { %2285 = vmatmul.mubr.f32.gmra.mxu0 %v5102_v11  ;;  %6248 = vmatprep.subr.mxu0 %v6498_v0 }
 0x70a   :  { %5114 = vmatprep.mubr.msk.f32.mxu0 %vm378_vm1, %v5105_v18  ;;  %6249 = vmatpush3.msra.mxu0 %v5163_v41 }
 0x70b   :  { %6250 = vmatprep.subr.mxu0 %v6498_v0 }
 0x70c   :  { %6251 = vmatpush3.msra.mxu0 %v5162_v45 }
 0x70d   :  { %2290 = vmatmul.mubr.f32.gmra.mxu0 %v5104_v14  ;;  %6252 = vmatprep.subr.mxu0 %v6498_v0 }
 0x70e   :  { %5115 = vmatprep.mubr.msk.f32.mxu0 %vm378_vm1, %v5107_v10  ;;  %6253 = vmatpush3.msra.mxu0 %v5161_v51 }
 0x70f   :  { %6254 = vmatprep.subr.mxu0 %v6498_v0 }
 0x710   :  { %6255 = vmatpush3.msra.mxu0 %v5160_v55 }
 0x711   :  { %2295 = vmatmul.mubr.f32.gmra.mxu0 %v5106_v6  ;;  %6256 = vmatprep.subr.mxu0 %v6498_v0 }
 0x712   :  { %5116 = vmatprep.mubr.msk.f32.mxu0 %vm378_vm1, %v5109_v12  ;;  %6257 = vmatpush3.msra.mxu0 %v5159_v42 }
 0x713   :  { %6258 = vmatprep.subr.mxu0 %v6498_v0 }
 0x714   :  { %6259 = vmatpush3.msra.mxu0 %v5158_v44 }
 0x715   :  { %2300 = vmatmul.mubr.f32.gmra.mxu0 %v5108_v22  ;;  %6260 = vmatprep.subr.mxu0 %v6498_v0 }
 0x716   :  { %6268 = vmatprep.mubr.msk.f32.mxu0 %vm6499_vm2, %v6498_v0  ;;  %6261 = vmatpush3.msra.mxu0 %v5157_v48 }
 0x717   :  { %6262 = vmatprep.subr.mxu0 %v6498_v0 }
 0x718   :  { %6263 = vmatpush3.msra.mxu0 %v5156_v49 }
 0x719   :  { %6264 = vmatprep.subr.mxu0 %v6498_v0 }
 0x793   :  { %v2128_v52 = vpop.f32.mrf.mxu0 }
 0x794   :  { %v8338_v53 = vadd.f32 %v2128_v52, %v8148_v15  ;;  %v5155_v52 = vld [vmem:[%s9932_s4 + $0x408] sm:$0xff] }
 0x795   :  { %v6164_v56 = vpop.f32.mrf.mxu0  ;;  %6265 = vmatpush3.msra.mxu0 %v5155_v52 }
 0x796   :  { %6266 = vmatprep.subr.mxu0 %v6498_v0  ;;  %v5154_v56 = vld [vmem:[%s9932_s4 + $0x400] sm:$0xff] }
 0x797   :  { %v2133_v57 = vpop.f32.mrf.mxu0  ;;  %6267 = vmatpush3.msra.mxu0 %v5154_v56 }
 0x798   :  { %v8341_v59 = vadd.f32 %v2133_v57, %v8151_v20  ;;  %6289 = vmatprep.subr.mxu0 %v6498_v0 }
 0x799   :  { %v6167_v1 = vpop.f32.mrf.mxu0 }
 0x79b   :  { %v2138_v9 = vpop.f32.mrf.mxu0 }
 0x79c   :  { %v8344_v16 = vadd.f32 %v2138_v9, %v8154_v63 }
 0x79d   :  { %v6170_v60 = vpop.f32.mrf.mxu0 }
 0x79f   :  { %v2143_v61 = vpop.f32.mrf.mxu0 }
 0x7a0   :  { %v8347_v3 = vadd.f32 %v2143_v61, %v8157_v24 }
 0x7a1   :  { %v6173_v5 = vpop.f32.mrf.mxu0 }
 0x7a3   :  { %v2148_v11 = vpop.f32.mrf.mxu0 }
 0x7a4   :  { %v8350_v15 = vadd.f32 %v2148_v11, %v8160_v29 }
 0x7a5   :  { %v6176_v18 = vpop.f32.mrf.mxu0 }
 0x7a7   :  { %v2153_v14 = vpop.f32.mrf.mxu0 }
 0x7a8   :  { %v8353_v20 = vadd.f32 %v2153_v14, %v8163_v37 }
 0x7a9   :  { %v6179_v10 = vpop.f32.mrf.mxu0 }
 0x7ab   :  { %v2158_v6 = vpop.f32.mrf.mxu0 }
 0x7ac   :  { %v8356_v63 = vadd.f32 %v2158_v6, %v8166_v47 }
 0x7ad   :  { %v6182_v12 = vpop.f32.mrf.mxu0 }
 0x7bd   :  { %v2271_v22 = vpop.f32.mrf.mxu0 }
 0x7be   :  { %6216 = vmatmul.mubr.f32.vlgmr.msra.gmra.mxu1 %v2271_v22 }
 0x7bf   :  { %2466 = vmatpush1.msra.mxu1 %v6862_v46  ;;  %v2273_v24 = vpop.f32.mrf.mxu0  ;;  %6218 = vmatprep.mubr.msk.f32.mxu1 %vm6499_vm2, %v6498_v0 }
 0x7c0   :  { %2467 = vmatprep.subr.mxu1 %v6498_v0 }
 0x7c1   :  { %2468 = vmatpush1.msra.mxu1 %v6871_v50  ;;  %v2276_v29 = vpop.f32.mrf.mxu0 }
 0x7c2   :  { %2469 = vmatprep.subr.mxu1 %v6498_v0  ;;  %6219 = vmatmul.mubr.f32.gmra.mxu1 %v2276_v29 }
 0x7c3   :  { %2470 = vmatpush1.msra.mxu1 %v6880_v54  ;;  %v2278_v37 = vpop.f32.mrf.mxu0  ;;  %6221 = vmatprep.mubr.msk.f32.mxu1 %vm6499_vm2, %v6498_v0 }
 0x7c4   :  { %2471 = vmatprep.subr.mxu1 %v6498_v0 }
 0x7c5   :  { %2472 = vmatpush1.msra.mxu1 %v6892_v58  ;;  %v2281_v46 = vpop.f32.mrf.mxu0 }
 0x7c6   :  { %2473 = vmatprep.subr.mxu1 %v6498_v0  ;;  %6222 = vmatmul.mubr.f32.gmra.mxu1 %v2281_v46 }
 0x7c7   :  { %2474 = vmatpush1.msra.mxu1 %v6902_v62  ;;  %v2283_v50 = vpop.f32.mrf.mxu0  ;;  %6224 = vmatprep.mubr.msk.f32.mxu1 %vm6499_vm2, %v6498_v0 }
 0x7c8   :  { %2475 = vmatprep.subr.mxu1 %v6498_v0 }
 0x7c9   :  { %2476 = vmatpush1.msra.mxu1 %v6912_v7  ;;  %v2286_v54 = vpop.f32.mrf.mxu0 }
 0x7ca   :  { %2477 = vmatprep.subr.mxu1 %v6498_v0  ;;  %6225 = vmatmul.mubr.f32.gmra.mxu1 %v2286_v54 }
 0x7cb   :  { %2478 = vmatpush1.msra.mxu1 %v6919_v13  ;;  %v2288_v58 = vpop.f32.mrf.mxu0  ;;  %6227 = vmatprep.mubr.msk.f32.mxu1 %vm6499_vm2, %v6498_v0 }
 0x7cc   :  { %2479 = vmatprep.subr.mxu1 %v6498_v0 }
 0x7cd   :  { %2480 = vmatpush1.msra.mxu1 %v6926_v17  ;;  %v2291_v62 = vpop.f32.mrf.mxu0 }
 0x7ce   :  { %2481 = vmatprep.subr.mxu1 %v6498_v0  ;;  %6228 = vmatmul.mubr.f32.gmra.mxu1 %v2291_v62 }
 0x7cf   :  { %2482 = vmatpush1.msra.mxu1 %v6932_v19  ;;  %v2293_v7 = vpop.f32.mrf.mxu0  ;;  %6230 = vmatprep.mubr.msk.f32.mxu1 %vm6499_vm2, %v6498_v0  ;;  %v5134_v19 = vld [vmem:[%s9931_s3 + $0x388] sm:$0xff] }
 0x7d0   :  { %2483 = vmatprep.subr.mxu1 %v6498_v0 }
 0x7d1   :  { %2484 = vmatpush1.msra.mxu1 %v6938_v21  ;;  %v2296_v13 = vpop.f32.mrf.mxu0 }
 0x7d2   :  { %2485 = vmatprep.subr.mxu1 %v6498_v0  ;;  %6231 = vmatmul.mubr.f32.gmra.mxu1 %v2296_v13 }
 0x7d3   :  { %2486 = vmatpush1.msra.mxu1 %v6944_v23  ;;  %v2298_v17 = vpop.f32.mrf.mxu0  ;;  %6233 = vmatprep.mubr.msk.f32.mxu1 %vm6499_vm2, %v6498_v0  ;;  %v5133_v23 = vld [vmem:[%s9931_s3 + $0x380] sm:$0xff] }
 0x7d4   :  { %2487 = vmatprep.subr.mxu1 %v6498_v0 }
 0x7d5   :  { %2488 = vmatpush1.msra.mxu1 %v6950_v8  ;;  %v2301_v47 = vpop.f32.mrf.mxu0  ;;  %v5136_v8 = vld [vmem:[%s9931_s3 + $0x398] sm:$0xff] }
 0x7d6   :  { %2489 = vmatprep.subr.mxu1 %v6498_v0  ;;  %6234 = vmatmul.mubr.f32.gmra.mxu1 %v2301_v47 }
 0x7d7   :  { %2490 = vmatpush1.msra.mxu1 %v6956_v26  ;;  %v2303_v21 = vpop.f32.mrf.mxu0  ;;  %5147 = vmatprep.mubr.msk.f32.mxu1 %vm378_vm1, %v5134_v19  ;;  %v5135_v26 = vld [vmem:[%s9931_s3 + $0x390] sm:$0xff] }
 0x7d8   :  { %2491 = vmatprep.subr.mxu1 %v6498_v0 }
 0x7d9   :  { %2492 = vmatpush1.msra.mxu1 %v6962_v27  ;;  %v5138_v27 = vld [vmem:[%s9931_s3 + $0x3a8] sm:$0xff] }
 0x7da   :  { %2493 = vmatprep.subr.mxu1 %v6498_v0 }
 0x7db   :  { %2494 = vmatpush1.msra.mxu1 %v6967_v28  ;;  %v5137_v28 = vld [vmem:[%s9931_s3 + $0x3a0] sm:$0xff] }
 0x7dc   :  { %2495 = vmatprep.subr.mxu1 %v6498_v0 }
 0x7dd   :  { %2496 = vmatpush1.msra.mxu1 %v6971_v2  ;;  %v5140_v2 = vld [vmem:[%s9931_s3 + $0x3b8] sm:$0xff] }
 0x7de   :  { %2519 = vmatprep.subr.mxu1 %v6498_v0 }
 0x7df   :  { %2520 = vmatpush2.msra.mxu1 %v6974_v30  ;;  %v5139_v30 = vld [vmem:[%s9931_s3 + $0x3b0] sm:$0xff] }
 0x7e0   :  { %2521 = vmatprep.subr.mxu1 %v6498_v0 }
 0x7e1   :  { %2522 = vmatpush2.msra.mxu1 %v6983_v32  ;;  %v5142_v32 = vld [vmem:[%s9931_s3 + $0x3c8] sm:$0xff] }
 0x7e2   :  { %2523 = vmatprep.subr.mxu1 %v6498_v0 }
 0x7e3   :  { %2524 = vmatpush2.msra.mxu1 %v6989_v34  ;;  %v5141_v34 = vld [vmem:[%s9931_s3 + $0x3c0] sm:$0xff] }
 0x7e4   :  { %2525 = vmatprep.subr.mxu1 %v6498_v0 }
 0x7e5   :  { %2526 = vmatpush2.msra.mxu1 %v6993_v35  ;;  %v5144_v35 = vld [vmem:[%s9931_s3 + $0x3d8] sm:$0xff] }
 0x7e6   :  { %2527 = vmatprep.subr.mxu1 %v6498_v0 }
 0x7e7   :  { %2528 = vmatpush2.msra.mxu1 %v6997_v36  ;;  %v5143_v36 = vld [vmem:[%s9931_s3 + $0x3d0] sm:$0xff] }
 0x7e8   :  { %2530 = vmatmul.mubr.f32.vlgmr.msra.gmra.mxu1 %v5133_v23  ;;  %6312 = vmatprep.subr.mxu1 %v6498_v0 }
 0x7e9   :  { %5148 = vmatprep.mubr.msk.f32.mxu1 %vm378_vm1, %v5136_v8 }
 0x7ec   :  { %2535 = vmatmul.mubr.f32.gmra.mxu1 %v5135_v26 }
 0x7ed   :  { %5149 = vmatprep.mubr.msk.f32.mxu1 %vm378_vm1, %v5138_v27 }
 0x7f0   :  { %2540 = vmatmul.mubr.f32.gmra.mxu1 %v5137_v28 }
 0x7f1   :  { %5150 = vmatprep.mubr.msk.f32.mxu1 %vm378_vm1, %v5140_v2 }
 0x7f4   :  { %2545 = vmatmul.mubr.f32.gmra.mxu1 %v5139_v30 }
 0x7f5   :  { %5151 = vmatprep.mubr.msk.f32.mxu1 %vm378_vm1, %v5142_v32 }
 0x7f8   :  { %2550 = vmatmul.mubr.f32.gmra.mxu1 %v5141_v34 }
 0x7f9   :  { %5152 = vmatprep.mubr.msk.f32.mxu1 %vm378_vm1, %v5144_v35 }
 0x7fc   :  { %2555 = vmatmul.mubr.f32.gmra.mxu1 %v5143_v36 }
 0x7fd   :  { %5153 = vmatprep.mubr.msk.f32.mxu1 %vm378_vm1, %v5146_v25 }
 0x800   :  { %2560 = vmatmul.mubr.f32.gmra.mxu1 %v5145_v4 }
 0x801   :  { %6326 = vmatprep.mubr.msk.f32.mxu1 %vm6499_vm2, %v6498_v0 }
 0x87e   :  { %v2388_v57 = vpop.f32.mrf.mxu1 }
 0x87f   :  { %v8528_v1 = vadd.f32 %v2388_v57, %v8338_v53 }
 0x880   :  { %v6217_v9 = vpop.f32.mrf.mxu1 }
 0x882   :  { %v2393_v60 = vpop.f32.mrf.mxu1 }
 0x883   :  { %v8531_v61 = vadd.f32 %v2393_v60, %v8341_v59 }
 0x884   :  { %v6220_v5 = vpop.f32.mrf.mxu1 }
 0x886   :  { %v2398_v11 = vpop.f32.mrf.mxu1 }
 0x887   :  { %v8534_v18 = vadd.f32 %v2398_v11, %v8344_v16 }
 0x888   :  { %v6223_v14 = vpop.f32.mrf.mxu1 }
 0x889   :  { %v5174_v14 = vld [vmem:[%s9935_s6 + $0x18] sm:$0xff] }
 0x88a   :  { %v2403_v10 = vpop.f32.mrf.mxu1 }
 0x88b   :  { %v2425_v6 = vadd.f32 %v2403_v10, %v8347_v3  ;;  %v2710_v10 = vld [vmem:[%s9935_s6] sm:$0xff] }
 0x88c   :  { %v6226_v12 = vpop.f32.mrf.mxu1 }
 0x88d   :  { %v2834_v12 = vld [vmem:[%s9936_s7 + $0xf8] sm:$0xff] }
 0x88e   :  { %v2408_v22 = vpop.f32.mrf.mxu1 }
 0x88f   :  { %v2426_v24 = vadd.f32 %v2408_v22, %v8350_v15  ;;  %v5210_v22 = vld [vmem:[%s9936_s7 + $0x1f0] sm:$0xff] }
 0x890   :  { %v6229_v53 = vpop.f32.mrf.mxu1 }
 0x891   :  { %v5175_v53 = vld [vmem:[%s9935_s6 + $0x20] sm:$0xff] }
 0x892   :  { %v2413_v29 = vpop.f32.mrf.mxu1 }
 0x893   :  { %v2427_v37 = vadd.f32 %v2413_v29, %v8353_v20  ;;  %v2711_v29 = vld [vmem:[%s9935_s6 + $0x8] sm:$0xff] }
 0x894   :  { %v6232_v46 = vpop.f32.mrf.mxu1 }
 0x895   :  { %v2832_v46 = vld [vmem:[%s9936_s7 + $0xe8] sm:$0xff] }
 0x896   :  { %v2418_v59 = vpop.f32.mrf.mxu1 }
 0x897   :  { %v2428_v50 = vadd.f32 %v2418_v59, %v8356_v63  ;;  %v5208_v59 = vld [vmem:[%s9936_s7 + $0x1e0] sm:$0xff] }
 0x898   :  { %v6235_v54 = vpop.f32.mrf.mxu1 }
 0x899   :  { %v5176_v54 = vld [vmem:[%s9935_s6 + $0x28] sm:$0xff] }
 0x8a8   :  { %v2531_v58 = vpop.f32.mrf.mxu1 }
 0x8a9   :  { %6269 = vmatmul.mubr.f32.vlgmr.msra.gmra.mxu0 %v2531_v58  ;;  %v2712_v58 = vld [vmem:[%s9935_s6 + $0x10] sm:$0xff] }
 0x8aa   :  { %v2533_v16 = vpop.f32.mrf.mxu1  ;;  %6271 = vmatprep.mubr.msk.f32.mxu0 %vm6499_vm2, %v6498_v0 }
 0x8ab   :  { %v5207_v16 = vld [vmem:[%s9936_s7 + $0x1d8] sm:$0xff] }
 0x8ac   :  { %v2536_v3 = vpop.f32.mrf.mxu1 }
 0x8ad   :  { %6272 = vmatmul.mubr.f32.gmra.mxu0 %v2536_v3  ;;  %v2830_v3 = vld [vmem:[%s9936_s7 + $0xd8] sm:$0xff] }
 0x8ae   :  { %v2538_v62 = vpop.f32.mrf.mxu1  ;;  %6274 = vmatprep.mubr.msk.f32.mxu0 %vm6499_vm2, %v6498_v0 }
 0x8af   :  { %v5206_v62 = vld [vmem:[%s9936_s7 + $0x1d0] sm:$0xff] }
 0x8b0   :  { %v2541_v15 = vpop.f32.mrf.mxu1 }
 0x8b1   :  { %6275 = vmatmul.mubr.f32.gmra.mxu0 %v2541_v15  ;;  %v2829_v15 = vld [vmem:[%s9936_s7 + $0xd0] sm:$0xff] }
 0x8b2   :  { %v2543_v20 = vpop.f32.mrf.mxu1  ;;  %6277 = vmatprep.mubr.msk.f32.mxu0 %vm6499_vm2, %v6498_v0 }
 0x8b3   :  { %v5205_v20 = vld [vmem:[%s9936_s7 + $0x1c8] sm:$0xff] }
 0x8b4   :  { %v2546_v63 = vpop.f32.mrf.mxu1 }
 0x8b5   :  { %6278 = vmatmul.mubr.f32.gmra.mxu0 %v2546_v63  ;;  %v2828_v63 = vld [vmem:[%s9936_s7 + $0xc8] sm:$0xff] }
 0x8b6   :  { %v2548_v7 = vpop.f32.mrf.mxu1  ;;  %6280 = vmatprep.mubr.msk.f32.mxu0 %vm6499_vm2, %v6498_v0 }
 0x8b7   :  { %v5204_v7 = vld [vmem:[%s9936_s7 + $0x1c0] sm:$0xff] }
 0x8b8   :  { %v2551_v13 = vpop.f32.mrf.mxu1 }
 0x8b9   :  { %6281 = vmatmul.mubr.f32.gmra.mxu0 %v2551_v13  ;;  %v2827_v13 = vld [vmem:[%s9936_s7 + $0xc0] sm:$0xff] }
 0x8ba   :  { %v2553_v17 = vpop.f32.mrf.mxu1  ;;  %6283 = vmatprep.mubr.msk.f32.mxu0 %vm6499_vm2, %v6498_v0 }
 0x8bb   :  { %v5203_v17 = vld [vmem:[%s9936_s7 + $0x1b8] sm:$0xff] }
 0x8bc   :  { %v2556_v19 = vpop.f32.mrf.mxu1 }
 0x8bd   :  { %6284 = vmatmul.mubr.f32.gmra.mxu0 %v2556_v19  ;;  %v2826_v19 = vld [vmem:[%s9936_s7 + $0xb8] sm:$0xff] }
 0x8be   :  { %v2558_v47 = vpop.f32.mrf.mxu1  ;;  %6286 = vmatprep.mubr.msk.f32.mxu0 %vm6499_vm2, %v6498_v0 }
 0x8bf   :  { %v5202_v47 = vld [vmem:[%s9936_s7 + $0x1b0] sm:$0xff] }
 0x8c0   :  { %v2561_v21 = vpop.f32.mrf.mxu1 }
 0x8c1   :  { %6287 = vmatmul.mubr.f32.gmra.mxu0 %v2561_v21  ;;  %v2825_v21 = vld [vmem:[%s9936_s7 + $0xb0] sm:$0xff] }
 0x8c2   :  { %v2563_v23 = vpop.f32.mrf.mxu1  ;;  %6303 = vmatprep.mubr.msk.f32.mxu0 %vm6499_vm2, %v6498_v0 }
 0x8c3   :  { %v5201_v23 = vld [vmem:[%s9936_s7 + $0x1a8] sm:$0xff] }
 0x969   :  { %v2648_v8 = vpop.f32.mrf.mxu0 }
 0x96a   :  { %v2682_v56 = vadd.f32 %v2648_v8, %v8528_v1  ;;  %v2824_v8 = vld [vmem:[%s9936_s7 + $0xa8] sm:$0xff] }
 0x96b   :  { %v6270_v26 = vpop.f32.mrf.mxu0 }
 0x96c   :  { %v2696_v1 = vadd.f32 %v5170_v38, %v2682_v56  ;;  %v5200_v26 = vld [vmem:[%s9936_s7 + $0x1a0] sm:$0xff] }
 0x96d   :  { %v2653_v27 = vpop.f32.mrf.mxu0  ;;  %v5188_v56 = vld [vmem:[%s9936_s7 + $0x140] sm:$0xff] }
 0x96e   :  { %v2683_v48 = vadd.f32 %v2653_v27, %v8531_v61  ;;  %v2823_v27 = vld [vmem:[%s9936_s7 + $0xa0] sm:$0xff] }
 0x96f   :  { %v6273_v28 = vpop.f32.mrf.mxu0 }
 0x970   :  { %v2697_v60 = vadd.f32 %v5170_v38, %v2683_v48  ;;  %v5199_v28 = vld [vmem:[%s9936_s7 + $0x198] sm:$0xff]  ;;  %v5189_v48 = vld [vmem:[%s9936_s7 + $0x148] sm:$0xff] }
 0x971   :  { %v2658_v2 = vpop.f32.mrf.mxu0 }
 0x972   :  { %v2684_v55 = vadd.f32 %v2658_v2, %v8534_v18  ;;  %v8586_v11 = vmax.f32 %v2697_v60, 0.0  ;;  %v8592_v18 = vmax.f32 %v2696_v1, 0.0  ;;  %v2822_v2 = vld [vmem:[%s9936_s7 + $0x98] sm:$0xff] }
 0x973   :  { %v6276_v30 = vpop.f32.mrf.mxu0  ;;  %v5187_v60 = vld [vmem:[%s9936_s7 + $0x138] sm:$0xff] }
 0x974   :  { %v2698_v57 = vadd.f32 %v5170_v38, %v2684_v55  ;;  %v5198_v30 = vld [vmem:[%s9936_s7 + $0x190] sm:$0xff]  ;;  %v2810_v1 = vld [vmem:[%s9936_s7 + $0x38] sm:$0xff] }
 0x975   :  { %v2663_v32 = vpop.f32.mrf.mxu0  ;;  %v5190_v55 = vld [vmem:[%s9936_s7 + $0x150] sm:$0xff] }
 0x976   :  { %v2685_v41 = vadd.f32 %v2663_v32, %v2425_v6  ;;  %v8580_v5 = vmax.f32 %v2698_v57, 0.0  ;;  %v5211_v6 = vld [vmem:[%s9936_s7 + $0x1f8] sm:$0xff]  ;;  %v2821_v32 = vld [vmem:[%s9936_s7 + $0x90] sm:$0xff]  ;;  %v2811_v57 = vld [vmem:[%s9936_s7 + $0x40] sm:$0xff] }
 0x977   :  { %v6279_v34 = vpop.f32.mrf.mxu0 }
 0x978   :  { %v2699_v49 = vadd.f32 %v5170_v38, %v2685_v41  ;;  %v5197_v34 = vld [vmem:[%s9936_s7 + $0x188] sm:$0xff]  ;;  %v2815_v41 = vld [vmem:[%s9936_s7 + $0x60] sm:$0xff] }
 0x979   :  { %v2668_v35 = vpop.f32.mrf.mxu0 }
 0x97a   :  { %v2686_v40 = vadd.f32 %v2668_v35, %v2426_v24  ;;  %v8574_v61 = vmax.f32 %v2699_v49, 0.0  ;;  %v2833_v24 = vld [vmem:[%s9936_s7 + $0xf0] sm:$0xff]  ;;  %v2820_v35 = vld [vmem:[%s9936_s7 + $0x88] sm:$0xff] }
 0x97b   :  { %v6282_v36 = vpop.f32.mrf.mxu0  ;;  %v2812_v49 = vld [vmem:[%s9936_s7 + $0x48] sm:$0xff] }
 0x97c   :  { %v2700_v42 = vadd.f32 %v5170_v38, %v2686_v40  ;;  %v5196_v36 = vld [vmem:[%s9936_s7 + $0x180] sm:$0xff]  ;;  %v2817_v40 = vld [vmem:[%s9936_s7 + $0x70] sm:$0xff] }
 0x97d   :  { %v2673_v25 = vpop.f32.mrf.mxu0 }
 0x97e   :  { %v2687_v31 = vadd.f32 %v2673_v25, %v2427_v37  ;;  %v8568_v9 = vmax.f32 %v2700_v42, 0.0  ;;  %v5209_v37 = vld [vmem:[%s9936_s7 + $0x1e8] sm:$0xff]  ;;  %v2819_v25 = vld [vmem:[%s9936_s7 + $0x80] sm:$0xff]  ;;  %v2813_v42 = vld [vmem:[%s9936_s7 + $0x50] sm:$0xff] }
 0x97f   :  { %v6285_v4 = vpop.f32.mrf.mxu0 }
 0x980   :  { %v2701_v45 = vadd.f32 %v5170_v38, %v2687_v31  ;;  %v5195_v4 = vld [vmem:[%s9936_s7 + $0x178] sm:$0xff] }
 0x981   :  { %v2678_v33 = vpop.f32.mrf.mxu0  ;;  %v2818_v31 = vld [vmem:[%s9936_s7 + $0x78] sm:$0xff] }
 0x982   :  { %v2688_v43 = vadd.f32 %v2678_v33, %v2428_v50  ;;  %v8561_v52 = vmax.f32 %v2701_v45, 0.0  ;;  %v2831_v50 = vld [vmem:[%s9936_s7 + $0xe0] sm:$0xff]  ;;  %v5194_v33 = vld [vmem:[%s9936_s7 + $0x170] sm:$0xff]  ;;  %v5191_v45 = vld [vmem:[%s9936_s7 + $0x158] sm:$0xff] }
 0x983   :  { %v6288_v39 = vpop.f32.mrf.mxu0 }
 0x984   :  { %v2702_v51 = vadd.f32 %v5170_v38, %v2688_v43  ;;  %v5193_v43 = vld [vmem:[%s9936_s7 + $0x168] sm:$0xff]  ;;  %v5192_v39 = vld [vmem:[%s9936_s7 + $0x160] sm:$0xff] }
 0x985   :  { %v2816_v38 = vld [vmem:[%s9936_s7 + $0x68] sm:$0xff] }
 0x986   :  { %v8558_v44 = vmax.f32 %v2702_v51, 0.0  ;;  %v2814_v51 = vld [vmem:[%s9936_s7 + $0x58] sm:$0xff] }
 0x988   :  { %6290 = vmatpush3.msra.mxu0 %v8558_v44  ;;  %6313 = vmatpush3.msra.mxu1 %v8558_v44 }
 0x989   :  { %6291 = vmatprep.subr.mxu0 %v6498_v0  ;;  %6314 = vmatprep.subr.mxu1 %v6498_v0 }
 0x98a   :  { %6292 = vmatpush3.msra.mxu0 %v8561_v52  ;;  %6315 = vmatpush3.msra.mxu1 %v8561_v52 }
 0x98b   :  { %6293 = vmatprep.subr.mxu0 %v6498_v0  ;;  %6316 = vmatprep.subr.mxu1 %v6498_v0 }
 0x98c   :  { %6294 = vmatpush3.msra.mxu0 %v8568_v9  ;;  %6317 = vmatpush3.msra.mxu1 %v8568_v9 }
 0x98d   :  { %6295 = vmatprep.subr.mxu0 %v6498_v0  ;;  %6318 = vmatprep.subr.mxu1 %v6498_v0 }
 0x98e   :  { %6296 = vmatpush3.msra.mxu0 %v8574_v61  ;;  %6319 = vmatpush3.msra.mxu1 %v8574_v61 }
 0x98f   :  { %6297 = vmatprep.subr.mxu0 %v6498_v0  ;;  %6320 = vmatprep.subr.mxu1 %v6498_v0 }
 0x990   :  { %6298 = vmatpush3.msra.mxu0 %v8580_v5  ;;  %6321 = vmatpush3.msra.mxu1 %v8580_v5 }
 0x991   :  { %6299 = vmatprep.subr.mxu0 %v6498_v0  ;;  %6322 = vmatprep.subr.mxu1 %v6498_v0 }
 0x992   :  { %6300 = vmatpush3.msra.mxu0 %v8586_v11  ;;  %6323 = vmatpush3.msra.mxu1 %v8586_v11 }
 0x993   :  { %6301 = vmatprep.subr.mxu0 %v6498_v0  ;;  %6324 = vmatprep.subr.mxu1 %v6498_v0 }
 0x994   :  { %6302 = vmatpush3.msra.mxu0 %v8592_v18  ;;  %6325 = vmatpush3.msra.mxu1 %v8592_v18 }
 0x995   :  { %6327 = vmatmul.mubr.msk.f32.vlgmr.msra.gmra.mxu1 %vm2713_vm3, %v5174_v14  ;;  %6304 = vmatmul.mubr.msk.f32.vlgmr.msra.gmra.mxu0 %vm2713_vm3, %v2710_v10  ;;  %v5186_v14 = vld [vmem:[%s9936_s7 + $0x130] sm:$0xff]  ;;  %v5185_v10 = vld [vmem:[%s9936_s7 + $0x128] sm:$0xff] }
 0x996   :  { %6329 = vmatprep.mubr.msk.f32.mxu1 %vm6499_vm2, %v6498_v0  ;;  %6306 = vmatprep.mubr.msk.f32.mxu0 %vm6499_vm2, %v6498_v0 }
 0x997   :  { %2961 = vmatprep.subr.mxu0 %v5211_v6  ;;  %3044 = vmatprep.subr.mxu1 %v2834_v12  ;;  %v5184_v6 = vld [vmem:[%s9936_s7 + $0x120] sm:$0xff]  ;;  %v5183_v12 = vld [vmem:[%s9936_s7 + $0x118] sm:$0xff] }
 0x998   :  { %2962 = vmatpush1.msra.mxu0 %v5210_v22  ;;  %3045 = vmatpush1.msra.mxu1 %v2833_v24  ;;  %v5182_v22 = vld [vmem:[%s9936_s7 + $0x110] sm:$0xff]  ;;  %v5181_v24 = vld [vmem:[%s9936_s7 + $0x108] sm:$0xff] }
 0x999   :  { %6330 = vmatmul.mubr.msk.f32.gmra.mxu1 %vm2713_vm3, %v5175_v53  ;;  %6307 = vmatmul.mubr.msk.f32.gmra.mxu0 %vm2713_vm3, %v2711_v29  ;;  %v5180_v53 = vld [vmem:[%s9936_s7 + $0x100] sm:$0xff]  ;;  %v2809_v29 = vld [vmem:[%s9936_s7 + $0x30] sm:$0xff] }
 0x99a   :  { %6332 = vmatprep.mubr.msk.f32.mxu1 %vm6499_vm2, %v6498_v0  ;;  %6309 = vmatprep.mubr.msk.f32.mxu0 %vm6499_vm2, %v6498_v0 }
 0x99b   :  { %2963 = vmatprep.subr.mxu0 %v5209_v37  ;;  %3046 = vmatprep.subr.mxu1 %v2832_v46  ;;  %v2808_v37 = vld [vmem:[%s9936_s7 + $0x28] sm:$0xff]  ;;  %v2807_v46 = vld [vmem:[%s9936_s7 + $0x20] sm:$0xff] }
 0x99c   :  { %2964 = vmatpush1.msra.mxu0 %v5208_v59  ;;  %3047 = vmatpush1.msra.mxu1 %v2831_v50  ;;  %v2806_v59 = vld [vmem:[%s9936_s7 + $0x18] sm:$0xff]  ;;  %v2805_v50 = vld [vmem:[%s9936_s7 + $0x10] sm:$0xff] }
 0x99d   :  { %6333 = vmatmul.mubr.msk.f32.gmra.mxu1 %vm2713_vm3, %v5176_v54  ;;  %6310 = vmatmul.mubr.msk.f32.gmra.mxu0 %vm2713_vm3, %v2712_v58  ;;  %v2804_v54 = vld [vmem:[%s9936_s7 + $0x8] sm:$0xff]  ;;  %v2803_v58 = vld [vmem:[%s9936_s7] sm:$0xff] }
 0x99e   :  { %2965 = vmatprep.subr.mxu0 %v5207_v16  ;;  %3048 = vmatprep.subr.mxu1 %v2830_v3  ;;  %v5249_v16 = vld [vmem:[%s9936_s7 + $0x2f8] sm:$0xff] }
 0x99f   :  { %2966 = vmatpush1.msra.mxu0 %v5206_v62  ;;  %3049 = vmatpush1.msra.mxu1 %v2829_v15  ;;  %v5248_v15 = vld [vmem:[%s9936_s7 + $0x2f0] sm:$0xff] }
 0x9a0   :  { %2967 = vmatprep.subr.mxu0 %v5205_v20  ;;  %3050 = vmatprep.subr.mxu1 %v2828_v63 }
 0x9a1   :  { %2968 = vmatpush1.msra.mxu0 %v5204_v7  ;;  %3051 = vmatpush1.msra.mxu1 %v2827_v13 }
 0x9a2   :  { %2969 = vmatprep.subr.mxu0 %v5203_v17  ;;  %3052 = vmatprep.subr.mxu1 %v2826_v19 }
 0x9a3   :  { %2970 = vmatpush1.msra.mxu0 %v5202_v47  ;;  %3053 = vmatpush1.msra.mxu1 %v2825_v21 }
 0x9a4   :  { %2971 = vmatprep.subr.mxu0 %v5201_v23  ;;  %3054 = vmatprep.subr.mxu1 %v2824_v8  ;;  %v5247_v23 = vld [vmem:[%s9936_s7 + $0x2e8] sm:$0xff] }
 0x9a5   :  { %2972 = vmatpush1.msra.mxu0 %v5200_v26  ;;  %3055 = vmatpush1.msra.mxu1 %v2823_v27  ;;  %v5246_v26 = vld [vmem:[%s9936_s7 + $0x2e0] sm:$0xff] }
 0x9a6   :  { %2973 = vmatprep.subr.mxu0 %v5199_v28  ;;  %3056 = vmatprep.subr.mxu1 %v2822_v2  ;;  %v5245_v28 = vld [vmem:[%s9936_s7 + $0x2d8] sm:$0xff]  ;;  %v5212_v2 = vld [vmem:[%s9935_s6 + $0x30] sm:$0xff] }
 0x9a7   :  { %2974 = vmatpush1.msra.mxu0 %v5198_v30  ;;  %3057 = vmatpush1.msra.mxu1 %v2821_v32  ;;  %v5244_v30 = vld [vmem:[%s9936_s7 + $0x2d0] sm:$0xff]  ;;  %v5243_v32 = vld [vmem:[%s9936_s7 + $0x2c8] sm:$0xff] }
 0x9a8   :  { %2975 = vmatprep.subr.mxu0 %v5197_v34  ;;  %3058 = vmatprep.subr.mxu1 %v2820_v35  ;;  %v5213_v34 = vld [vmem:[%s9935_s6 + $0x38] sm:$0xff]  ;;  %v5242_v35 = vld [vmem:[%s9936_s7 + $0x2c0] sm:$0xff] }
 0x9a9   :  { %2976 = vmatpush1.msra.mxu0 %v5196_v36  ;;  %3059 = vmatpush1.msra.mxu1 %v2819_v25  ;;  %v5241_v36 = vld [vmem:[%s9936_s7 + $0x2b8] sm:$0xff]  ;;  %v5214_v25 = vld [vmem:[%s9935_s6 + $0x40] sm:$0xff] }
 0x9aa   :  { %2977 = vmatprep.subr.mxu0 %v5195_v4  ;;  %3060 = vmatprep.subr.mxu1 %v2818_v31  ;;  %v5240_v4 = vld [vmem:[%s9936_s7 + $0x2b0] sm:$0xff]  ;;  %v5239_v31 = vld [vmem:[%s9936_s7 + $0x2a8] sm:$0xff] }
 0x9ab   :  { %2978 = vmatpush1.msra.mxu0 %v5194_v33  ;;  %3061 = vmatpush1.msra.mxu1 %v2817_v40  ;;  %v5238_v33 = vld [vmem:[%s9936_s7 + $0x2a0] sm:$0xff]  ;;  %v5237_v40 = vld [vmem:[%s9936_s7 + $0x298] sm:$0xff] }
 0x9ac   :  { %2979 = vmatprep.subr.mxu0 %v5193_v43  ;;  %3062 = vmatprep.subr.mxu1 %v2816_v38  ;;  %v5250_v43 = vld [vmem:[%s9935_s6 + $0x48] sm:$0xff]  ;;  %v5236_v38 = vld [vmem:[%s9936_s7 + $0x290] sm:$0xff] }
 0x9ad   :  { %2980 = vmatpush1.msra.mxu0 %v5192_v39  ;;  %3063 = vmatpush1.msra.mxu1 %v2815_v41  ;;  %v5235_v39 = vld [vmem:[%s9936_s7 + $0x288] sm:$0xff]  ;;  %v5287_v41 = vld [vmem:[%s9936_s7 + $0x3f8] sm:$0xff] }
 0x9ae   :  { %2981 = vmatprep.subr.mxu0 %v5191_v45  ;;  %3064 = vmatprep.subr.mxu1 %v2814_v51  ;;  %v5234_v45 = vld [vmem:[%s9936_s7 + $0x280] sm:$0xff]  ;;  %v5286_v51 = vld [vmem:[%s9936_s7 + $0x3f0] sm:$0xff] }
 0x9af   :  { %2982 = vmatpush1.msra.mxu0 %v5190_v55  ;;  %3065 = vmatpush1.msra.mxu1 %v2813_v42  ;;  %v5233_v55 = vld [vmem:[%s9936_s7 + $0x278] sm:$0xff]  ;;  %v5251_v42 = vld [vmem:[%s9935_s6 + $0x50] sm:$0xff] }
 0x9b0   :  { %2983 = vmatprep.subr.mxu0 %v5189_v48  ;;  %3066 = vmatprep.subr.mxu1 %v2812_v49  ;;  %v5285_v48 = vld [vmem:[%s9936_s7 + $0x3e8] sm:$0xff]  ;;  %v5232_v49 = vld [vmem:[%s9936_s7 + $0x270] sm:$0xff] }
 0x9b1   :  { %2984 = vmatpush1.msra.mxu0 %v5188_v56  ;;  %3067 = vmatpush1.msra.mxu1 %v2811_v57  ;;  %v5284_v56 = vld [vmem:[%s9936_s7 + $0x3e0] sm:$0xff]  ;;  %v5231_v57 = vld [vmem:[%s9936_s7 + $0x268] sm:$0xff] }
 0x9b2   :  { %2985 = vmatprep.subr.mxu0 %v5187_v60  ;;  %3068 = vmatprep.subr.mxu1 %v2810_v1  ;;  %v5283_v60 = vld [vmem:[%s9936_s7 + $0x3d8] sm:$0xff]  ;;  %v5230_v1 = vld [vmem:[%s9936_s7 + $0x260] sm:$0xff] }
 0x9b3   :  { %2986 = vmatpush1.msra.mxu0 %v5186_v14  ;;  %3025 = vmatprep.mubr.f32.mxu0 %v6498_v0  ;;  %v5252_v14 = vld [vmem:[%s9935_s6 + $0x58] sm:$0xff] }
 0x9b4   :  { %2987 = vmatprep.subr.mxu0 %v5185_v10  ;;  %3108 = vmatprep.mubr.f32.mxu1 %v6498_v0  ;;  %v5282_v10 = vld [vmem:[%s9936_s7 + $0x3d0] sm:$0xff] }
 0x9b5   :  { %2988 = vmatpush1.msra.mxu0 %v5184_v6  ;;  %3069 = vmatpush1.msra.mxu1 %v2809_v29  ;;  %v5229_v6 = vld [vmem:[%s9936_s7 + $0x258] sm:$0xff] }
 0x9b6   :  { %2989 = vmatprep.subr.mxu0 %v5183_v12  ;;  %3070 = vmatprep.subr.mxu1 %v2808_v37  ;;  %v5281_v12 = vld [vmem:[%s9936_s7 + $0x3c8] sm:$0xff]  ;;  %v5279_v29 = vld [vmem:[%s9936_s7 + $0x3b8] sm:$0xff]  ;;  %v5226_v37 = vld [vmem:[%s9936_s7 + $0x240] sm:$0xff] }
 0x9b7   :  { %2990 = vmatpush1.msra.mxu0 %v5182_v22  ;;  %3071 = vmatpush1.msra.mxu1 %v2807_v46  ;;  %v5228_v22 = vld [vmem:[%s9936_s7 + $0x250] sm:$0xff] }
 0x9b8   :  { %2991 = vmatprep.subr.mxu0 %v5181_v24  ;;  %3072 = vmatprep.subr.mxu1 %v2806_v59  ;;  %v5280_v24 = vld [vmem:[%s9936_s7 + $0x3c0] sm:$0xff]  ;;  %v5278_v46 = vld [vmem:[%s9936_s7 + $0x3b0] sm:$0xff]  ;;  %v5225_v59 = vld [vmem:[%s9936_s7 + $0x238] sm:$0xff] }
 0x9b9   :  { %2992 = vmatpush1.msra.mxu0 %v5180_v53  ;;  %3073 = vmatpush1.msra.mxu1 %v2805_v50  ;;  %v5227_v53 = vld [vmem:[%s9936_s7 + $0x248] sm:$0xff] }
 0x9ba   :  { %6335 = vmatprep.subr.mxu0 %v6498_v0  ;;  %3074 = vmatprep.subr.mxu1 %v2804_v54  ;;  %v5277_v50 = vld [vmem:[%s9936_s7 + $0x3a8] sm:$0xff]  ;;  %v5224_v54 = vld [vmem:[%s9936_s7 + $0x230] sm:$0xff] }
 0x9bb   :  { %3075 = vmatpush1.msra.mxu1 %v2803_v58  ;;  %v5276_v58 = vld [vmem:[%s9936_s7 + $0x3a0] sm:$0xff] }
 0x9bc   :  { %3253 = vmatprep.subr.mxu1 %v5249_v16  ;;  %v5223_v16 = vld [vmem:[%s9936_s7 + $0x228] sm:$0xff] }
 0xa55   :  { %v2914_v3 = vpop.f32.mrf.mxu1  ;;  %v2789_v62 = vpop.f32.mrf.mxu0 }
 0xa56   :  { %3026 = vmatmul.mubr.f32.vlgmr.msra.gmra.mxu0 %v2914_v3  ;;  %3109 = vmatmul.mubr.f32.vlgmr.msra.gmra.mxu1 %v2789_v62  ;;  %v5275_v3 = vld [vmem:[%s9936_s7 + $0x398] sm:$0xff]  ;;  %v5222_v62 = vld [vmem:[%s9936_s7 + $0x220] sm:$0xff] }
 0xa57   :  { %6336 = vmatpush3.msra.mxu0 %v8558_v44  ;;  %v6328_v20 = vpop.f32.mrf.mxu1  ;;  %3031 = vmatprep.mubr.f32.mxu0 %v6498_v0  ;;  %v6305_v63 = vpop.f32.mrf.mxu0 }
 0xa58   :  { %6337 = vmatprep.subr.mxu0 %v6498_v0  ;;  %3114 = vmatprep.mubr.f32.mxu1 %v6498_v0  ;;  %v5221_v20 = vld [vmem:[%s9936_s7 + $0x218] sm:$0xff]  ;;  %v5273_v63 = vld [vmem:[%s9936_s7 + $0x388] sm:$0xff] }
 0xa59   :  { %6338 = vmatpush3.msra.mxu0 %v8561_v52  ;;  %v2919_v7 = vpop.f32.mrf.mxu1  ;;  %v2794_v13 = vpop.f32.mrf.mxu0  ;;  %3254 = vmatpush1.msra.mxu1 %v5248_v15  ;;  %v5274_v15 = vld [vmem:[%s9936_s7 + $0x390] sm:$0xff] }
 0xa5a   :  { %6339 = vmatprep.subr.mxu0 %v6498_v0  ;;  %3032 = vmatmul.mubr.f32.gmra.mxu0 %v2919_v7  ;;  %v5220_v7 = vld [vmem:[%s9936_s7 + $0x210] sm:$0xff] }
 0xa5b   :  { %6340 = vmatpush3.msra.mxu0 %v8568_v9  ;;  %v6331_v17 = vpop.f32.mrf.mxu1  ;;  %3037 = vmatprep.mubr.f32.mxu0 %v6498_v0  ;;  %v6308_v19 = vpop.f32.mrf.mxu0 }
 0xa5c   :  { %6341 = vmatprep.subr.mxu0 %v6498_v0  ;;  %3115 = vmatmul.mubr.f32.gmra.mxu1 %v2794_v13  ;;  %v5272_v13 = vld [vmem:[%s9936_s7 + $0x380] sm:$0xff]  ;;  %v5219_v17 = vld [vmem:[%s9936_s7 + $0x208] sm:$0xff]  ;;  %v5271_v19 = vld [vmem:[%s9936_s7 + $0x378] sm:$0xff] }
 0xa5d   :  { %6342 = vmatpush3.msra.mxu0 %v8574_v61  ;;  %v2924_v47 = vpop.f32.mrf.mxu1  ;;  %v2799_v21 = vpop.f32.mrf.mxu0  ;;  %3120 = vmatprep.mubr.f32.mxu1 %v6498_v0 }
 0xa5e   :  { %6343 = vmatprep.subr.mxu0 %v6498_v0  ;;  %3038 = vmatmul.mubr.f32.gmra.mxu0 %v2924_v47  ;;  %v5218_v47 = vld [vmem:[%s9936_s7 + $0x200] sm:$0xff] }
 0xa5f   :  { %6344 = vmatpush3.msra.mxu0 %v8580_v5  ;;  %6349 = vmatprep.mubr.msk.f32.mxu0 %vm6499_vm2, %v6498_v0  ;;  %v6334_v8 = vpop.f32.mrf.mxu1  ;;  %v6311_v27 = vpop.f32.mrf.mxu0 }
 0xa60   :  { %6345 = vmatprep.subr.mxu0 %v6498_v0  ;;  %3121 = vmatmul.mubr.f32.gmra.mxu1 %v2799_v21  ;;  %v5270_v21 = vld [vmem:[%s9936_s7 + $0x370] sm:$0xff]  ;;  %v5268_v8 = vld [vmem:[%s9936_s7 + $0x360] sm:$0xff] }
 0xa61   :  { %6346 = vmatpush3.msra.mxu0 %v8586_v11  ;;  %3255 = vmatprep.subr.mxu1 %v5247_v23  ;;  %v5269_v23 = vld [vmem:[%s9936_s7 + $0x368] sm:$0xff]  ;;  %v5266_v27 = vld [vmem:[%s9936_s7 + $0x350] sm:$0xff] }
 0xa62   :  { %6347 = vmatprep.subr.mxu0 %v6498_v0  ;;  %3256 = vmatpush1.msra.mxu1 %v5246_v26  ;;  %v5267_v26 = vld [vmem:[%s9936_s7 + $0x358] sm:$0xff] }
 0xa63   :  { %6348 = vmatpush3.msra.mxu0 %v8592_v18  ;;  %3257 = vmatprep.subr.mxu1 %v5245_v28  ;;  %v5265_v28 = vld [vmem:[%s9936_s7 + $0x348] sm:$0xff] }
 0xa64   :  { %6350 = vmatmul.mubr.msk.f32.vlgmr.msra.gmra.mxu0 %vm2713_vm3, %v5212_v2  ;;  %6358 = vmatprep.subr.mxu0 %v6498_v0  ;;  %v5264_v2 = vld [vmem:[%s9936_s7 + $0x340] sm:$0xff] }
 0xa65   :  { %6359 = vmatpush3.msra.mxu0 %v8558_v44  ;;  %6352 = vmatprep.mubr.msk.f32.mxu0 %vm6499_vm2, %v6498_v0 }
 0xa66   :  { %6360 = vmatprep.subr.mxu0 %v6498_v0  ;;  %3258 = vmatpush1.msra.mxu1 %v5244_v30  ;;  %v5263_v30 = vld [vmem:[%s9936_s7 + $0x338] sm:$0xff] }
 0xa67   :  { %6361 = vmatpush3.msra.mxu0 %v8561_v52  ;;  %3259 = vmatprep.subr.mxu1 %v5243_v32  ;;  %v5262_v32 = vld [vmem:[%s9936_s7 + $0x330] sm:$0xff] }
 0xa68   :  { %6353 = vmatmul.mubr.msk.f32.gmra.mxu0 %vm2713_vm3, %v5213_v34  ;;  %6362 = vmatprep.subr.mxu0 %v6498_v0  ;;  %v5261_v34 = vld [vmem:[%s9936_s7 + $0x328] sm:$0xff] }
 0xa69   :  { %6363 = vmatpush3.msra.mxu0 %v8568_v9  ;;  %6355 = vmatprep.mubr.msk.f32.mxu0 %vm6499_vm2, %v6498_v0 }
 0xa6a   :  { %6364 = vmatprep.subr.mxu0 %v6498_v0  ;;  %3260 = vmatpush1.msra.mxu1 %v5242_v35  ;;  %v5260_v35 = vld [vmem:[%s9936_s7 + $0x320] sm:$0xff] }
 0xa6b   :  { %6365 = vmatpush3.msra.mxu0 %v8574_v61  ;;  %3261 = vmatprep.subr.mxu1 %v5241_v36  ;;  %v5259_v36 = vld [vmem:[%s9936_s7 + $0x318] sm:$0xff] }
 0xa6c   :  { %6356 = vmatmul.mubr.msk.f32.gmra.mxu0 %vm2713_vm3, %v5214_v25  ;;  %6366 = vmatprep.subr.mxu0 %v6498_v0  ;;  %v5258_v25 = vld [vmem:[%s9936_s7 + $0x310] sm:$0xff] }
 0xa6d   :  { %6367 = vmatpush3.msra.mxu0 %v8580_v5  ;;  %6372 = vmatprep.mubr.msk.f32.mxu0 %vm6499_vm2, %v6498_v0 }
 0xa6e   :  { %6368 = vmatprep.subr.mxu0 %v6498_v0  ;;  %3262 = vmatpush1.msra.mxu1 %v5240_v4  ;;  %v5257_v4 = vld [vmem:[%s9936_s7 + $0x308] sm:$0xff] }
 0xa6f   :  { %6369 = vmatpush3.msra.mxu0 %v8586_v11  ;;  %3263 = vmatprep.subr.mxu1 %v5239_v31  ;;  %v5256_v31 = vld [vmem:[%s9936_s7 + $0x300] sm:$0xff] }
 0xa70   :  { %6370 = vmatprep.subr.mxu0 %v6498_v0  ;;  %3264 = vmatpush1.msra.mxu1 %v5238_v33 }
 0xa71   :  { %6371 = vmatpush3.msra.mxu0 %v8592_v18  ;;  %3265 = vmatprep.subr.mxu1 %v5237_v40 }
 0xa72   :  { %6373 = vmatmul.mubr.msk.f32.vlgmr.msra.gmra.mxu0 %vm2713_vm3, %v5250_v43  ;;  %3266 = vmatpush1.msra.mxu1 %v5236_v38 }
 0xa73   :  { %6375 = vmatprep.mubr.msk.f32.mxu0 %vm6499_vm2, %v6498_v0  ;;  %3267 = vmatprep.subr.mxu1 %v5235_v39 }
 0xa74   :  { %3468 = vmatprep.subr.mxu0 %v5287_v41  ;;  %3268 = vmatpush1.msra.mxu1 %v5234_v45 }
 0xa75   :  { %3469 = vmatpush1.msra.mxu0 %v5286_v51  ;;  %3269 = vmatprep.subr.mxu1 %v5233_v55 }
 0xa76   :  { %6376 = vmatmul.mubr.msk.f32.gmra.mxu0 %vm2713_vm3, %v5251_v42  ;;  %3470 = vmatprep.subr.mxu0 %v5285_v48 }
 0xa77   :  { %6378 = vmatprep.mubr.msk.f32.mxu0 %vm6499_vm2, %v6498_v0  ;;  %3270 = vmatpush1.msra.mxu1 %v5232_v49 }
 0xa78   :  { %3471 = vmatpush1.msra.mxu0 %v5284_v56  ;;  %3271 = vmatprep.subr.mxu1 %v5231_v57 }
 0xa79   :  { %3472 = vmatprep.subr.mxu0 %v5283_v60  ;;  %3272 = vmatpush1.msra.mxu1 %v5230_v1 }
 0xa7a   :  { %6379 = vmatmul.mubr.msk.f32.gmra.mxu0 %vm2713_vm3, %v5252_v14  ;;  %3317 = vmatprep.mubr.f32.mxu1 %v6498_v0 }
 0xa7b   :  { %3473 = vmatpush1.msra.mxu0 %v5282_v10  ;;  %3532 = vmatprep.mubr.f32.mxu0 %v6498_v0 }
 0xa7c   :  { %3273 = vmatprep.subr.mxu1 %v5229_v6  ;;  %3474 = vmatprep.subr.mxu0 %v5281_v12 }
 0xa7d   :  { %3274 = vmatpush1.msra.mxu1 %v5228_v22  ;;  %3475 = vmatpush1.msra.mxu0 %v5280_v24 }
 0xa7e   :  { %3275 = vmatprep.subr.mxu1 %v5227_v53  ;;  %3476 = vmatprep.subr.mxu0 %v5279_v29  ;;  %v5288_v53 = vld [vmem:[%s9935_s6 + $0x60] sm:$0xff] }
 0xa7f   :  { %3276 = vmatpush1.msra.mxu1 %v5226_v37  ;;  %3477 = vmatpush1.msra.mxu0 %v5278_v46  ;;  %v5325_v37 = vld [vmem:[%s9936_s7 + $0x4f8] sm:$0xff] }
 0xa80   :  { %3277 = vmatprep.subr.mxu1 %v5225_v59  ;;  %3478 = vmatprep.subr.mxu0 %v5277_v50  ;;  %v5289_v59 = vld [vmem:[%s9935_s6 + $0x68] sm:$0xff] }
 0xa81   :  { %3278 = vmatpush1.msra.mxu1 %v5224_v54  ;;  %3479 = vmatpush1.msra.mxu0 %v5276_v58  ;;  %v5324_v54 = vld [vmem:[%s9936_s7 + $0x4f0] sm:$0xff] }
 0xa82   :  { %3279 = vmatprep.subr.mxu1 %v5223_v16  ;;  %3480 = vmatprep.subr.mxu0 %v5275_v3  ;;  %v5290_v16 = vld [vmem:[%s9935_s6 + $0x70] sm:$0xff] }
 0xa83   :  { %3280 = vmatpush1.msra.mxu1 %v5222_v62  ;;  %3481 = vmatpush1.msra.mxu0 %v5274_v15  ;;  %v5323_v62 = vld [vmem:[%s9936_s7 + $0x4e8] sm:$0xff]  ;;  %v5322_v15 = vld [vmem:[%s9936_s7 + $0x4e0] sm:$0xff] }
 0xa84   :  { %3281 = vmatprep.subr.mxu1 %v5221_v20  ;;  %3482 = vmatprep.subr.mxu0 %v5273_v63  ;;  %v5321_v63 = vld [vmem:[%s9936_s7 + $0x4d8] sm:$0xff] }
 0xa85   :  { %3282 = vmatpush1.msra.mxu1 %v5220_v7  ;;  %3483 = vmatpush1.msra.mxu0 %v5272_v13  ;;  %v5320_v7 = vld [vmem:[%s9936_s7 + $0x4d0] sm:$0xff]  ;;  %v5326_v13 = vld [vmem:[%s9935_s6 + $0x78] sm:$0xff] }
 0xa86   :  { %3283 = vmatprep.subr.mxu1 %v5219_v17  ;;  %3484 = vmatprep.subr.mxu0 %v5271_v19  ;;  %v5319_v17 = vld [vmem:[%s9936_s7 + $0x4c8] sm:$0xff]  ;;  %v5318_v19 = vld [vmem:[%s9936_s7 + $0x4c0] sm:$0xff] }
 0xa87   :  { %3284 = vmatpush1.msra.mxu1 %v5218_v47  ;;  %3485 = vmatpush1.msra.mxu0 %v5270_v21  ;;  %v5317_v47 = vld [vmem:[%s9936_s7 + $0x4b8] sm:$0xff] }
 0xa88   :  { %6381 = vmatprep.subr.mxu1 %v6498_v0  ;;  %3486 = vmatprep.subr.mxu0 %v5269_v23  ;;  %v5363_v21 = vld [vmem:[%s9936_s7 + $0x5f8] sm:$0xff]  ;;  %v5316_v23 = vld [vmem:[%s9936_s7 + $0x4b0] sm:$0xff] }
 0xa89   :  { %3487 = vmatpush1.msra.mxu0 %v5268_v8  ;;  %v5362_v8 = vld [vmem:[%s9936_s7 + $0x5f0] sm:$0xff] }
 0xa8a   :  { %3488 = vmatprep.subr.mxu0 %v5267_v26  ;;  %v5327_v26 = vld [vmem:[%s9935_s6 + $0x80] sm:$0xff] }
 0xa8b   :  { %3489 = vmatpush1.msra.mxu0 %v5266_v27  ;;  %v5315_v27 = vld [vmem:[%s9936_s7 + $0x4a8] sm:$0xff] }
 0xa8c   :  { %3490 = vmatprep.subr.mxu0 %v5265_v28  ;;  %v5314_v28 = vld [vmem:[%s9936_s7 + $0x4a0] sm:$0xff] }
 0xa8d   :  { %3491 = vmatpush1.msra.mxu0 %v5264_v2  ;;  %v5313_v2 = vld [vmem:[%s9936_s7 + $0x498] sm:$0xff] }
 0xa8e   :  { %3492 = vmatprep.subr.mxu0 %v5263_v30  ;;  %v5361_v30 = vld [vmem:[%s9936_s7 + $0x5e8] sm:$0xff] }
 0xa8f   :  { %3493 = vmatpush1.msra.mxu0 %v5262_v32  ;;  %v5312_v32 = vld [vmem:[%s9936_s7 + $0x490] sm:$0xff] }
 0xa90   :  { %3494 = vmatprep.subr.mxu0 %v5261_v34  ;;  %v5360_v34 = vld [vmem:[%s9936_s7 + $0x5e0] sm:$0xff] }
 0xa91   :  { %3495 = vmatpush1.msra.mxu0 %v5260_v35  ;;  %v5328_v35 = vld [vmem:[%s9935_s6 + $0x88] sm:$0xff] }
 0xa92   :  { %3496 = vmatprep.subr.mxu0 %v5259_v36  ;;  %v5311_v36 = vld [vmem:[%s9936_s7 + $0x488] sm:$0xff] }
 0xa93   :  { %3497 = vmatpush1.msra.mxu0 %v5258_v25  ;;  %v5310_v25 = vld [vmem:[%s9936_s7 + $0x480] sm:$0xff] }
 0xa94   :  { %3498 = vmatprep.subr.mxu0 %v5257_v4  ;;  %v5359_v4 = vld [vmem:[%s9936_s7 + $0x5d8] sm:$0xff] }
 0xa95   :  { %3499 = vmatpush1.msra.mxu0 %v5256_v31  ;;  %v5309_v31 = vld [vmem:[%s9936_s7 + $0x478] sm:$0xff] }
 0xa96   :  { %6404 = vmatprep.subr.mxu0 %v6498_v0 }
 0xb16   :  { %v3027_v33 = vpop.f32.mrf.mxu0  ;;  %v3110_v40 = vpop.f32.mrf.mxu1 }
 0xb17   :  { %v9090_v43 = vadd.f32 %v3110_v40, %v3027_v33  ;;  %v5308_v33 = vld [vmem:[%s9936_s7 + $0x470] sm:$0xff]  ;;  %v5307_v40 = vld [vmem:[%s9936_s7 + $0x468] sm:$0xff] }
 0xb18   :  { %v3029_v38 = vpop.f32.mrf.mxu0  ;;  %v3112_v39 = vpop.f32.mrf.mxu1 }
 0xb19   :  { %v9092_v41 = vadd.f32 %v3112_v39, %v3029_v38  ;;  %v5306_v38 = vld [vmem:[%s9936_s7 + $0x460] sm:$0xff]  ;;  %v5358_v39 = vld [vmem:[%s9936_s7 + $0x5d0] sm:$0xff] }
 0xb1a   :  { %v3033_v45 = vpop.f32.mrf.mxu0 }
 0xb1c   :  { %v3035_v51 = vpop.f32.mrf.mxu0  ;;  %v3116_v55 = vpop.f32.mrf.mxu1 }
 0xb1d   :  { %v9094_v42 = vadd.f32 %v3116_v55, %v3033_v45  ;;  %v5305_v45 = vld [vmem:[%s9936_s7 + $0x458] sm:$0xff]  ;;  %v5304_v55 = vld [vmem:[%s9936_s7 + $0x450] sm:$0xff] }
 0xb1e   :  { %v3039_v48 = vpop.f32.mrf.mxu0  ;;  %v3118_v49 = vpop.f32.mrf.mxu1 }
 0xb1f   :  { %v9096_v56 = vadd.f32 %v3118_v49, %v3035_v51  ;;  %v5357_v51 = vld [vmem:[%s9936_s7 + $0x5c8] sm:$0xff] }
 0xb20   :  { %v9098_v57 = vpop.f32.mrf.mxu0  ;;  %v3122_v60 = vpop.f32.mrf.mxu1  ;;  %v5303_v49 = vld [vmem:[%s9936_s7 + $0x448] sm:$0xff] }
 0xb21   :  { %v9100_v1 = vadd.f32 %v3122_v60, %v3039_v48  ;;  %v5356_v48 = vld [vmem:[%s9936_s7 + $0x5c0] sm:$0xff]  ;;  %v5355_v60 = vld [vmem:[%s9936_s7 + $0x5b8] sm:$0xff] }
 0xb24   :  { %v3206_v14 = vpop.f32.mrf.mxu0 }
 0xb25   :  { %3318 = vmatmul.mubr.f32.vlgmr.msra.gmra.mxu1 %v3206_v14  ;;  %v5302_v14 = vld [vmem:[%s9936_s7 + $0x440] sm:$0xff] }
 0xb26   :  { %6382 = vmatpush3.msra.mxu1 %v8558_v44  ;;  %v6351_v10 = vpop.f32.mrf.mxu0  ;;  %3323 = vmatprep.mubr.f32.mxu1 %v6498_v0 }
 0xb27   :  { %6383 = vmatprep.subr.mxu1 %v6498_v0  ;;  %v5354_v10 = vld [vmem:[%s9936_s7 + $0x5b0] sm:$0xff] }
 0xb28   :  { %6384 = vmatpush3.msra.mxu1 %v8561_v52  ;;  %v3211_v6 = vpop.f32.mrf.mxu0 }
 0xb29   :  { %6385 = vmatprep.subr.mxu1 %v6498_v0  ;;  %3324 = vmatmul.mubr.f32.gmra.mxu1 %v3211_v6  ;;  %v5301_v6 = vld [vmem:[%s9936_s7 + $0x438] sm:$0xff] }
 0xb2a   :  { %6386 = vmatpush3.msra.mxu1 %v8568_v9  ;;  %v6354_v12 = vpop.f32.mrf.mxu0  ;;  %3329 = vmatprep.mubr.f32.mxu1 %v6498_v0 }
 0xb2b   :  { %6387 = vmatprep.subr.mxu1 %v6498_v0  ;;  %v5353_v12 = vld [vmem:[%s9936_s7 + $0x5a8] sm:$0xff] }
 0xb2c   :  { %6388 = vmatpush3.msra.mxu1 %v8574_v61  ;;  %v3216_v22 = vpop.f32.mrf.mxu0 }
 0xb2d   :  { %6389 = vmatprep.subr.mxu1 %v6498_v0  ;;  %3330 = vmatmul.mubr.f32.gmra.mxu1 %v3216_v22  ;;  %v5300_v22 = vld [vmem:[%s9936_s7 + $0x430] sm:$0xff] }
 0xb2e   :  { %6390 = vmatpush3.msra.mxu1 %v8580_v5  ;;  %v6357_v24 = vpop.f32.mrf.mxu0  ;;  %6395 = vmatprep.mubr.msk.f32.mxu1 %vm6499_vm2, %v6498_v0 }
 0xb2f   :  { %6391 = vmatprep.subr.mxu1 %v6498_v0  ;;  %v5352_v24 = vld [vmem:[%s9936_s7 + $0x5a0] sm:$0xff] }
 0xb30   :  { %6392 = vmatpush3.msra.mxu1 %v8586_v11 }
 0xb31   :  { %6393 = vmatprep.subr.mxu1 %v6498_v0 }
 0xb32   :  { %6394 = vmatpush3.msra.mxu1 %v8592_v18  ;;  %v3421_v29 = vpop.f32.mrf.mxu0 }
 0xb33   :  { %6396 = vmatmul.mubr.msk.f32.vlgmr.msra.gmra.mxu1 %vm2713_vm3, %v5288_v53  ;;  %3533 = vmatmul.mubr.f32.vlgmr.msra.gmra.mxu0 %v3421_v29  ;;  %v5299_v53 = vld [vmem:[%s9936_s7 + $0x428] sm:$0xff]  ;;  %v5351_v29 = vld [vmem:[%s9936_s7 + $0x598] sm:$0xff] }
 0xb34   :  { %6405 = vmatpush3.msra.mxu0 %v8558_v44  ;;  %v6374_v46 = vpop.f32.mrf.mxu0  ;;  %6398 = vmatprep.mubr.msk.f32.mxu1 %vm6499_vm2, %v6498_v0 }
 0xb35   :  { %6406 = vmatprep.subr.mxu0 %v6498_v0  ;;  %3538 = vmatprep.mubr.f32.mxu0 %v6498_v0  ;;  %v5350_v46 = vld [vmem:[%s9936_s7 + $0x590] sm:$0xff] }
 0xb36   :  { %6407 = vmatpush3.msra.mxu0 %v8561_v52  ;;  %v3426_v50 = vpop.f32.mrf.mxu0  ;;  %3683 = vmatprep.subr.mxu1 %v5325_v37  ;;  %v5298_v37 = vld [vmem:[%s9936_s7 + $0x420] sm:$0xff] }
 0xb37   :  { %6399 = vmatmul.mubr.msk.f32.gmra.mxu1 %vm2713_vm3, %v5289_v59  ;;  %6408 = vmatprep.subr.mxu0 %v6498_v0  ;;  %v5297_v59 = vld [vmem:[%s9936_s7 + $0x418] sm:$0xff] }
 0xb38   :  { %3539 = vmatmul.mubr.f32.gmra.mxu0 %v3426_v50  ;;  %v6377_v58 = vpop.f32.mrf.mxu0  ;;  %6401 = vmatprep.mubr.msk.f32.mxu1 %vm6499_vm2, %v6498_v0  ;;  %v5349_v50 = vld [vmem:[%s9936_s7 + $0x588] sm:$0xff] }
 0xb39   :  { %6409 = vmatpush3.msra.mxu0 %v8568_v9  ;;  %3544 = vmatprep.mubr.f32.mxu0 %v6498_v0  ;;  %v5348_v58 = vld [vmem:[%s9936_s7 + $0x580] sm:$0xff] }
 0xb3a   :  { %6410 = vmatprep.subr.mxu0 %v6498_v0  ;;  %v3431_v3 = vpop.f32.mrf.mxu0  ;;  %3684 = vmatpush1.msra.mxu1 %v5324_v54  ;;  %v5296_v54 = vld [vmem:[%s9936_s7 + $0x410] sm:$0xff] }
 0xb3b   :  { %6411 = vmatpush3.msra.mxu0 %v8574_v61  ;;  %6402 = vmatmul.mubr.msk.f32.gmra.mxu1 %vm2713_vm3, %v5290_v16  ;;  %v5295_v16 = vld [vmem:[%s9936_s7 + $0x408] sm:$0xff] }
 0xb3c   :  { %6412 = vmatprep.subr.mxu0 %v6498_v0  ;;  %3545 = vmatmul.mubr.f32.gmra.mxu0 %v3431_v3  ;;  %v6380_v20 = vpop.f32.mrf.mxu0  ;;  %v5347_v3 = vld [vmem:[%s9936_s7 + $0x578] sm:$0xff] }
 0xb3d   :  { %6413 = vmatpush3.msra.mxu0 %v8580_v5  ;;  %6418 = vmatprep.mubr.msk.f32.mxu0 %vm6499_vm2, %v6498_v0  ;;  %v5345_v20 = vld [vmem:[%s9936_s7 + $0x568] sm:$0xff] }
 0xb3e   :  { %6414 = vmatprep.subr.mxu0 %v6498_v0  ;;  %3685 = vmatprep.subr.mxu1 %v5323_v62  ;;  %v5294_v62 = vld [vmem:[%s9936_s7 + $0x400] sm:$0xff] }
 0xb3f   :  { %6415 = vmatpush3.msra.mxu0 %v8586_v11  ;;  %3686 = vmatpush1.msra.mxu1 %v5322_v15  ;;  %v5346_v15 = vld [vmem:[%s9936_s7 + $0x570] sm:$0xff] }
 0xb40   :  { %6416 = vmatprep.subr.mxu0 %v6498_v0  ;;  %3687 = vmatprep.subr.mxu1 %v5321_v63  ;;  %v5344_v63 = vld [vmem:[%s9936_s7 + $0x560] sm:$0xff] }
 0xb41   :  { %6417 = vmatpush3.msra.mxu0 %v8592_v18  ;;  %3688 = vmatpush1.msra.mxu1 %v5320_v7  ;;  %v5343_v7 = vld [vmem:[%s9936_s7 + $0x558] sm:$0xff] }
 0xb42   :  { %6419 = vmatmul.mubr.msk.f32.vlgmr.msra.gmra.mxu0 %vm2713_vm3, %v5326_v13  ;;  %3689 = vmatprep.subr.mxu1 %v5319_v17  ;;  %v5342_v13 = vld [vmem:[%s9936_s7 + $0x550] sm:$0xff]  ;;  %v5341_v17 = vld [vmem:[%s9936_s7 + $0x548] sm:$0xff] }
 0xb43   :  { %6421 = vmatprep.mubr.msk.f32.mxu0 %vm6499_vm2, %v6498_v0  ;;  %3690 = vmatpush1.msra.mxu1 %v5318_v19  ;;  %v5340_v19 = vld [vmem:[%s9936_s7 + $0x540] sm:$0xff] }
 0xb44   :  { %3691 = vmatprep.subr.mxu1 %v5317_v47  ;;  %3898 = vmatprep.subr.mxu0 %v5363_v21  ;;  %v5339_v47 = vld [vmem:[%s9936_s7 + $0x538] sm:$0xff]  ;;  %v5338_v21 = vld [vmem:[%s9936_s7 + $0x530] sm:$0xff] }
 0xb45   :  { %3692 = vmatpush1.msra.mxu1 %v5316_v23  ;;  %3899 = vmatpush1.msra.mxu0 %v5362_v8  ;;  %v5337_v23 = vld [vmem:[%s9936_s7 + $0x528] sm:$0xff]  ;;  %v5336_v8 = vld [vmem:[%s9936_s7 + $0x520] sm:$0xff] }
 0xb46   :  { %6422 = vmatmul.mubr.msk.f32.gmra.mxu0 %vm2713_vm3, %v5327_v26  ;;  %3693 = vmatprep.subr.mxu1 %v5315_v27  ;;  %v5335_v26 = vld [vmem:[%s9936_s7 + $0x518] sm:$0xff]  ;;  %v5334_v27 = vld [vmem:[%s9936_s7 + $0x510] sm:$0xff] }
 0xb47   :  { %6424 = vmatprep.mubr.msk.f32.mxu0 %vm6499_vm2, %v6498_v0  ;;  %3694 = vmatpush1.msra.mxu1 %v5314_v28  ;;  %v5333_v28 = vld [vmem:[%s9936_s7 + $0x508] sm:$0xff] }
 0xb48   :  { %3695 = vmatprep.subr.mxu1 %v5313_v2  ;;  %3900 = vmatprep.subr.mxu0 %v5361_v30  ;;  %v5332_v2 = vld [vmem:[%s9936_s7 + $0x500] sm:$0xff]  ;;  %v3124_v30 = vpop.f32.mrf.mxu1 }
 0xb49   :  { %3696 = vmatpush1.msra.mxu1 %v5312_v32  ;;  %3901 = vmatpush1.msra.mxu0 %v5360_v34 }
 0xb4a   :  { %6425 = vmatmul.mubr.msk.f32.gmra.mxu0 %vm2713_vm3, %v5328_v35  ;;  %3697 = vmatprep.subr.mxu1 %v5311_v36 }
 0xb4b   :  { %3698 = vmatpush1.msra.mxu1 %v5310_v25  ;;  %3902 = vmatprep.subr.mxu0 %v5359_v4 }
 0xb4c   :  { %3699 = vmatprep.subr.mxu1 %v5309_v31  ;;  %3747 = vmatprep.mubr.f32.mxu1 %v6498_v0 }
 0xb4d   :  { %3700 = vmatpush1.msra.mxu1 %v5308_v33  ;;  %3962 = vmatprep.mubr.f32.mxu0 %v6498_v0 }
 0xb4e   :  { %3701 = vmatprep.subr.mxu1 %v5307_v40  ;;  %3903 = vmatpush1.msra.mxu0 %v5358_v39 }
 0xb4f   :  { %3702 = vmatpush1.msra.mxu1 %v5306_v38  ;;  %3904 = vmatprep.subr.mxu0 %v5357_v51  ;;  %v3125_v38 = vadd.f32 %v3124_v30, %v9098_v57  ;;  %v5390_v30 = vld [vmem:[%s9936_s7 + $0x6a0] sm:$0xff] }
 0xb50   :  { %3703 = vmatprep.subr.mxu1 %v5305_v45  ;;  %3905 = vmatpush1.msra.mxu0 %v5356_v48 }
 0xb51   :  { %3704 = vmatpush1.msra.mxu1 %v5304_v55  ;;  %3906 = vmatprep.subr.mxu0 %v5355_v60 }
 0xb52   :  { %3705 = vmatprep.subr.mxu1 %v5303_v49  ;;  %3907 = vmatpush1.msra.mxu0 %v5354_v10 }
 0xb53   :  { %3706 = vmatpush1.msra.mxu1 %v5302_v14  ;;  %3908 = vmatprep.subr.mxu0 %v5353_v12 }
 0xb54   :  { %3707 = vmatprep.subr.mxu1 %v5301_v6  ;;  %3909 = vmatpush1.msra.mxu0 %v5352_v24 }
 0xb55   :  { %3708 = vmatpush1.msra.mxu1 %v5300_v22  ;;  %3910 = vmatprep.subr.mxu0 %v5351_v29 }
 0xb56   :  { %3709 = vmatprep.subr.mxu1 %v5299_v53  ;;  %3911 = vmatpush1.msra.mxu0 %v5350_v46  ;;  %v5401_v46 = vld [vmem:[%s9936_s7 + $0x6f8] sm:$0xff] }
 0xb57   :  { %3710 = vmatpush1.msra.mxu1 %v5298_v37  ;;  %3912 = vmatprep.subr.mxu0 %v5349_v50  ;;  %v5364_v37 = vld [vmem:[%s9935_s6 + $0x90] sm:$0xff] }
 0xb58   :  { %3711 = vmatprep.subr.mxu1 %v5297_v59  ;;  %3913 = vmatpush1.msra.mxu0 %v5348_v58  ;;  %v5400_v50 = vld [vmem:[%s9936_s7 + $0x6f0] sm:$0xff] }
 0xb59   :  { %3712 = vmatpush1.msra.mxu1 %v5296_v54  ;;  %3914 = vmatprep.subr.mxu0 %v5347_v3  ;;  %v5365_v54 = vld [vmem:[%s9935_s6 + $0x98] sm:$0xff]  ;;  %v5366_v3 = vld [vmem:[%s9935_s6 + $0xa0] sm:$0xff] }
 0xb5a   :  { %3713 = vmatprep.subr.mxu1 %v5295_v16  ;;  %3915 = vmatpush1.msra.mxu0 %v5346_v15 }
 0xb5b   :  { %3714 = vmatpush1.msra.mxu1 %v5294_v62  ;;  %3916 = vmatprep.subr.mxu0 %v5345_v20  ;;  %v5399_v20 = vld [vmem:[%s9936_s7 + $0x6e8] sm:$0xff] }
 0xb5c   :  { %6427 = vmatprep.subr.mxu1 %v6498_v0  ;;  %3917 = vmatpush1.msra.mxu0 %v5344_v63  ;;  %v5398_v63 = vld [vmem:[%s9936_s7 + $0x6e0] sm:$0xff] }
 0xb5d   :  { %3918 = vmatprep.subr.mxu0 %v5343_v7  ;;  %v5397_v7 = vld [vmem:[%s9936_s7 + $0x6d8] sm:$0xff] }
 0xb5e   :  { %3919 = vmatpush1.msra.mxu0 %v5342_v13 }
 0xb5f   :  { %3920 = vmatprep.subr.mxu0 %v5341_v17  ;;  %v5396_v17 = vld [vmem:[%s9936_s7 + $0x6d0] sm:$0xff] }
 0xb60   :  { %3921 = vmatpush1.msra.mxu0 %v5340_v19  ;;  %v5402_v19 = vld [vmem:[%s9935_s6 + $0xa8] sm:$0xff] }
 0xb61   :  { %3922 = vmatprep.subr.mxu0 %v5339_v47  ;;  %v5395_v47 = vld [vmem:[%s9936_s7 + $0x6c8] sm:$0xff] }
 0xb62   :  { %3923 = vmatpush1.msra.mxu0 %v5338_v21  ;;  %v5394_v21 = vld [vmem:[%s9936_s7 + $0x6c0] sm:$0xff] }
 0xb63   :  { %3924 = vmatprep.subr.mxu0 %v5337_v23  ;;  %v5393_v23 = vld [vmem:[%s9936_s7 + $0x6b8] sm:$0xff] }
 0xb64   :  { %3925 = vmatpush1.msra.mxu0 %v5336_v8  ;;  %v5439_v8 = vld [vmem:[%s9936_s7 + $0x7f8] sm:$0xff] }
 0xb65   :  { %3926 = vmatprep.subr.mxu0 %v5335_v26  ;;  %v5392_v26 = vld [vmem:[%s9936_s7 + $0x6b0] sm:$0xff] }
 0xb66   :  { %3927 = vmatpush1.msra.mxu0 %v5334_v27  ;;  %v5438_v27 = vld [vmem:[%s9936_s7 + $0x7f0] sm:$0xff] }
 0xb67   :  { %3928 = vmatprep.subr.mxu0 %v5333_v28  ;;  %v5403_v28 = vld [vmem:[%s9935_s6 + $0xb0] sm:$0xff] }
 0xb68   :  { %3929 = vmatpush1.msra.mxu0 %v5332_v2  ;;  %v5391_v2 = vld [vmem:[%s9936_s7 + $0x6a8] sm:$0xff] }
 0xb69   :  { %6450 = vmatprep.subr.mxu0 %v6498_v0 }
 0xbe5   :  { %v3319_v32 = vpop.f32.mrf.mxu1 }
 0xbe6   :  { %v3336_v34 = vadd.f32 %v3319_v32, %v9090_v43  ;;  %v5389_v32 = vld [vmem:[%s9936_s7 + $0x698] sm:$0xff] }
 0xbe7   :  { %v3321_v35 = vpop.f32.mrf.mxu1 }
 0xbe8   :  { %v3337_v36 = vadd.f32 %v3321_v35, %v9092_v41  ;;  %v5388_v35 = vld [vmem:[%s9936_s7 + $0x690] sm:$0xff] }
 0xbe9   :  { %v3325_v25 = vpop.f32.mrf.mxu1 }
 0xbea   :  { %v3338_v4 = vadd.f32 %v3325_v25, %v9094_v42  ;;  %v5404_v25 = vld [vmem:[%s9935_s6 + $0xb8] sm:$0xff] }
 0xbeb   :  { %v3327_v31 = vpop.f32.mrf.mxu1 }
 0xbec   :  { %v3339_v33 = vadd.f32 %v3327_v31, %v9096_v56  ;;  %v5386_v31 = vld [vmem:[%s9936_s7 + $0x680] sm:$0xff] }
 0xbed   :  { %v3331_v40 = vpop.f32.mrf.mxu1 }
 0xbee   :  { %v3340_v39 = vadd.f32 %v3331_v40, %v9100_v1  ;;  %v5384_v40 = vld [vmem:[%s9936_s7 + $0x670] sm:$0xff] }
 0xbef   :  { %v3333_v45 = vpop.f32.mrf.mxu1 }
 0xbf0   :  { %v3341_v51 = vadd.f32 %v3333_v45, %v3125_v38  ;;  %v5383_v38 = vld [vmem:[%s9936_s7 + $0x668] sm:$0xff]  ;;  %v5435_v45 = vld [vmem:[%s9936_s7 + $0x7d8] sm:$0xff] }
 0xbf3   :  { %v3636_v55 = vpop.f32.mrf.mxu1  ;;  %v3534_v48 = vpop.f32.mrf.mxu0 }
 0xbf4   :  { %v9370_v49 = vadd.f32 %v3534_v48, %v3336_v34  ;;  %3748 = vmatmul.mubr.f32.vlgmr.msra.gmra.mxu1 %v3636_v55  ;;  %v5437_v34 = vld [vmem:[%s9936_s7 + $0x7e8] sm:$0xff]  ;;  %v5434_v55 = vld [vmem:[%s9936_s7 + $0x7d0] sm:$0xff] }
 0xbf5   :  { %6428 = vmatpush3.msra.mxu1 %v8558_v44  ;;  %v6397_v43 = vpop.f32.mrf.mxu1  ;;  %v3536_v41 = vpop.f32.mrf.mxu0  ;;  %3753 = vmatprep.mubr.f32.mxu1 %v6498_v0  ;;  %v5380_v48 = vld [vmem:[%s9936_s7 + $0x650] sm:$0xff] }
 0xbf6   :  { %6429 = vmatprep.subr.mxu1 %v6498_v0  ;;  %v9375_v42 = vadd.f32 %v3536_v41, %v3337_v36  ;;  %v5436_v36 = vld [vmem:[%s9936_s7 + $0x7e0] sm:$0xff]  ;;  %v5433_v43 = vld [vmem:[%s9936_s7 + $0x7c8] sm:$0xff] }
 0xbf7   :  { %6430 = vmatpush3.msra.mxu1 %v8561_v52  ;;  %v3641_v56 = vpop.f32.mrf.mxu1  ;;  %v5379_v41 = vld [vmem:[%s9936_s7 + $0x648] sm:$0xff] }
 0xbf8   :  { %6431 = vmatprep.subr.mxu1 %v6498_v0  ;;  %v3540_v57 = vpop.f32.mrf.mxu0  ;;  %3754 = vmatmul.mubr.f32.gmra.mxu1 %v3641_v56  ;;  %v5432_v56 = vld [vmem:[%s9936_s7 + $0x7c0] sm:$0xff] }
 0xbf9   :  { %v9379_v1 = vadd.f32 %v3540_v57, %v3338_v4  ;;  %6432 = vmatpush3.msra.mxu1 %v8568_v9  ;;  %v6400_v60 = vpop.f32.mrf.mxu1  ;;  %3759 = vmatprep.mubr.f32.mxu1 %v6498_v0  ;;  %v5387_v4 = vld [vmem:[%s9936_s7 + $0x688] sm:$0xff]  ;;  %v5378_v57 = vld [vmem:[%s9936_s7 + $0x640] sm:$0xff] }
 0xbfa   :  { %6433 = vmatprep.subr.mxu1 %v6498_v0  ;;  %v3542_v14 = vpop.f32.mrf.mxu0  ;;  %v5431_v60 = vld [vmem:[%s9936_s7 + $0x7b8] sm:$0xff] }
 0xbfb   :  { %v9384_v10 = vadd.f32 %v3542_v14, %v3339_v33  ;;  %6434 = vmatpush3.msra.mxu1 %v8574_v61  ;;  %v3646_v6 = vpop.f32.mrf.mxu1  ;;  %v5385_v33 = vld [vmem:[%s9936_s7 + $0x678] sm:$0xff] }
 0xbfc   :  { %6435 = vmatprep.subr.mxu1 %v6498_v0  ;;  %v3546_v12 = vpop.f32.mrf.mxu0  ;;  %3760 = vmatmul.mubr.f32.gmra.mxu1 %v3646_v6  ;;  %v5377_v14 = vld [vmem:[%s9936_s7 + $0x638] sm:$0xff]  ;;  %v5430_v6 = vld [vmem:[%s9936_s7 + $0x7b0] sm:$0xff] }
 0xbfd   :  { %v9388_v22 = vadd.f32 %v3546_v12, %v3340_v39  ;;  %6436 = vmatpush3.msra.mxu1 %v8580_v5  ;;  %6441 = vmatprep.mubr.msk.f32.mxu1 %vm6499_vm2, %v6498_v0  ;;  %v6403_v24 = vpop.f32.mrf.mxu1  ;;  %v5382_v39 = vld [vmem:[%s9936_s7 + $0x660] sm:$0xff]  ;;  %v5376_v12 = vld [vmem:[%s9936_s7 + $0x630] sm:$0xff] }
 0xbfe   :  { %6437 = vmatprep.subr.mxu1 %v6498_v0  ;;  %v3548_v53 = vpop.f32.mrf.mxu0  ;;  %v5429_v24 = vld [vmem:[%s9936_s7 + $0x7a8] sm:$0xff] }
 0xbff   :  { %v9394_v29 = vadd.f32 %v3548_v53, %v3341_v51  ;;  %6438 = vmatpush3.msra.mxu1 %v8586_v11  ;;  %v5381_v51 = vld [vmem:[%s9936_s7 + $0x658] sm:$0xff]  ;;  %v5375_v53 = vld [vmem:[%s9936_s7 + $0x628] sm:$0xff] }
 0xc00   :  { %6439 = vmatprep.subr.mxu1 %v6498_v0 }
 0xc01   :  { %6440 = vmatpush3.msra.mxu1 %v8592_v18 }
 0xc02   :  { %v3851_v59 = vpop.f32.mrf.mxu0  ;;  %6442 = vmatmul.mubr.msk.f32.vlgmr.msra.gmra.mxu1 %vm2713_vm3, %v5364_v37  ;;  %4113 = vmatprep.subr.mxu1 %v5401_v46  ;;  %v5428_v37 = vld [vmem:[%s9936_s7 + $0x7a0] sm:$0xff] }
 0xc03   :  { %3963 = vmatmul.mubr.f32.vlgmr.msra.gmra.mxu0 %v3851_v59  ;;  %6444 = vmatprep.mubr.msk.f32.mxu1 %vm6499_vm2, %v6498_v0  ;;  %v5374_v46 = vld [vmem:[%s9936_s7 + $0x620] sm:$0xff]  ;;  %v5427_v59 = vld [vmem:[%s9936_s7 + $0x798] sm:$0xff] }
 0xc04   :  { %6451 = vmatpush3.msra.mxu0 %v8558_v44  ;;  %v6420_v58 = vpop.f32.mrf.mxu0  ;;  %3968 = vmatprep.mubr.f32.mxu0 %v6498_v0 }
 0xc05   :  { %6452 = vmatprep.subr.mxu0 %v6498_v0  ;;  %4114 = vmatpush1.msra.mxu1 %v5400_v50  ;;  %v5373_v50 = vld [vmem:[%s9936_s7 + $0x618] sm:$0xff]  ;;  %v5372_v58 = vld [vmem:[%s9936_s7 + $0x610] sm:$0xff] }
 0xc06   :  { %6453 = vmatpush3.msra.mxu0 %v8561_v52  ;;  %v3856_v16 = vpop.f32.mrf.mxu0  ;;  %6445 = vmatmul.mubr.msk.f32.gmra.mxu1 %vm2713_vm3, %v5365_v54  ;;  %v5426_v54 = vld [vmem:[%s9936_s7 + $0x790] sm:$0xff] }
 0xc07   :  { %6454 = vmatprep.subr.mxu0 %v6498_v0  ;;  %3969 = vmatmul.mubr.f32.gmra.mxu0 %v3856_v16  ;;  %v5425_v16 = vld [vmem:[%s9936_s7 + $0x788] sm:$0xff] }
 0xc08   :  { %6455 = vmatpush3.msra.mxu0 %v8568_v9  ;;  %v6423_v62 = vpop.f32.mrf.mxu0  ;;  %6447 = vmatprep.mubr.msk.f32.mxu1 %vm6499_vm2, %v6498_v0 }
 0xc09   :  { %6456 = vmatprep.subr.mxu0 %v6498_v0  ;;  %3974 = vmatprep.mubr.f32.mxu0 %v6498_v0  ;;  %v5424_v62 = vld [vmem:[%s9936_s7 + $0x780] sm:$0xff] }
 0xc0a   :  { %6457 = vmatpush3.msra.mxu0 %v8574_v61  ;;  %v3861_v15 = vpop.f32.mrf.mxu0  ;;  %6448 = vmatmul.mubr.msk.f32.gmra.mxu1 %vm2713_vm3, %v5366_v3  ;;  %v5371_v3 = vld [vmem:[%s9936_s7 + $0x608] sm:$0xff] }
 0xc0b   :  { %6458 = vmatprep.subr.mxu0 %v6498_v0  ;;  %3975 = vmatmul.mubr.f32.gmra.mxu0 %v3861_v15  ;;  %v5370_v15 = vld [vmem:[%s9936_s7 + $0x600] sm:$0xff] }
 0xc0c   :  { %6459 = vmatpush3.msra.mxu0 %v8580_v5  ;;  %6464 = vmatprep.mubr.msk.f32.mxu0 %vm6499_vm2, %v6498_v0  ;;  %v6426_v13 = vpop.f32.mrf.mxu0 }
 0xc0d   :  { %6460 = vmatprep.subr.mxu0 %v6498_v0  ;;  %4115 = vmatprep.subr.mxu1 %v5399_v20  ;;  %v5423_v20 = vld [vmem:[%s9936_s7 + $0x778] sm:$0xff]  ;;  %v5420_v13 = vld [vmem:[%s9936_s7 + $0x760] sm:$0xff] }
 0xc0e   :  { %6461 = vmatpush3.msra.mxu0 %v8586_v11  ;;  %4116 = vmatpush1.msra.mxu1 %v5398_v63  ;;  %v5422_v63 = vld [vmem:[%s9936_s7 + $0x770] sm:$0xff] }
 0xc0f   :  { %6462 = vmatprep.subr.mxu0 %v6498_v0  ;;  %4117 = vmatprep.subr.mxu1 %v5397_v7  ;;  %v5421_v7 = vld [vmem:[%s9936_s7 + $0x768] sm:$0xff] }
 0xc10   :  { %6463 = vmatpush3.msra.mxu0 %v8592_v18  ;;  %4118 = vmatpush1.msra.mxu1 %v5396_v17  ;;  %v5419_v17 = vld [vmem:[%s9936_s7 + $0x758] sm:$0xff] }
 0xc11   :  { %6465 = vmatmul.mubr.msk.f32.vlgmr.msra.gmra.mxu0 %vm2713_vm3, %v5402_v19  ;;  %4119 = vmatprep.subr.mxu1 %v5395_v47  ;;  %v5418_v19 = vld [vmem:[%s9936_s7 + $0x750] sm:$0xff]  ;;  %v5417_v47 = vld [vmem:[%s9936_s7 + $0x748] sm:$0xff] }
 0xc12   :  { %6467 = vmatprep.mubr.msk.f32.mxu0 %vm6499_vm2, %v6498_v0  ;;  %4120 = vmatpush1.msra.mxu1 %v5394_v21  ;;  %v5416_v21 = vld [vmem:[%s9936_s7 + $0x740] sm:$0xff] }
 0xc13   :  { %4121 = vmatprep.subr.mxu1 %v5393_v23  ;;  %4328 = vmatprep.subr.mxu0 %v5439_v8  ;;  %v5415_v23 = vld [vmem:[%s9936_s7 + $0x738] sm:$0xff]  ;;  %v5414_v8 = vld [vmem:[%s9936_s7 + $0x730] sm:$0xff] }
 0xc14   :  { %4122 = vmatpush1.msra.mxu1 %v5392_v26  ;;  %4329 = vmatpush1.msra.mxu0 %v5438_v27  ;;  %v5413_v26 = vld [vmem:[%s9936_s7 + $0x728] sm:$0xff]  ;;  %v5412_v27 = vld [vmem:[%s9936_s7 + $0x720] sm:$0xff] }
 0xc15   :  { %6468 = vmatmul.mubr.msk.f32.gmra.mxu0 %vm2713_vm3, %v5403_v28  ;;  %4123 = vmatprep.subr.mxu1 %v5391_v2  ;;  %v5411_v28 = vld [vmem:[%s9936_s7 + $0x718] sm:$0xff]  ;;  %v5410_v2 = vld [vmem:[%s9936_s7 + $0x710] sm:$0xff] }
 0xc16   :  { %6470 = vmatprep.mubr.msk.f32.mxu0 %vm6499_vm2, %v6498_v0  ;;  %4124 = vmatpush1.msra.mxu1 %v5390_v30  ;;  %v5409_v30 = vld [vmem:[%s9936_s7 + $0x708] sm:$0xff] }
 0xc17   :  { %4125 = vmatprep.subr.mxu1 %v5389_v32  ;;  %4330 = vmatprep.subr.mxu0 %v5437_v34  ;;  %v5408_v32 = vld [vmem:[%s9936_s7 + $0x700] sm:$0xff] }
 0xc18   :  { %4126 = vmatpush1.msra.mxu1 %v5388_v35  ;;  %4331 = vmatpush1.msra.mxu0 %v5436_v36 }
 0xc19   :  { %6471 = vmatmul.mubr.msk.f32.gmra.mxu0 %vm2713_vm3, %v5404_v25  ;;  %4127 = vmatprep.subr.mxu1 %v5387_v4 }
 0xc1a   :  { %4128 = vmatpush1.msra.mxu1 %v5386_v31  ;;  %4177 = vmatprep.mubr.f32.mxu1 %v6498_v0 }
 0xc1b   :  { %4129 = vmatprep.subr.mxu1 %v5385_v33  ;;  %4392 = vmatprep.mubr.f32.mxu0 %v6498_v0 }
 0xc1c   :  { %4130 = vmatpush1.msra.mxu1 %v5384_v40  ;;  %4332 = vmatprep.subr.mxu0 %v5435_v45 }
 0xc1d   :  { %4131 = vmatprep.subr.mxu1 %v5383_v38  ;;  %4333 = vmatpush1.msra.mxu0 %v5434_v55 }
 0xc1e   :  { %4132 = vmatpush1.msra.mxu1 %v5382_v39  ;;  %4334 = vmatprep.subr.mxu0 %v5433_v43 }
 0xc1f   :  { %4133 = vmatprep.subr.mxu1 %v5381_v51  ;;  %4335 = vmatpush1.msra.mxu0 %v5432_v56 }
 0xc20   :  { %4134 = vmatpush1.msra.mxu1 %v5380_v48  ;;  %4336 = vmatprep.subr.mxu0 %v5431_v60 }
 0xc21   :  { %4135 = vmatprep.subr.mxu1 %v5379_v41  ;;  %4337 = vmatpush1.msra.mxu0 %v5430_v6 }
 0xc22   :  { %4136 = vmatpush1.msra.mxu1 %v5378_v57  ;;  %4338 = vmatprep.subr.mxu0 %v5429_v24 }
 0xc23   :  { %4137 = vmatprep.subr.mxu1 %v5377_v14  ;;  %4339 = vmatpush1.msra.mxu0 %v5428_v37  ;;  %v5474_v37 = vld [vmem:[%s9936_s7 + $0x8e0] sm:$0xff] }
 0xc24   :  { %4138 = vmatpush1.msra.mxu1 %v5376_v12  ;;  %4340 = vmatprep.subr.mxu0 %v5427_v59  ;;  %v5477_v12 = vld [vmem:[%s9936_s7 + $0x8f8] sm:$0xff] }
 0xc25   :  { %4139 = vmatprep.subr.mxu1 %v5375_v53  ;;  %4341 = vmatpush1.msra.mxu0 %v5426_v54  ;;  %v5473_v59 = vld [vmem:[%s9936_s7 + $0x8d8] sm:$0xff] }
 0xc26   :  { %4140 = vmatpush1.msra.mxu1 %v5374_v46  ;;  %4342 = vmatprep.subr.mxu0 %v5425_v16  ;;  %v5471_v16 = vld [vmem:[%s9936_s7 + $0x8c8] sm:$0xff] }
 0xc27   :  { %4141 = vmatprep.subr.mxu1 %v5373_v50  ;;  %4343 = vmatpush1.msra.mxu0 %v5424_v62  ;;  %v5442_v50 = vld [vmem:[%s9935_s6 + $0xd0] sm:$0xff]  ;;  %v5470_v62 = vld [vmem:[%s9936_s7 + $0x8c0] sm:$0xff] }
 0xc28   :  { %4142 = vmatpush1.msra.mxu1 %v5372_v58  ;;  %4344 = vmatprep.subr.mxu0 %v5423_v20  ;;  %v5472_v58 = vld [vmem:[%s9936_s7 + $0x8d0] sm:$0xff] }
 0xc29   :  { %4143 = vmatprep.subr.mxu1 %v5371_v3  ;;  %4345 = vmatpush1.msra.mxu0 %v5422_v63  ;;  %v5468_v20 = vld [vmem:[%s9936_s7 + $0x8b0] sm:$0xff] }
 0xc2a   :  { %4144 = vmatpush1.msra.mxu1 %v5370_v15  ;;  %4346 = vmatprep.subr.mxu0 %v5421_v7  ;;  %v5469_v15 = vld [vmem:[%s9936_s7 + $0x8b8] sm:$0xff]  ;;  %v5467_v7 = vld [vmem:[%s9936_s7 + $0x8a8] sm:$0xff] }
 0xc2b   :  { %6473 = vmatprep.subr.mxu1 %v6498_v0  ;;  %4347 = vmatpush1.msra.mxu0 %v5420_v13  ;;  %v5466_v13 = vld [vmem:[%s9936_s7 + $0x8a0] sm:$0xff] }
 0xc2c   :  { %4348 = vmatprep.subr.mxu0 %v5419_v17  ;;  %v5465_v17 = vld [vmem:[%s9936_s7 + $0x898] sm:$0xff] }
 0xc2d   :  { %4349 = vmatpush1.msra.mxu0 %v5418_v19  ;;  %v5464_v19 = vld [vmem:[%s9936_s7 + $0x890] sm:$0xff] }
 0xc2e   :  { %4350 = vmatprep.subr.mxu0 %v5417_v47  ;;  %v5463_v47 = vld [vmem:[%s9936_s7 + $0x888] sm:$0xff] }
 0xc2f   :  { %4351 = vmatpush1.msra.mxu0 %v5416_v21  ;;  %v5462_v21 = vld [vmem:[%s9936_s7 + $0x880] sm:$0xff] }
 0xc30   :  { %4352 = vmatprep.subr.mxu0 %v5415_v23  ;;  %v5461_v23 = vld [vmem:[%s9936_s7 + $0x878] sm:$0xff] }
 0xc31   :  { %4353 = vmatpush1.msra.mxu0 %v5414_v8  ;;  %v5460_v8 = vld [vmem:[%s9936_s7 + $0x870] sm:$0xff] }
 0xc32   :  { %4354 = vmatprep.subr.mxu0 %v5413_v26  ;;  %v5459_v26 = vld [vmem:[%s9936_s7 + $0x868] sm:$0xff] }
 0xc33   :  { %4355 = vmatpush1.msra.mxu0 %v5412_v27  ;;  %v5458_v27 = vld [vmem:[%s9936_s7 + $0x860] sm:$0xff] }
 0xc34   :  { %4356 = vmatprep.subr.mxu0 %v5411_v28  ;;  %v5457_v28 = vld [vmem:[%s9936_s7 + $0x858] sm:$0xff] }
 0xc35   :  { %4357 = vmatpush1.msra.mxu0 %v5410_v2  ;;  %v5456_v2 = vld [vmem:[%s9936_s7 + $0x850] sm:$0xff] }
 0xc36   :  { %4358 = vmatprep.subr.mxu0 %v5409_v30  ;;  %v5455_v30 = vld [vmem:[%s9936_s7 + $0x848] sm:$0xff] }
 0xc37   :  { %4359 = vmatpush1.msra.mxu0 %v5408_v32  ;;  %v5454_v32 = vld [vmem:[%s9936_s7 + $0x840] sm:$0xff] }
 0xcb4   :  { %v3749_v34 = vpop.f32.mrf.mxu1 }
 0xcb5   :  { %v3766_v35 = vadd.f32 %v3749_v34, %v9370_v49  ;;  %v5453_v34 = vld [vmem:[%s9936_s7 + $0x838] sm:$0xff] }
 0xcb6   :  { %v3751_v36 = vpop.f32.mrf.mxu1 }
 0xcb7   :  { %v3767_v25 = vadd.f32 %v3751_v36, %v9375_v42  ;;  %v5451_v36 = vld [vmem:[%s9936_s7 + $0x828] sm:$0xff] }
 0xcb8   :  { %v3755_v4 = vpop.f32.mrf.mxu1 }
 0xcb9   :  { %v3768_v31 = vadd.f32 %v3755_v4, %v9379_v1  ;;  %v5449_v4 = vld [vmem:[%s9936_s7 + $0x818] sm:$0xff] }
 0xcba   :  { %v3757_v33 = vpop.f32.mrf.mxu1 }
 0xcbb   :  { %v3769_v40 = vadd.f32 %v3757_v33, %v9384_v10  ;;  %v5447_v33 = vld [vmem:[%s9936_s7 + $0x808] sm:$0xff] }
 0xcbc   :  { %v3761_v38 = vpop.f32.mrf.mxu1 }
 0xcbd   :  { %v3770_v39 = vadd.f32 %v3761_v38, %v9388_v22 }
 0xcbe   :  { %v3763_v45 = vpop.f32.mrf.mxu1 }
 0xcbf   :  { %v3771_v51 = vadd.f32 %v3763_v45, %v9394_v29 }
 0xcc2   :  { %v4066_v55 = vpop.f32.mrf.mxu1 }
 0xcc3   :  { %v3964_v48 = vpop.f32.mrf.mxu0  ;;  %4178 = vmatmul.mubr.f32.vlgmr.msra.gmra.mxu1 %v4066_v55 }
 0xcc4   :  { %v9649_v43 = vadd.f32 %v3964_v48, %v3766_v35  ;;  %6474 = vmatpush3.msra.mxu1 %v8558_v44  ;;  %v6443_v49 = vpop.f32.mrf.mxu1  ;;  %4183 = vmatprep.mubr.f32.mxu1 %v6498_v0  ;;  %v5452_v35 = vld [vmem:[%s9936_s7 + $0x830] sm:$0xff] }
 0xcc5   :  { %6475 = vmatprep.subr.mxu1 %v6498_v0  ;;  %v3966_v42 = vpop.f32.mrf.mxu0 }
 0xcc6   :  { %v9654_v1 = vadd.f32 %v3966_v42, %v3767_v25  ;;  %6476 = vmatpush3.msra.mxu1 %v8561_v52  ;;  %v4071_v10 = vpop.f32.mrf.mxu1  ;;  %v5450_v25 = vld [vmem:[%s9936_s7 + $0x820] sm:$0xff] }
 0xcc7   :  { %6477 = vmatprep.subr.mxu1 %v6498_v0  ;;  %v3970_v22 = vpop.f32.mrf.mxu0  ;;  %4184 = vmatmul.mubr.f32.gmra.mxu1 %v4071_v10 }
 0xcc8   :  { %v9658_v29 = vadd.f32 %v3970_v22, %v3768_v31  ;;  %6478 = vmatpush3.msra.mxu1 %v8568_v9  ;;  %v6446_v44 = vpop.f32.mrf.mxu1  ;;  %4189 = vmatprep.mubr.f32.mxu1 %v6498_v0  ;;  %v5448_v31 = vld [vmem:[%s9936_s7 + $0x810] sm:$0xff] }
 0xcc9   :  { %6479 = vmatprep.subr.mxu1 %v6498_v0  ;;  %v3972_v41 = vpop.f32.mrf.mxu0 }
 0xcca   :  { %v9663_v56 = vadd.f32 %v3972_v41, %v3769_v40  ;;  %6480 = vmatpush3.msra.mxu1 %v8574_v61  ;;  %v4076_v52 = vpop.f32.mrf.mxu1  ;;  %v5440_v61 = vld [vmem:[%s9935_s6 + $0xc0] sm:$0xff] }
 0xccb   :  { %6481 = vmatprep.subr.mxu1 %v6498_v0  ;;  %v3976_v57 = vpop.f32.mrf.mxu0  ;;  %4190 = vmatmul.mubr.f32.gmra.mxu1 %v4076_v52  ;;  %v5446_v40 = vld [vmem:[%s9936_s7 + $0x800] sm:$0xff] }
 0xccc   :  { %v9667_v60 = vadd.f32 %v3976_v57, %v3770_v39  ;;  %6482 = vmatpush3.msra.mxu1 %v8580_v5  ;;  %6487 = vmatprep.mubr.msk.f32.mxu1 %vm6499_vm2, %v6498_v0  ;;  %v6449_v9 = vpop.f32.mrf.mxu1  ;;  %v5476_v5 = vld [vmem:[%s9936_s7 + $0x8f0] sm:$0xff] }
 0xccd   :  { %6483 = vmatprep.subr.mxu1 %v6498_v0  ;;  %v3978_v14 = vpop.f32.mrf.mxu0  ;;  %v4746_v9 = vld [vmem:[%s9937_s10 + $0x78] sm:$0xff] }
 0xcce   :  { %v9673_v6 = vadd.f32 %v3978_v14, %v3771_v51  ;;  %6484 = vmatpush3.msra.mxu1 %v8586_v11  ;;  %v5475_v11 = vld [vmem:[%s9936_s7 + $0x8e8] sm:$0xff]  ;;  %v4761_v14 = vld [vmem:[%s9937_s10 + $0xf0] sm:$0xff] }
 0xccf   :  { %6485 = vmatprep.subr.mxu1 %v6498_v0 }
 0xcd0   :  { %6486 = vmatpush3.msra.mxu1 %v8592_v18  ;;  %v5441_v18 = vld [vmem:[%s9935_s6 + $0xc8] sm:$0xff] }
 0xcd1   :  { %v4281_v24 = vpop.f32.mrf.mxu0  ;;  %6488 = vmatmul.mubr.msk.f32.vlgmr.msra.gmra.mxu1 %vm2713_vm3, %v5440_v61  ;;  %4543 = vmatprep.subr.mxu1 %v5477_v12  ;;  %v4744_v61 = vld [vmem:[%s9937_s10 + $0x68] sm:$0xff]  ;;  %v4759_v12 = vld [vmem:[%s9937_s10 + $0xe0] sm:$0xff] }
 0xcd2   :  { %4393 = vmatmul.mubr.f32.vlgmr.msra.gmra.mxu0 %v4281_v24  ;;  %6490 = vmatprep.mubr.msk.f32.mxu1 %vm6499_vm2, %v6498_v0  ;;  %v4758_v24 = vld [vmem:[%s9937_s10 + $0xd8] sm:$0xff] }
 0xcd3   :  { %v6466_v53 = vpop.f32.mrf.mxu0  ;;  %4398 = vmatprep.mubr.f32.mxu0 %v6498_v0  ;;  %4544 = vmatpush1.msra.mxu1 %v5476_v5  ;;  %v4743_v5 = vld [vmem:[%s9937_s10 + $0x60] sm:$0xff] }
 0xcd4   :  { %4545 = vmatprep.subr.mxu1 %v5475_v11  ;;  %v4742_v11 = vld [vmem:[%s9937_s10 + $0x58] sm:$0xff]  ;;  %v4741_v53 = vld [vmem:[%s9937_s10 + $0x50] sm:$0xff] }
 0xcd5   :  { %v4286_v46 = vpop.f32.mrf.mxu0  ;;  %6491 = vmatmul.mubr.msk.f32.gmra.mxu1 %vm2713_vm3, %v5441_v18  ;;  %v4757_v18 = vld [vmem:[%s9937_s10 + $0xd0] sm:$0xff] }
 0xcd6   :  { %4399 = vmatmul.mubr.f32.gmra.mxu0 %v4286_v46  ;;  %6493 = vmatprep.mubr.msk.f32.mxu1 %vm6499_vm2, %v6498_v0  ;;  %v4740_v46 = vld [vmem:[%s9937_s10 + $0x48] sm:$0xff] }
 0xcd7   :  { %v6469_v54 = vpop.f32.mrf.mxu0  ;;  %4404 = vmatprep.mubr.f32.mxu0 %v6498_v0  ;;  %4546 = vmatpush1.msra.mxu1 %v5474_v37  ;;  %v4756_v37 = vld [vmem:[%s9937_s10 + $0xc8] sm:$0xff] }
 0xcd8   :  { %4547 = vmatprep.subr.mxu1 %v5473_v59  ;;  %v4755_v59 = vld [vmem:[%s9937_s10 + $0xc0] sm:$0xff]  ;;  %v4754_v54 = vld [vmem:[%s9937_s10 + $0xb8] sm:$0xff] }
 0xcd9   :  { %v4291_v3 = vpop.f32.mrf.mxu0  ;;  %6494 = vmatmul.mubr.msk.f32.gmra.mxu1 %vm2713_vm3, %v5442_v50  ;;  %v4739_v50 = vld [vmem:[%s9937_s10 + $0x40] sm:$0xff] }
 0xcda   :  { %4405 = vmatmul.mubr.f32.gmra.mxu0 %v4291_v3  ;;  %4548 = vmatpush1.msra.mxu1 %v5472_v58  ;;  %v4738_v58 = vld [vmem:[%s9937_s10 + $0x38] sm:$0xff]  ;;  %v4737_v3 = vld [vmem:[%s9937_s10 + $0x30] sm:$0xff] }
 0xcdb   :  { %4549 = vmatprep.subr.mxu1 %v5471_v16  ;;  %v6472_v63 = vpop.f32.mrf.mxu0  ;;  %4607 = vmatprep.mubr.f32.mxu1 %v6498_v0  ;;  %v4753_v16 = vld [vmem:[%s9937_s10 + $0xb0] sm:$0xff] }
 0xcdc   :  { %4550 = vmatpush1.msra.mxu1 %v5470_v62  ;;  %v4752_v62 = vld [vmem:[%s9937_s10 + $0xa8] sm:$0xff]  ;;  %v4735_v63 = vld [vmem:[%s9937_s10 + $0x20] sm:$0xff] }
 0xcdd   :  { %4551 = vmatprep.subr.mxu1 %v5469_v15  ;;  %v4736_v15 = vld [vmem:[%s9937_s10 + $0x28] sm:$0xff] }
 0xcde   :  { %4552 = vmatpush1.msra.mxu1 %v5468_v20  ;;  %v4751_v20 = vld [vmem:[%s9937_s10 + $0xa0] sm:$0xff] }
 0xcdf   :  { %4553 = vmatprep.subr.mxu1 %v5467_v7  ;;  %v4750_v7 = vld [vmem:[%s9937_s10 + $0x98] sm:$0xff] }
 0xce0   :  { %4554 = vmatpush1.msra.mxu1 %v5466_v13  ;;  %v4734_v13 = vld [vmem:[%s9937_s10 + $0x18] sm:$0xff] }
 0xce1   :  { %4555 = vmatprep.subr.mxu1 %v5465_v17  ;;  %v4749_v17 = vld [vmem:[%s9937_s10 + $0x90] sm:$0xff] }
 0xce2   :  { %4556 = vmatpush1.msra.mxu1 %v5464_v19  ;;  %v4733_v19 = vld [vmem:[%s9937_s10 + $0x10] sm:$0xff] }
 0xce3   :  { %4557 = vmatprep.subr.mxu1 %v5463_v47 }
 0xce4   :  { %4558 = vmatpush1.msra.mxu1 %v5462_v21 }
 0xce5   :  { %4559 = vmatprep.subr.mxu1 %v5461_v23 }
 0xce6   :  { %4560 = vmatpush1.msra.mxu1 %v5460_v8 }
 0xce7   :  { %4561 = vmatprep.subr.mxu1 %v5459_v26  ;;  %v4634_v26 = vlaneseq }
 0xce8   :  { %4562 = vmatpush1.msra.mxu1 %v5458_v27 }
 0xce9   :  { %4563 = vmatprep.subr.mxu1 %v5457_v28 }
 0xcea   :  { %4564 = vmatpush1.msra.mxu1 %v5456_v2  ;;  %v4635_v2 = vshrl.u32 %v4634_v26, 7 }
 0xceb   :  { %4565 = vmatprep.subr.mxu1 %v5455_v30 }
 0xcec   :  { %4566 = vmatpush1.msra.mxu1 %v5454_v32 }
 0xced   :  { %4567 = vmatprep.subr.mxu1 %v5453_v34 }
 0xcee   :  { %4568 = vmatpush1.msra.mxu1 %v5452_v35  ;;  %v4636_v35 = vsub.s32 0, %v4635_v2 }
 0xcef   :  { %4569 = vmatprep.subr.mxu1 %v5451_v36 }
 0xcf0   :  { %4570 = vmatpush1.msra.mxu1 %v5450_v25 }
 0xcf1   :  { %4571 = vmatprep.subr.mxu1 %v5449_v4 }
 0xcf2   :  { %4572 = vmatpush1.msra.mxu1 %v5448_v31  ;;  %v4632_v31 = vld [vmem:[%s9938_s8] sm:$0x3] }
 0xcf3   :  { %4573 = vmatprep.subr.mxu1 %v5447_v33  ;;  %v4640_v33 = vsub.s32 1, %v4635_v2 }
 0xcf4   :  { %4574 = vmatpush1.msra.mxu1 %v5446_v40 }
 0xd83   :  { %v4179_v38 = vpop.f32.mrf.mxu1 }
 0xd84   :  { %v9794_v39 = vadd.f32 %v4179_v38, %v9649_v43 }
 0xd85   :  { %v4181_v45 = vpop.f32.mrf.mxu1 }
 0xd86   :  { %v9797_v51 = vadd.f32 %v4181_v45, %v9654_v1 }
 0xd87   :  { %v4185_v55 = vpop.f32.mrf.mxu1 }
 0xd88   :  { %v9800_v48 = vadd.f32 %v4185_v55, %v9658_v29 }
 0xd89   :  { %v4187_v49 = vpop.f32.mrf.mxu1 }
 0xd8a   :  { %v9803_v42 = vadd.f32 %v4187_v49, %v9663_v56 }
 0xd8b   :  { %v4191_v10 = vpop.f32.mrf.mxu1 }
 0xd8c   :  { %v9806_v22 = vadd.f32 %v4191_v10, %v9667_v60  ;;  %v4762_v60 = vld [vmem:[%s9937_s10 + $0xf8] sm:$0xff] }
 0xd8d   :  { %v4193_v44 = vpop.f32.mrf.mxu1  ;;  %5777 = vmatprep.subr.mxu0 %v4762_v60 }
 0xd8e   :  { %v9809_v43 = vadd.f32 %v4193_v44, %v9673_v6  ;;  %v4745_v6 = vld [vmem:[%s9937_s10 + $0x70] sm:$0xff]  ;;  %5778 = vmatpush3.msra.mxu0 %v4746_v9 }
 0xd8f   :  { %5779 = vmatprep.subr.mxu0 %v4761_v14 }
 0xd90   :  { %5780 = vmatpush3.msra.mxu0 %v4745_v6 }
 0xd91   :  { %v4496_v41 = vpop.f32.mrf.mxu1 }
 0xd92   :  { %4608 = vmatmul.mubr.f32.vlgmr.msra.gmra.mxu1 %v4496_v41  ;;  %v4394_v47 = vpop.f32.mrf.mxu0  ;;  %v4637_v41 = vrot.slane %v4632_v31, %v4636_v35 }
 0xd93   :  { %v6489_v1 = vpop.f32.mrf.mxu1  ;;  %4613 = vmatprep.mubr.f32.mxu1 %v6498_v0  ;;  %v4411_v44 = vadd.f32 %v4394_v47, %v9794_v39 }
 0xd94   :  { %v4396_v21 = vpop.f32.mrf.mxu0 }
 0xd95   :  { %v4501_v52 = vpop.f32.mrf.mxu1  ;;  %v4412_v45 = vadd.f32 %v4396_v21, %v9797_v51 }
 0xd96   :  { %4614 = vmatmul.mubr.f32.gmra.mxu1 %v4501_v52  ;;  %v4400_v23 = vpop.f32.mrf.mxu0  ;;  %v4641_v52 = vrot.slane %v4632_v31, %v4640_v33 }
 0xd97   :  { %v6492_v29 = vpop.f32.mrf.mxu1  ;;  %4619 = vmatprep.mubr.f32.mxu1 %v6498_v0  ;;  %v4413_v40 = vadd.f32 %v4400_v23, %v9800_v48 }
 0xd98   :  { %v4402_v8 = vpop.f32.mrf.mxu0 }
 0xd99   :  { %v4506_v56 = vpop.f32.mrf.mxu1  ;;  %v4414_v25 = vadd.f32 %v4402_v8, %v9803_v42 }
 0xd9a   :  { %4620 = vmatmul.mubr.f32.gmra.mxu1 %v4506_v56  ;;  %v4406_v28 = vpop.f32.mrf.mxu0 }
 0xd9b   :  { %v6495_v57 = vpop.f32.mrf.mxu1  ;;  %4724 = vmatprep.mubr.f32.mxu1 %v6498_v0  ;;  %v4760_v0 = vld [vmem:[%s9937_s10 + $0xe8] sm:$0xff]  ;;  %v4415_v4 = vadd.f32 %v4406_v28, %v9806_v22 }
 0xd9c   :  { %5781 = vmatprep.subr.mxu0 %v4760_v0  ;;  %v4408_v34 = vpop.f32.mrf.mxu0 }
 0xd9d   :  { %5782 = vmatpush3.msra.mxu0 %v4744_v61  ;;  %v4416_v55 = vadd.f32 %v4408_v34, %v9809_v43 }
 0xd9e   :  { %5783 = vmatprep.subr.mxu0 %v4759_v12 }
 0xd9f   :  { %5784 = vmatpush3.msra.mxu0 %v4743_v5  ;;  %v4656_v5 = vld [vmem:[%s9939_s9] sm:$0xff] }
 0xda0   :  { %5785 = vmatprep.subr.mxu0 %v4758_v24  ;;  %v4748_v24 = vld [vmem:[%s9937_s10 + $0x88] sm:$0xff] }
 0xda1   :  { %5786 = vmatpush3.msra.mxu0 %v4742_v11  ;;  %v4732_v11 = vld [vmem:[%s9937_s10 + $0x8] sm:$0xff] }
 0xda2   :  { %5787 = vmatprep.subr.mxu0 %v4757_v18  ;;  %v4747_v18 = vld [vmem:[%s9937_s10 + $0x80] sm:$0xff] }
 0xda3   :  { %5788 = vmatpush3.msra.mxu0 %v4741_v53  ;;  %v4731_v53 = vld [vmem:[%s9937_s10] sm:$0xff] }
 0xda4   :  { %5789 = vmatprep.subr.mxu0 %v4756_v37 }
 0xda5   :  { %5790 = vmatpush3.msra.mxu0 %v4740_v46 }
 0xda6   :  { %5791 = vmatprep.subr.mxu0 %v4755_v59 }
 0xda7   :  { %5792 = vmatpush3.msra.mxu0 %v4739_v50  ;;  %v5479_v50 = vld [vmem:[%s9940_s11] ss:$0 sm:$0xff] }
 0xda8   :  { %5793 = vmatprep.subr.mxu0 %v4754_v54 }
 0xda9   :  { %5794 = vmatpush3.msra.mxu0 %v4738_v58 }
 0xdaa   :  { %5795 = vmatprep.subr.mxu0 %v4753_v16 }
 0xdab   :  { %5796 = vmatpush3.msra.mxu0 %v4737_v3 }
 0xdac   :  { %5797 = vmatprep.subr.mxu0 %v4752_v62 }
 0xdad   :  { %5798 = vmatpush3.msra.mxu0 %v4736_v15 }
 0xdae   :  { %5799 = vmatprep.subr.mxu0 %v4751_v20 }
 0xdaf   :  { %5800 = vmatpush3.msra.mxu0 %v4735_v63 }
 0xdb0   :  { %5801 = vmatprep.subr.mxu0 %v4750_v7 }
 0xdb1   :  { %5802 = vmatpush3.msra.mxu0 %v4734_v13 }
 0xdb2   :  { %5803 = vmatprep.subr.mxu0 %v4749_v17 }
 0xdb3   :  { %5804 = vmatpush3.msra.mxu0 %v4733_v19 }
 0xdb4   :  { %5805 = vmatprep.subr.mxu0 %v4748_v24 }
 0xdb5   :  { %5806 = vmatpush3.msra.mxu0 %v4732_v11 }
 0xdb6   :  { %5807 = vmatprep.subr.mxu0 %v4747_v18 }
 0xdb7   :  { %5808 = vmatpush3.msra.mxu0 %v4731_v53 }
 0xe52   :  { %v4609_v27 = vpop.f32.mrf.mxu1 }
 0xe53   :  { %v4626_v56 = vadd.f32 %v4609_v27, %v4411_v44 }
 0xe54   :  { %v4611_v30 = vpop.f32.mrf.mxu1 }
 0xe55   :  { %v4627_v22 = vadd.f32 %v4611_v30, %v4412_v45  ;;  %v4644_v51 = vadd.f32 %v4637_v41, %v4626_v56 }
 0xe56   :  { %v4615_v32 = vpop.f32.mrf.mxu1 }
 0xe57   :  { %v4628_v42 = vadd.f32 %v4615_v32, %v4413_v40  ;;  %v4645_v14 = vadd.f32 %v4641_v52, %v4627_v22  ;;  %v4650_v12 = vmax.f32 %v4644_v51, 0.0 }
 0xe58   :  { %v4617_v36 = vpop.f32.mrf.mxu1 }
 0xe59   :  { %v4629_v49 = vadd.f32 %v4617_v36, %v4414_v25  ;;  %v4646_v48 = vadd.f32 %v4637_v41, %v4628_v42  ;;  %v4651_v39 = vmax.f32 %v4645_v14, 0.0 }
 0xe5a   :  { %v4621_v38 = vpop.f32.mrf.mxu1 }
 0xe5b   :  { %v4630_v10 = vadd.f32 %v4621_v38, %v4415_v4  ;;  %v4647_v60 = vadd.f32 %v4641_v52, %v4629_v49  ;;  %v4652_v61 = vmax.f32 %v4646_v48, 0.0 }
 0xe5c   :  { %v4623_v1 = vpop.f32.mrf.mxu1 }
 0xe5d   :  { %v4631_v29 = vadd.f32 %v4623_v1, %v4416_v55  ;;  %v4648_v57 = vadd.f32 %v4637_v41, %v4630_v10  ;;  %v4653_v43 = vmax.f32 %v4647_v60, 0.0 }
 0xe5f   :  { %v4649_v9 = vadd.f32 %v4641_v52, %v4631_v29  ;;  %v4654_v0 = vmax.f32 %v4648_v57, 0.0 }
 0xe61   :  { %v4655_v6 = vmax.f32 %v4649_v9, 0.0 }
 0xe63   :  { %4686 = vmatprep.subr.mxu1 %v4655_v6 }
 0xe64   :  { %4687 = vmatpush1.msra.mxu1 %v4654_v0 }
 0xe65   :  { %4688 = vmatprep.subr.mxu1 %v4653_v43 }
 0xe66   :  { %4689 = vmatpush1.msra.mxu1 %v4652_v61 }
 0xe67   :  { %4690 = vmatprep.subr.mxu1 %v4651_v39 }
 0xe68   :  { %4691 = vmatpush1.msra.mxu1 %v4650_v12 }
 0xe69   :  { %5478 = vmatmul.mubr.msk.f32.vlgmr.msra.gmra.mxu1 %vm109_vm0, %v4656_v5 }
 0xf29   :  { %v4726_v37 = vpop.f32.mrf.mxu1 }
 0xf2b   :  { %v4728_v46 = vpop.f32.mrf.mxu1 }
 0xf2c   :  { %4834 = vmatprep.mubr.f32.mxu0 %v4728_v46 }
 0xf2d   :  { %4835 = vmatmul.mubr.f32.vlgmr.msra.gmra.mxu0 %v4726_v37 }
 0xfed   :  { %v5809_v59 = vpop.f32.mrf.mxu0 }
 0xfef   :  { %v5810_v54 = vpop.f32.mrf.mxu0 }
 0xff0   :  { %v5811_v58 = vadd.f32 %v5810_v54, %v5809_v59 }
 0xff2   :  { %v4837_v16 = vadd.f32 %v5811_v58, %v5479_v50 }
 0xff4   :  { %4840 = vst [vmem:[%s9941_s12] sm:$0xff] %v4837_v16 }

</bundles_post_ra>
